<compile_context>
chip_gen: v7x
topology: tpu7x:2x2x1
jax: 0.10.0
libtpu: 0.0.40
codegen_flags: <defaults>
</compile_context>

<pallas_src>
import functools
import math

import numpy as np

import jax
import jax.numpy as jnp
from jax import lax
from jax.experimental import pallas as pl
from jax.experimental.pallas import tpu as pltpu

EPS = 1e-5
_STATS_PREC = lax.Precision.HIGHEST   # tiny stats/broadcast dots only; heavy matmuls default


def conv1d_emb_kernel(x_ref, eb_ref, segT_ref, seg_ref, mask_ref,
                      w1_ref, b1_ref, a1_ref, g1_ref, be1_ref,
                      wdw_ref, bdw_ref, a2_ref, g2_ref, be2_ref,
                      w3_ref, b3_ref, o_ref, *, bblk, t):
    """One grid step: `bblk` samples folded into a lane-dense (C, bblk*t) tile."""
    L = bblk * t
    x = x_ref[...]                       # (Cin, L)
    segT = segT_ref[...]                 # (bblk, L) 0/1 per-sample indicator (hoisted)
    seg = seg_ref[...]                   # (L, bblk) = segT.T (hoisted; avoids in-kernel
                                         #  iota/transpose; a dot_general NT contraction
                                         #  on segT would also work)
    masks = mask_ref[...]                # (2, L) dw-conv boundary masks (hoisted)
    mask_l = masks[0:1, :]
    mask_r = masks[1:2, :]
    cout = w1_ref.shape[0]
    inv_n = 1.0 / float(cout * t)        # gLN element count per sample

    def gln(v, g, be):
        # Fused GlobalLayerNorm per folded sample: single pass for sum/sum-sq,
        # one stats dot + one broadcast dot, var clamped, rsqrt * multiply.
        colsum = jnp.sum(v, axis=0, keepdims=True)                     # (1, L)
        colsq = jnp.sum(v * v, axis=0, keepdims=True)                  # (1, L)
        stats = jnp.concatenate([colsum, colsq], axis=0)               # (2, L)
        s = jnp.dot(stats, seg, precision=_STATS_PREC,
                    preferred_element_type=jnp.float32)                # (2, bblk)
        mean = s[0:1, :] * inv_n
        var = jnp.maximum(s[1:2, :] * inv_n - mean * mean, 0.0)        # clamp: no NaN
        rstd = lax.rsqrt(var + EPS)
        mr = jnp.concatenate([mean, rstd], axis=0)                     # (2, bblk)
        mr_l = jnp.dot(mr, segT, precision=_STATS_PREC,
                       preferred_element_type=jnp.float32)             # (2, L)
        return (v - mr_l[0:1, :]) * (g * mr_l[1:2, :]) + be

    # ---- conv1x1 over the audio channels + folded emb bias + bias ----
    eb_lanes = jnp.dot(eb_ref[...], segT, precision=_STATS_PREC,
                       preferred_element_type=jnp.float32)             # (Cout, L)
    h = jnp.dot(w1_ref[...], x, preferred_element_type=jnp.float32)    # heavy: default prec
    h = h + eb_lanes + b1_ref[...]

    # ---- PReLU1 (slope is an SMEM scalar) ----
    a1 = a1_ref[0]
    h = jnp.where(h > 0, h, a1 * h)

    # ---- gLN1 ----
    h = gln(h, g1_ref[...], be1_ref[...])

    # ---- depthwise conv, k=3, dilation=1, "same" padding, per folded sample ----
    # Neighbours via XLU lane rotations (positive shifts only); the hoisted 0/1
    # masks zero taps that would cross a sample boundary inside the folded tile
    # (these are exactly the circular wrap-around lanes, so roll == shift here).
    h_m1 = pltpu.roll(h, shift=1, axis=1) * mask_l        # h[:, l-1]
    h_p1 = pltpu.roll(h, shift=L - 1, axis=1) * mask_r    # h[:, l+1]
    wdw = wdw_ref[...]                                    # (Cout, 3)
    z = wdw[:, 0:1] * h_m1 + wdw[:, 1:2] * h + wdw[:, 2:3] * h_p1 + bdw_ref[...]

    # ---- PReLU2 ----
    a2 = a2_ref[0]
    z = jnp.where(z > 0, z, a2 * z)

    # ---- gLN2 ----
    z = gln(z, g2_ref[...], be2_ref[...])

    # ---- end_conv1x1 + residual ----
    out = jnp.dot(w3_ref[...], z, preferred_element_type=jnp.float32) + b3_ref[...]
    o_ref[...] = x + out


def _block_vmem_bytes(bblk, t, cin, cout):
    """Rough f32 VMEM footprint of one grid step at fold size `bblk`."""
    L = bblk * t
    return 4 * (4 * cin * L            # x + out blocks, double-buffered
                + (2 * bblk + 2) * L   # hoisted segT + seg + masks constants
                + 8 * cout * L)        # live (Cout, L) intermediates (h, z, rolls, ...)


def _tpu_caps():
    """(vmem_budget_bytes, tensorcores_per_chip); conservative defaults if query fails."""
    vmem_cap = 64 << 20                # v7x per-TC VMEM = smallest in the fleet
    num_tc = 1
    try:
        cap = int(getattr(pltpu.get_tpu_info(), "vmem_capacity_bytes", 0))
        if cap > 0:
            vmem_cap = cap
    except Exception:
        pass
    try:
        kind = jax.devices()[0].device_kind.lower()
        if "v7" in kind or "7x" in kind:
            num_tc = 2
    except Exception:
        pass
    return max(int(0.70 * vmem_cap), 16 << 20), num_tc


def _choose_bblk(batch, t, cin, cout, vmem_budget, num_tc):
    """Samples folded per grid step.

    Pick the LARGEST fold whose lane width (bblk*t) is a multiple of 128 and
    whose per-step footprint fits the per-generation VMEM budget (bigger tiles
    get closer to the HBM roofline and amortize the ~0.35us/step pipeline
    overhead).  Only on 2-TensorCore chips (v7x) do we additionally keep an
    even number (>= 2) of grid steps so the "parallel" batch-block axis can be
    split across both cores; on v5e/v6e more steps is pure overhead.
    """
    step = 128 // math.gcd(t, 128)                 # smallest 128-aligned fold
    max_bblk = step * (-(-batch // step))          # whole (zero-padded) batch in one block
    bblk = max_bblk
    while bblk > step and _block_vmem_bytes(bblk, t, cin, cout) > vmem_budget:
        bblk -= step
    if num_tc >= 2:
        cand = bblk
        while cand > step:
            nblk = -(-batch // cand)
            if nblk >= 2 and nblk % 2 == 0:
                break
            cand -= step
        nblk = -(-batch // cand)
        if nblk >= 2 and nblk % 2 == 0:
            bblk = cand
    return bblk


def conv1d_emb_forward(x, emb, params):
    """x: [B, Cin, T] f32, emb: [B, Cemb] f32 -> [B, Cin, T] f32."""
    B, Cin, T = x.shape
    Cemb = emb.shape[1]
    Cout, Ccat = params["w1"].shape
    assert Ccat == Cin + Cemb

    vmem_budget, num_tc = _tpu_caps()
    bblk = _choose_bblk(B, T, Cin, Cout, vmem_budget, num_tc)
    nblk = -(-B // bblk)
    B_pad = nblk * bblk
    L = bblk * T

    # Zero-pad the batch so every block is a full, 128-aligned lane fold
    # (unmasked lane-dense stores); padded samples are sliced off at the end.
    if B_pad != B:
        x_p = jnp.concatenate([x, jnp.zeros((B_pad - B, Cin, T), x.dtype)], axis=0)
        emb_p = jnp.concatenate([emb, jnp.zeros((B_pad - B, Cemb), emb.dtype)], axis=0)
    else:
        x_p, emb_p = x, emb

    # TODO(synk): at production T (T % 128 == 0) consume x in its native
    # (B, Cin, T) layout (or push the layout onto the producer) so these two
    # full-HBM transposes of x / out disappear, and stream T inside the block
    # (two-pass gLN + 1-element halo) so the (Cout, L) tile need not be fully
    # resident on v7x's 64 MiB VMEM.
    xf = jnp.transpose(x_p, (1, 0, 2)).reshape(Cin, B_pad * T)

    # Fold the time-constant embedding channels of conv1x1 into a per-sample
    # bias (removes the xcat concat and the (B, Cemb, T) broadcast entirely).
    w1_main = params["w1"][:, :Cin]                                    # (Cout, Cin)
    w1_emb = params["w1"][:, Cin:]                                     # (Cout, Cemb)
    ebias = jnp.dot(emb_p, w1_emb.T, precision=lax.Precision.HIGHEST)  # (B_pad, Cout)
    ebias = jnp.transpose(ebias.reshape(nblk, bblk, Cout), (0, 2, 1))  # (nblk, Cout, bblk)

    # Hoisted per-block constants (identical for every grid step, DMA'd once):
    lane = np.arange(L)
    samp = lane // T
    segT_np = (samp[None, :] == np.arange(bblk)[:, None]).astype(np.float32)  # (bblk, L)
    lmod = lane - samp * T
    masks_np = np.stack([(lmod != 0), (lmod != T - 1)]).astype(np.float32)    # (2, L)
    segT = jnp.asarray(segT_np)
    seg = jnp.asarray(segT_np.T.copy())                                       # (L, bblk)
    masks = jnp.asarray(masks_np)

    lane_spec = pl.BlockSpec((Cin, L), lambda i: (0, i))
    full = lambda shape: pl.BlockSpec(shape, lambda i: (0, 0))
    smem = pl.BlockSpec(memory_space=pltpu.MemorySpace.SMEM)

    kernel = functools.partial(conv1d_emb_kernel, bblk=bblk, t=T)

    vmem_limit = int(min(max(_block_vmem_bytes(bblk, T, Cin, Cout) + (2 << 20),
                             32 << 20),
                         max(vmem_budget, 32 << 20)))

    out_flat = pl.pallas_call(
        kernel,
        out_shape=jax.ShapeDtypeStruct((Cin, B_pad * T), jnp.float32),
        grid_spec=pltpu.PrefetchScalarGridSpec(
            num_scalar_prefetch=0,
            grid=(nblk,),
            in_specs=[
                lane_spec,                                              # xf
                pl.BlockSpec((None, Cout, bblk), lambda i: (i, 0, 0)),  # emb bias
                full((bblk, L)),                                        # segT
                full((L, bblk)),                                        # seg
                full((2, L)),                                           # masks
                full((Cout, Cin)),                                      # w1 (audio part)
                full((Cout, 1)),                                        # b1
                smem,                                                   # a1 (PReLU1 slope)
                full((Cout, 1)),                                        # g1
                full((Cout, 1)),                                        # be1
                full((Cout, 3)),                                        # wdw
                full((Cout, 1)),                                        # bdw
                smem,                                                   # a2 (PReLU2 slope)
                full((Cout, 1)),                                        # g2
                full((Cout, 1)),                                        # be2
                full((Cin, Cout)),                                      # w3
                full((Cin, 1)),                                         # b3
            ],
            out_specs=lane_spec,
        ),
        compiler_params=pltpu.CompilerParams(
            dimension_semantics=("parallel",),
            vmem_limit_bytes=vmem_limit),
    )(xf, ebias, segT, seg, masks, w1_main, params["b1"], params["a1"],
      params["g1"], params["be1"], params["wdw"], params["bdw"],
      params["a2"], params["g2"], params["be2"], params["w3"], params["b3"])

    out = jnp.transpose(out_flat.reshape(Cin, B_pad, T), (1, 0, 2))
    return out[:B]


def reference_forward(x, emb, params):
    """Pure-JAX (f32-accurate) reference mirroring the PyTorch forward."""
    B, Cin, T = x.shape
    emb_rep = jnp.broadcast_to(emb[:, :, None], (B, emb.shape[1], T))
    xcat = jnp.concatenate([x, emb_rep], axis=1)
    h = jnp.einsum("oc,bct->bot", params["w1"], xcat,
                   precision=lax.Precision.HIGHEST) + params["b1"][None]
    h = jnp.where(h > 0, h, params["a1"][0] * h)
    m = jnp.mean(h, axis=(1, 2), keepdims=True)
    v = jnp.mean((h - m) ** 2, axis=(1, 2), keepdims=True)
    h = params["g1"][None] * (h - m) / jnp.sqrt(v + EPS) + params["be1"][None]
    hp = jnp.pad(h, ((0, 0), (0, 0), (1, 1)))
    wdw = params["wdw"]
    z = (wdw[None, :, 0:1] * hp[:, :, 0:T]
         + wdw[None, :, 1:2] * hp[:, :, 1:T + 1]
         + wdw[None, :, 2:3] * hp[:, :, 2:T + 2]) + params["bdw"][None]
    z = jnp.where(z > 0, z, params["a2"][0] * z)
    m2 = jnp.mean(z, axis=(1, 2), keepdims=True)
    v2 = jnp.mean((z - m2) ** 2, axis=(1, 2), keepdims=True)
    z = params["g2"][None] * (z - m2) / jnp.sqrt(v2 + EPS) + params["be2"][None]
    out = jnp.einsum("oc,bct->bot", params["w3"], z,
                     precision=lax.Precision.HIGHEST) + params["b3"][None]
    return x + out


def init_params(key, in_channels, emb_channels, out_channels):
    """Deterministic synthetic init matching the PyTorch parameter shapes."""
    ks = jax.random.split(key, 6)
    ccat = in_channels + emb_channels
    return {
        # conv1x1: Conv1d(Cin+Cemb, Cout, 1)
        "w1": 0.1 * jax.random.normal(ks[0], (out_channels, ccat), jnp.float32),
        "b1": 0.01 * jax.random.normal(ks[1], (out_channels, 1), jnp.float32),
        # PReLU1/2 single slope (torch default 0.25), kept as (1,) for SMEM
        "a1": jnp.full((1,), 0.25, jnp.float32),
        "a2": jnp.full((1,), 0.25, jnp.float32),
        # GlobalLayerNorm 1/2 (weight ones, bias zeros, shape (C, 1))
        "g1": jnp.ones((out_channels, 1), jnp.float32),
        "be1": jnp.zeros((out_channels, 1), jnp.float32),
        "g2": jnp.ones((out_channels, 1), jnp.float32),
        "be2": jnp.zeros((out_channels, 1), jnp.float32),
        # depthwise Conv1d(Cout, Cout, 3, groups=Cout) -> weight (Cout, 1, 3)
        "wdw": 0.1 * jax.random.normal(ks[2], (out_channels, 3), jnp.float32),
        "bdw": 0.01 * jax.random.normal(ks[3], (out_channels, 1), jnp.float32),
        # end_conv1x1: Conv1d(Cout, Cin, 1)
        "w3": 0.1 * jax.random.normal(ks[4], (in_channels, out_channels), jnp.float32),
        "b3": 0.01 * jax.random.normal(ks[5], (in_channels, 1), jnp.float32),
    }


if __name__ == "__main__":
    B, Cin, Cemb, Cout, T = 16, 32, 16, 64, 16

    key = jax.random.PRNGKey(0)
    kx, ke, kp = jax.random.split(key, 3)
    x = jax.random.normal(kx, (B, Cin, T), jnp.float32)
    emb = jax.random.normal(ke, (B, Cemb), jnp.float32)
    params = init_params(kp, Cin, Cemb, Cout)

    out = conv1d_emb_forward(x, emb, params)
    out = jax.block_until_ready(out)

    ref = reference_forward(x, emb, params)
    assert out.shape == (B, Cin, T)
    assert bool(jnp.all(jnp.isfinite(out)))
    # Heavy 1x1-conv matmuls run at default MXU precision (single bf16 pass)
    # while the reference runs at HIGHEST, so tolerate bf16-rounding-level error.
    max_err = float(jnp.max(jnp.abs(out - ref)))
    assert jnp.allclose(out, ref, atol=2e-2, rtol=2e-2), f"max abs err {max_err}"

    print("KERNEL_OK")
</pallas_src>

<mosaic_0001>
module attributes {stable_mosaic.version = 11 : i64} {
  func.func @conv1d_emb_kernel(%arg0: i32, %arg1: memref<32x256xf32, #tpu.memory_space<vmem>>, %arg2: memref<1x64x16xf32, #tpu.memory_space<vmem>>, %arg3: memref<16x256xf32, #tpu.memory_space<vmem>>, %arg4: memref<256x16xf32, #tpu.memory_space<vmem>>, %arg5: memref<2x256xf32, #tpu.memory_space<vmem>>, %arg6: memref<64x32xf32, #tpu.memory_space<vmem>>, %arg7: memref<64x1xf32, #tpu.memory_space<vmem>>, %arg8: memref<1xf32, #tpu.memory_space<smem>>, %arg9: memref<64x1xf32, #tpu.memory_space<vmem>>, %arg10: memref<64x1xf32, #tpu.memory_space<vmem>>, %arg11: memref<64x3xf32, #tpu.memory_space<vmem>>, %arg12: memref<64x1xf32, #tpu.memory_space<vmem>>, %arg13: memref<1xf32, #tpu.memory_space<smem>>, %arg14: memref<64x1xf32, #tpu.memory_space<vmem>>, %arg15: memref<64x1xf32, #tpu.memory_space<vmem>>, %arg16: memref<32x64xf32, #tpu.memory_space<vmem>>, %arg17: memref<32x1xf32, #tpu.memory_space<vmem>>, %arg18: memref<32x256xf32, #tpu.memory_space<vmem>>) attributes {dimension_semantics = [#tpu.dimension_semantics<parallel>], iteration_bounds = array<i64: 1>, scalar_prefetch = 0 : i64, scratch_operands = 0 : i64, tpu.core_type = #tpu.core_type<tc>, window_params = [{transform_indices = @transform_0, window_bounds = array<i64: 32, 256>}, {transform_indices = @transform_1, window_bounds = array<i64: 1, 64, 16>}, {pipeline_mode = #tpu.pipeline_mode<synchronous>, transform_indices = @transform_2, window_bounds = array<i64: 16, 256>}, {pipeline_mode = #tpu.pipeline_mode<synchronous>, transform_indices = @transform_3, window_bounds = array<i64: 256, 16>}, {pipeline_mode = #tpu.pipeline_mode<synchronous>, transform_indices = @transform_4, window_bounds = array<i64: 2, 256>}, {pipeline_mode = #tpu.pipeline_mode<synchronous>, transform_indices = @transform_5, window_bounds = array<i64: 64, 32>}, {pipeline_mode = #tpu.pipeline_mode<synchronous>, transform_indices = @transform_6, window_bounds = array<i64: 64, 1>}, {transform_indices = @transform_7, window_bounds = array<i64: 1>}, {pipeline_mode = #tpu.pipeline_mode<synchronous>, transform_indices = @transform_8, window_bounds = array<i64: 64, 1>}, {pipeline_mode = #tpu.pipeline_mode<synchronous>, transform_indices = @transform_9, window_bounds = array<i64: 64, 1>}, {pipeline_mode = #tpu.pipeline_mode<synchronous>, transform_indices = @transform_10, window_bounds = array<i64: 64, 3>}, {pipeline_mode = #tpu.pipeline_mode<synchronous>, transform_indices = @transform_11, window_bounds = array<i64: 64, 1>}, {transform_indices = @transform_12, window_bounds = array<i64: 1>}, {pipeline_mode = #tpu.pipeline_mode<synchronous>, transform_indices = @transform_13, window_bounds = array<i64: 64, 1>}, {pipeline_mode = #tpu.pipeline_mode<synchronous>, transform_indices = @transform_14, window_bounds = array<i64: 64, 1>}, {pipeline_mode = #tpu.pipeline_mode<synchronous>, transform_indices = @transform_15, window_bounds = array<i64: 32, 64>}, {pipeline_mode = #tpu.pipeline_mode<synchronous>, transform_indices = @transform_16, window_bounds = array<i64: 32, 1>}, {transform_indices = @transform_17, window_bounds = array<i64: 32, 256>}]} {
    %c0 = arith.constant 0 : index
    %c0_0 = arith.constant 0 : index
    %0 = vector.load %arg1[%c0, %c0_0] : memref<32x256xf32, #tpu.memory_space<vmem>>, vector<32x256xf32>
    %c0_1 = arith.constant 0 : index
    %c0_2 = arith.constant 0 : index
    %1 = vector.load %arg3[%c0_1, %c0_2] : memref<16x256xf32, #tpu.memory_space<vmem>>, vector<16x256xf32>
    %c0_3 = arith.constant 0 : index
    %c0_4 = arith.constant 0 : index
    %2 = vector.load %arg4[%c0_3, %c0_4] : memref<256x16xf32, #tpu.memory_space<vmem>>, vector<256x16xf32>
    %c0_5 = arith.constant 0 : index
    %c0_6 = arith.constant 0 : index
    %3 = vector.load %arg5[%c0_5, %c0_6] : memref<2x256xf32, #tpu.memory_space<vmem>>, vector<2x256xf32>
    %4 = vector.extract_strided_slice %3 {offsets = [0, 0], sizes = [1, 256], strides = [1, 1]} : vector<2x256xf32> to vector<1x256xf32>
    %5 = vector.extract_strided_slice %3 {offsets = [1, 0], sizes = [1, 256], strides = [1, 1]} : vector<2x256xf32> to vector<1x256xf32>
    %c0_7 = arith.constant 0 : index
    %c0_8 = arith.constant 0 : index
    %c0_9 = arith.constant 0 : index
    %6 = vector.load %arg2[%c0_7, %c0_8, %c0_9] : memref<1x64x16xf32, #tpu.memory_space<vmem>>, vector<1x64x16xf32>
    %7 = vector.shape_cast %6 : vector<1x64x16xf32> to vector<64x16xf32>
    %cst = arith.constant dense<0.000000e+00> : vector<64x256xf32>
    %8 = tpu.matmul %7, %1, %cst {dimension_numbers = #tpu.dot_dimension_numbers<[1], [0], [0], [1], [0, 0, 1, 1], [], []>, precision = #tpu.contract_precision<fp32>} : vector<64x16xf32>, vector<16x256xf32>, vector<64x256xf32> -> vector<64x256xf32>
    %c0_10 = arith.constant 0 : index
    %c0_11 = arith.constant 0 : index
    %9 = vector.load %arg6[%c0_10, %c0_11] : memref<64x32xf32, #tpu.memory_space<vmem>>, vector<64x32xf32>
    %cst_12 = arith.constant dense<0.000000e+00> : vector<64x256xf32>
    %10 = tpu.matmul %9, %0, %cst_12 {dimension_numbers = #tpu.dot_dimension_numbers<[1], [0], [0], [1], [0, 0, 1, 1], [], []>} : vector<64x32xf32>, vector<32x256xf32>, vector<64x256xf32> -> vector<64x256xf32>
    %11 = arith.addf %10, %8 : vector<64x256xf32>
    %c0_13 = arith.constant 0 : index
    %c0_14 = arith.constant 0 : index
    %12 = vector.load %arg7[%c0_13, %c0_14] : memref<64x1xf32, #tpu.memory_space<vmem>>, vector<64x1xf32>
    %13 = vector.broadcast %12 : vector<64x1xf32> to vector<64x256xf32>
    %14 = arith.addf %11, %13 : vector<64x256xf32>
    %c0_15 = arith.constant 0 : index
    %15 = memref.load %arg8[%c0_15] : memref<1xf32, #tpu.memory_space<smem>>
    %cst_16 = arith.constant 0.000000e+00 : f32
    %16 = vector.broadcast %cst_16 : f32 to vector<64x256xf32>
    %17 = arith.cmpf ogt, %14, %16 : vector<64x256xf32>
    %18 = vector.broadcast %15 : f32 to vector<64x256xf32>
    %19 = arith.mulf %18, %14 : vector<64x256xf32>
    %20 = arith.select %17, %14, %19 : vector<64x256xi1>, vector<64x256xf32>
    %c0_17 = arith.constant 0 : index
    %c0_18 = arith.constant 0 : index
    %21 = vector.load %arg9[%c0_17, %c0_18] : memref<64x1xf32, #tpu.memory_space<vmem>>, vector<64x1xf32>
    %c0_19 = arith.constant 0 : index
    %c0_20 = arith.constant 0 : index
    %22 = vector.load %arg10[%c0_19, %c0_20] : memref<64x1xf32, #tpu.memory_space<vmem>>, vector<64x1xf32>
    %cst_21 = arith.constant dense<0.000000e+00> : vector<256xf32>
    %23 = vector.multi_reduction <add>, %20, %cst_21 [0] : vector<64x256xf32> to vector<256xf32>
    %24 = vector.shape_cast %23 : vector<256xf32> to vector<1x256xf32>
    %25 = arith.mulf %20, %20 : vector<64x256xf32>
    %cst_22 = arith.constant dense<0.000000e+00> : vector<256xf32>
    %26 = vector.multi_reduction <add>, %25, %cst_22 [0] : vector<64x256xf32> to vector<256xf32>
    %27 = vector.shape_cast %26 : vector<256xf32> to vector<1x256xf32>
    %28 = tpu.concatenate %24, %27 in 0 : vector<1x256xf32>, vector<1x256xf32> -> vector<2x256xf32>
    %cst_23 = arith.constant dense<0.000000e+00> : vector<2x16xf32>
    %29 = tpu.matmul %28, %2, %cst_23 {dimension_numbers = #tpu.dot_dimension_numbers<[1], [0], [0], [1], [0, 0, 1, 1], [], []>, precision = #tpu.contract_precision<fp32>} : vector<2x256xf32>, vector<256x16xf32>, vector<2x16xf32> -> vector<2x16xf32>
    %30 = vector.extract_strided_slice %29 {offsets = [0, 0], sizes = [1, 16], strides = [1, 1]} : vector<2x16xf32> to vector<1x16xf32>
    %cst_24 = arith.constant 9.765625E-4 : f32
    %31 = vector.broadcast %cst_24 : f32 to vector<1x16xf32>
    %32 = arith.mulf %30, %31 : vector<1x16xf32>
    %33 = vector.extract_strided_slice %29 {offsets = [1, 0], sizes = [1, 16], strides = [1, 1]} : vector<2x16xf32> to vector<1x16xf32>
    %cst_25 = arith.constant 9.765625E-4 : f32
    %34 = vector.broadcast %cst_25 : f32 to vector<1x16xf32>
    %35 = arith.mulf %33, %34 : vector<1x16xf32>
    %36 = arith.mulf %32, %32 : vector<1x16xf32>
    %37 = arith.subf %35, %36 : vector<1x16xf32>
    %cst_26 = arith.constant 0.000000e+00 : f32
    %38 = vector.broadcast %cst_26 : f32 to vector<1x16xf32>
    %39 = arith.maximumf %37, %38 : vector<1x16xf32>
    %cst_27 = arith.constant 9.99999974E-6 : f32
    %40 = vector.broadcast %cst_27 : f32 to vector<1x16xf32>
    %41 = arith.addf %39, %40 : vector<1x16xf32>
    %42 = math.rsqrt %41 : vector<1x16xf32>
    %43 = tpu.concatenate %32, %42 in 0 : vector<1x16xf32>, vector<1x16xf32> -> vector<2x16xf32>
    %cst_28 = arith.constant dense<0.000000e+00> : vector<2x256xf32>
    %44 = tpu.matmul %43, %1, %cst_28 {dimension_numbers = #tpu.dot_dimension_numbers<[1], [0], [0], [1], [0, 0, 1, 1], [], []>, precision = #tpu.contract_precision<fp32>} : vector<2x16xf32>, vector<16x256xf32>, vector<2x256xf32> -> vector<2x256xf32>
    %45 = vector.extract_strided_slice %44 {offsets = [0, 0], sizes = [1, 256], strides = [1, 1]} : vector<2x256xf32> to vector<1x256xf32>
    %46 = vector.broadcast %45 : vector<1x256xf32> to vector<64x256xf32>
    %47 = arith.subf %20, %46 : vector<64x256xf32>
    %48 = vector.extract_strided_slice %44 {offsets = [1, 0], sizes = [1, 256], strides = [1, 1]} : vector<2x256xf32> to vector<1x256xf32>
    %49 = vector.broadcast %21 : vector<64x1xf32> to vector<64x256xf32>
    %50 = vector.broadcast %48 : vector<1x256xf32> to vector<64x256xf32>
    %51 = arith.mulf %49, %50 : vector<64x256xf32>
    %52 = arith.mulf %47, %51 : vector<64x256xf32>
    %53 = vector.broadcast %22 : vector<64x1xf32> to vector<64x256xf32>
    %54 = arith.addf %52, %53 : vector<64x256xf32>
    %c1_i32 = arith.constant 1 : i32
    %55 = tpu.dynamic_rotate %54 by %c1_i32 dim 1 : vector<64x256xf32>, i32 -> vector<64x256xf32>
    %56 = vector.broadcast %4 : vector<1x256xf32> to vector<64x256xf32>
    %57 = arith.mulf %55, %56 : vector<64x256xf32>
    %c255_i32 = arith.constant 255 : i32
    %58 = tpu.dynamic_rotate %54 by %c255_i32 dim 1 : vector<64x256xf32>, i32 -> vector<64x256xf32>
    %59 = vector.broadcast %5 : vector<1x256xf32> to vector<64x256xf32>
    %60 = arith.mulf %58, %59 : vector<64x256xf32>
    %c0_29 = arith.constant 0 : index
    %c0_30 = arith.constant 0 : index
    %61 = vector.load %arg11[%c0_29, %c0_30] : memref<64x3xf32, #tpu.memory_space<vmem>>, vector<64x3xf32>
    %62 = vector.extract_strided_slice %61 {offsets = [0, 0], sizes = [64, 1], strides = [1, 1]} : vector<64x3xf32> to vector<64x1xf32>
    %63 = vector.broadcast %62 : vector<64x1xf32> to vector<64x256xf32>
    %64 = arith.mulf %63, %57 : vector<64x256xf32>
    %65 = vector.extract_strided_slice %61 {offsets = [0, 1], sizes = [64, 1], strides = [1, 1]} : vector<64x3xf32> to vector<64x1xf32>
    %66 = vector.broadcast %65 : vector<64x1xf32> to vector<64x256xf32>
    %67 = arith.mulf %66, %54 : vector<64x256xf32>
    %68 = arith.addf %64, %67 : vector<64x256xf32>
    %69 = vector.extract_strided_slice %61 {offsets = [0, 2], sizes = [64, 1], strides = [1, 1]} : vector<64x3xf32> to vector<64x1xf32>
    %70 = vector.broadcast %69 : vector<64x1xf32> to vector<64x256xf32>
    %71 = arith.mulf %70, %60 : vector<64x256xf32>
    %72 = arith.addf %68, %71 : vector<64x256xf32>
    %c0_31 = arith.constant 0 : index
    %c0_32 = arith.constant 0 : index
    %73 = vector.load %arg12[%c0_31, %c0_32] : memref<64x1xf32, #tpu.memory_space<vmem>>, vector<64x1xf32>
    %74 = vector.broadcast %73 : vector<64x1xf32> to vector<64x256xf32>
    %75 = arith.addf %72, %74 : vector<64x256xf32>
    %c0_33 = arith.constant 0 : index
    %76 = memref.load %arg13[%c0_33] : memref<1xf32, #tpu.memory_space<smem>>
    %cst_34 = arith.constant 0.000000e+00 : f32
    %77 = vector.broadcast %cst_34 : f32 to vector<64x256xf32>
    %78 = arith.cmpf ogt, %75, %77 : vector<64x256xf32>
    %79 = vector.broadcast %76 : f32 to vector<64x256xf32>
    %80 = arith.mulf %79, %75 : vector<64x256xf32>
    %81 = arith.select %78, %75, %80 : vector<64x256xi1>, vector<64x256xf32>
    %c0_35 = arith.constant 0 : index
    %c0_36 = arith.constant 0 : index
    %82 = vector.load %arg14[%c0_35, %c0_36] : memref<64x1xf32, #tpu.memory_space<vmem>>, vector<64x1xf32>
    %c0_37 = arith.constant 0 : index
    %c0_38 = arith.constant 0 : index
    %83 = vector.load %arg15[%c0_37, %c0_38] : memref<64x1xf32, #tpu.memory_space<vmem>>, vector<64x1xf32>
    %cst_39 = arith.constant dense<0.000000e+00> : vector<256xf32>
    %84 = vector.multi_reduction <add>, %81, %cst_39 [0] : vector<64x256xf32> to vector<256xf32>
    %85 = vector.shape_cast %84 : vector<256xf32> to vector<1x256xf32>
    %86 = arith.mulf %81, %81 : vector<64x256xf32>
    %cst_40 = arith.constant dense<0.000000e+00> : vector<256xf32>
    %87 = vector.multi_reduction <add>, %86, %cst_40 [0] : vector<64x256xf32> to vector<256xf32>
    %88 = vector.shape_cast %87 : vector<256xf32> to vector<1x256xf32>
    %89 = tpu.concatenate %85, %88 in 0 : vector<1x256xf32>, vector<1x256xf32> -> vector<2x256xf32>
    %cst_41 = arith.constant dense<0.000000e+00> : vector<2x16xf32>
    %90 = tpu.matmul %89, %2, %cst_41 {dimension_numbers = #tpu.dot_dimension_numbers<[1], [0], [0], [1], [0, 0, 1, 1], [], []>, precision = #tpu.contract_precision<fp32>} : vector<2x256xf32>, vector<256x16xf32>, vector<2x16xf32> -> vector<2x16xf32>
    %91 = vector.extract_strided_slice %90 {offsets = [0, 0], sizes = [1, 16], strides = [1, 1]} : vector<2x16xf32> to vector<1x16xf32>
    %cst_42 = arith.constant 9.765625E-4 : f32
    %92 = vector.broadcast %cst_42 : f32 to vector<1x16xf32>
    %93 = arith.mulf %91, %92 : vector<1x16xf32>
    %94 = vector.extract_strided_slice %90 {offsets = [1, 0], sizes = [1, 16], strides = [1, 1]} : vector<2x16xf32> to vector<1x16xf32>
    %cst_43 = arith.constant 9.765625E-4 : f32
    %95 = vector.broadcast %cst_43 : f32 to vector<1x16xf32>
    %96 = arith.mulf %94, %95 : vector<1x16xf32>
    %97 = arith.mulf %93, %93 : vector<1x16xf32>
    %98 = arith.subf %96, %97 : vector<1x16xf32>
    %cst_44 = arith.constant 0.000000e+00 : f32
    %99 = vector.broadcast %cst_44 : f32 to vector<1x16xf32>
    %100 = arith.maximumf %98, %99 : vector<1x16xf32>
    %cst_45 = arith.constant 9.99999974E-6 : f32
    %101 = vector.broadcast %cst_45 : f32 to vector<1x16xf32>
    %102 = arith.addf %100, %101 : vector<1x16xf32>
    %103 = math.rsqrt %102 : vector<1x16xf32>
    %104 = tpu.concatenate %93, %103 in 0 : vector<1x16xf32>, vector<1x16xf32> -> vector<2x16xf32>
    %cst_46 = arith.constant dense<0.000000e+00> : vector<2x256xf32>
    %105 = tpu.matmul %104, %1, %cst_46 {dimension_numbers = #tpu.dot_dimension_numbers<[1], [0], [0], [1], [0, 0, 1, 1], [], []>, precision = #tpu.contract_precision<fp32>} : vector<2x16xf32>, vector<16x256xf32>, vector<2x256xf32> -> vector<2x256xf32>
    %106 = vector.extract_strided_slice %105 {offsets = [0, 0], sizes = [1, 256], strides = [1, 1]} : vector<2x256xf32> to vector<1x256xf32>
    %107 = vector.broadcast %106 : vector<1x256xf32> to vector<64x256xf32>
    %108 = arith.subf %81, %107 : vector<64x256xf32>
    %109 = vector.extract_strided_slice %105 {offsets = [1, 0], sizes = [1, 256], strides = [1, 1]} : vector<2x256xf32> to vector<1x256xf32>
    %110 = vector.broadcast %82 : vector<64x1xf32> to vector<64x256xf32>
    %111 = vector.broadcast %109 : vector<1x256xf32> to vector<64x256xf32>
    %112 = arith.mulf %110, %111 : vector<64x256xf32>
    %113 = arith.mulf %108, %112 : vector<64x256xf32>
    %114 = vector.broadcast %83 : vector<64x1xf32> to vector<64x256xf32>
    %115 = arith.addf %113, %114 : vector<64x256xf32>
    %c0_47 = arith.constant 0 : index
    %c0_48 = arith.constant 0 : index
    %116 = vector.load %arg16[%c0_47, %c0_48] : memref<32x64xf32, #tpu.memory_space<vmem>>, vector<32x64xf32>
    %cst_49 = arith.constant dense<0.000000e+00> : vector<32x256xf32>
    %117 = tpu.matmul %116, %115, %cst_49 {dimension_numbers = #tpu.dot_dimension_numbers<[1], [0], [0], [1], [0, 0, 1, 1], [], []>} : vector<32x64xf32>, vector<64x256xf32>, vector<32x256xf32> -> vector<32x256xf32>
    %c0_50 = arith.constant 0 : index
    %c0_51 = arith.constant 0 : index
    %118 = vector.load %arg17[%c0_50, %c0_51] : memref<32x1xf32, #tpu.memory_space<vmem>>, vector<32x1xf32>
    %119 = vector.broadcast %118 : vector<32x1xf32> to vector<32x256xf32>
    %120 = arith.addf %117, %119 : vector<32x256xf32>
    %121 = arith.addf %0, %120 : vector<32x256xf32>
    %c0_52 = arith.constant 0 : index
    %c0_53 = arith.constant 0 : index
    %122 = vector.load %arg18[%c0_52, %c0_53] : memref<32x256xf32, #tpu.memory_space<vmem>>, vector<32x256xf32>
    tpu.vector_store %arg18[%c0_52, %c0_53], %121 {strides = array<i32>} : memref<32x256xf32, #tpu.memory_space<vmem>>, vector<32x256xf32>,
    return
  }
  func.func @transform_0(%arg0: i32) -> (i32, i32) {
    %c0_i32 = arith.constant 0 : i32
    %c0_i32_0 = arith.constant 0 : i32
    return %c0_i32, %arg0 : i32, i32
  }
  func.func @transform_1(%arg0: i32) -> (i32, i32, i32) {
    %c0_i32 = arith.constant 0 : i32
    %c0_i32_0 = arith.constant 0 : i32
    %c0_i32_1 = arith.constant 0 : i32
    return %arg0, %c0_i32, %c0_i32_0 : i32, i32, i32
  }
  func.func @transform_2(%arg0: i32) -> (i32, i32) {
    %c0_i32 = arith.constant 0 : i32
    %c0_i32_0 = arith.constant 0 : i32
    %c0_i32_1 = arith.constant 0 : i32
    return %c0_i32, %c0_i32_0 : i32, i32
  }
  func.func @transform_3(%arg0: i32) -> (i32, i32) {
    %c0_i32 = arith.constant 0 : i32
    %c0_i32_0 = arith.constant 0 : i32
    %c0_i32_1 = arith.constant 0 : i32
    return %c0_i32, %c0_i32_0 : i32, i32
  }
  func.func @transform_4(%arg0: i32) -> (i32, i32) {
    %c0_i32 = arith.constant 0 : i32
    %c0_i32_0 = arith.constant 0 : i32
    %c0_i32_1 = arith.constant 0 : i32
    return %c0_i32, %c0_i32_0 : i32, i32
  }
  func.func @transform_5(%arg0: i32) -> (i32, i32) {
    %c0_i32 = arith.constant 0 : i32
    %c0_i32_0 = arith.constant 0 : i32
    %c0_i32_1 = arith.constant 0 : i32
    return %c0_i32, %c0_i32_0 : i32, i32
  }
  func.func @transform_6(%arg0: i32) -> (i32, i32) {
    %c0_i32 = arith.constant 0 : i32
    %c0_i32_0 = arith.constant 0 : i32
    %c0_i32_1 = arith.constant 0 : i32
    return %c0_i32, %c0_i32_0 : i32, i32
  }
  func.func @transform_7(%arg0: i32) -> i32 {
    %c0_i32 = arith.constant 0 : i32
    %c0_i32_0 = arith.constant 0 : i32
    return %c0_i32 : i32
  }
  func.func @transform_8(%arg0: i32) -> (i32, i32) {
    %c0_i32 = arith.constant 0 : i32
    %c0_i32_0 = arith.constant 0 : i32
    %c0_i32_1 = arith.constant 0 : i32
    return %c0_i32, %c0_i32_0 : i32, i32
  }
  func.func @transform_9(%arg0: i32) -> (i32, i32) {
    %c0_i32 = arith.constant 0 : i32
    %c0_i32_0 = arith.constant 0 : i32
    %c0_i32_1 = arith.constant 0 : i32
    return %c0_i32, %c0_i32_0 : i32, i32
  }
  func.func @transform_10(%arg0: i32) -> (i32, i32) {
    %c0_i32 = arith.constant 0 : i32
    %c0_i32_0 = arith.constant 0 : i32
    %c0_i32_1 = arith.constant 0 : i32
    return %c0_i32, %c0_i32_0 : i32, i32
  }
  func.func @transform_11(%arg0: i32) -> (i32, i32) {
    %c0_i32 = arith.constant 0 : i32
    %c0_i32_0 = arith.constant 0 : i32
    %c0_i32_1 = arith.constant 0 : i32
    return %c0_i32, %c0_i32_0 : i32, i32
  }
  func.func @transform_12(%arg0: i32) -> i32 {
    %c0_i32 = arith.constant 0 : i32
    %c0_i32_0 = arith.constant 0 : i32
    return %c0_i32 : i32
  }
  func.func @transform_13(%arg0: i32) -> (i32, i32) {
    %c0_i32 = arith.constant 0 : i32
    %c0_i32_0 = arith.constant 0 : i32
    %c0_i32_1 = arith.constant 0 : i32
    return %c0_i32, %c0_i32_0 : i32, i32
  }
  func.func @transform_14(%arg0: i32) -> (i32, i32) {
    %c0_i32 = arith.constant 0 : i32
    %c0_i32_0 = arith.constant 0 : i32
    %c0_i32_1 = arith.constant 0 : i32
    return %c0_i32, %c0_i32_0 : i32, i32
  }
  func.func @transform_15(%arg0: i32) -> (i32, i32) {
    %c0_i32 = arith.constant 0 : i32
    %c0_i32_0 = arith.constant 0 : i32
    %c0_i32_1 = arith.constant 0 : i32
    return %c0_i32, %c0_i32_0 : i32, i32
  }
  func.func @transform_16(%arg0: i32) -> (i32, i32) {
    %c0_i32 = arith.constant 0 : i32
    %c0_i32_0 = arith.constant 0 : i32
    %c0_i32_1 = arith.constant 0 : i32
    return %c0_i32, %c0_i32_0 : i32, i32
  }
  func.func @transform_17(%arg0: i32) -> (i32, i32) {
    %c0_i32 = arith.constant 0 : i32
    %c0_i32_0 = arith.constant 0 : i32
    return %c0_i32, %arg0 : i32, i32
  }
}

</mosaic_0001>

<bundles_post_ra>
// kernel: tpu_custom_call.1
= control target key start
LH: loop header
LB: loop body
LE: loop exit
PB: predicated region body
PF: predicated region fallthrough
CT: control target
= control target key end

     0   :  { %s8694_s0 = inlined_call_operand.vmem [shape: f32[32,256], index: 0, kind: input, shape index: {}]   ;;  %s8695_s1 = inlined_call_operand.vmem [shape: f32[1,64,16], index: 1, kind: input, shape index: {}]   ;;  %s8696_s2 = inlined_call_operand.vmem [shape: f32[16,256], index: 2, kind: input, shape index: {}]   ;;  %s8697_s3 = inlined_call_operand.vmem [shape: f32[256,16], index: 3, kind: input, shape index: {}]   ;;  %s8698_s4 = inlined_call_operand.vmem [shape: f32[2,256], index: 4, kind: input, shape index: {}]   ;;  %s8699_s5 = inlined_call_operand.vmem [shape: f32[64,32], index: 5, kind: input, shape index: {}]   ;;  %s8700_s6 = inlined_call_operand.vmem [shape: f32[64,1], index: 6, kind: input, shape index: {}]   ;;  %s8701_s7 = inlined_call_operand.<no memory space> [shape: f32[1], index: 7, kind: input, shape index: {}]   ;;  %s8702_s8 = inlined_call_operand.vmem [shape: f32[64,1], index: 8, kind: input, shape index: {}]   ;;  %s8703_s9 = inlined_call_operand.vmem [shape: f32[64,1], index: 9, kind: input, shape index: {}]   ;;  %s8704_s10 = inlined_call_operand.vmem [shape: f32[64,3], index: 10, kind: input, shape index: {}]   ;;  %s8705_s11 = inlined_call_operand.vmem [shape: f32[64,1], index: 11, kind: input, shape index: {}]   ;;  %s8706_s12 = inlined_call_operand.<no memory space> [shape: f32[1], index: 12, kind: input, shape index: {}]   ;;  %s8707_s13 = inlined_call_operand.vmem [shape: f32[64,1], index: 13, kind: input, shape index: {}]   ;;  %s8708_s14 = inlined_call_operand.vmem [shape: f32[64,1], index: 14, kind: input, shape index: {}]   ;;  %s8709_s15 = inlined_call_operand.vmem [shape: f32[32,64], index: 15, kind: input, shape index: {}]   ;;  %s8710_s16 = inlined_call_operand.vmem [shape: f32[32,1], index: 16, kind: input, shape index: {}]   ;;  %s8711_s17 = inlined_call_operand.hbm [shape: f32[32,256], index: 17, kind: output, shape index: {}]  }
   0x1   :  { %8936 = sst [smem:[#allocation92_spill]] %s8694_s0 }
   0x2   :  { %8937 = sst [smem:[#allocation93_spill]] %s8695_s1 }
   0x3   :  { %v68_v0 = vld [vmem:[%s8696_s2 + $0x8] sm:$0xff]  ;;  %v70_v1 = vld [vmem:[%s8696_s2 + $0x18] sm:$0xff]  ;;  %v67_v2 = vld [vmem:[%s8696_s2] sm:$0xff]  ;;  %vm112_vm0 = vcmask 130048   ;;  %v8716_v7 = vmov 0.0   ;;  %s8938_s1 = sld [smem:[#allocation93_spill]] }
   0x4   :  { %v137_v3 = vand.u32 4294901760, %v68_v0  ;;  %v141_v4 = vand.u32 4294901760, %v70_v1  ;;  %v69_v5 = vld [vmem:[%s8696_s2 + $0x10] sm:$0xff]  ;;  %v139_v6 = vand.u32 4294901760, %v67_v2  ;;  %205 = vmatprep.mubr.f32.mxu0 %v8716_v7 }
   0x5   :  { %v143_v10 = vand.u32 4294901760, %v69_v5 }
   0x6   :  { %v6318_v14 = vpack.c.bf16 %v141_v4, %v137_v3  ;;  %v295_v16 = vsub.f32 %v68_v0, %v137_v3  ;;  %v307_v17 = vsub.f32 %v70_v1, %v141_v4  ;;  %v6324_v19 = vsub.f32 %v67_v2, %v139_v6 }
   0x7   :  { %v6322_v18 = vpack.c.bf16 %v143_v10, %v139_v6  ;;  %v6326_v20 = vsub.f32 %v69_v5, %v143_v10 }
   0x8   :  { %8939 = vst [vmem:[#allocation7_spill] sm:$0xff] %v6318_v14 }
   0x9   :  { %v104_v8 = vld [vmem:[%s8938_s1] sm:$0xff]  ;;  %v105_v9 = vld [vmem:[%s8938_s1 + $0x8] sm:$0xff]  ;;  %v106_v13 = vld [vmem:[%s8938_s1 + $0x10] sm:$0xff]  ;;  %8940 = vst [vmem:[#allocation8_spill] sm:$0xff] %v6322_v18 }
   0xa   :  { %v114_v11 = vsel %vm112_vm0, %v104_v8, 0  ;;  %v117_v12 = vsel %vm112_vm0, %v105_v9, 0  ;;  %v107_v22 = vld [vmem:[%s8938_s1 + $0x18] sm:$0xff] }
   0xb   :  { %v6320_v15 = vand.u32 4294901760, %v114_v11  ;;  %v6328_v21 = vand.u32 4294901760, %v117_v12 }
   0xc   :  { %24 = vsyncpa [#allocation5], 0  ;;  %5526 = vmatprep.subr.bf16.mxu0 %v6318_v14  ;;  %v296_v24 = vand.u32 4294901760, %v295_v16  ;;  %v308_v25 = vand.u32 4294901760, %v307_v17  ;;  %v120_v26 = vsel %vm112_vm0, %v106_v13, 0  ;;  %v302_v27 = vand.u32 4294901760, %v6324_v19 }
   0xd   :  { %v6335_v23 = vsub.f32 %v114_v11, %v6320_v15  ;;  %5528 = vmatpush1.bf16.msra.mxu0 %v6322_v18  ;;  %v314_v28 = vand.u32 4294901760, %v6326_v20  ;;  %v6342_v29 = vsub.f32 %v117_v12, %v6328_v21  ;;  %v6344_v30 = vand.u32 4294901760, %v120_v26  ;;  %v108_v39 = vld [vmem:[%s8938_s1 + $0x20] sm:$0xff]  ;;  %v109_v48 = vld [vmem:[%s8938_s1 + $0x28] sm:$0xff]  ;;  %v110_v49 = vld [vmem:[%s8938_s1 + $0x30] sm:$0xff]  ;;  %s8947_s26 = sld [smem:[#allocation92_spill]] }
   0xe   :  { %v297_v32 = vsub.f32 %v295_v16, %v296_v24  ;;  %v309_v33 = vsub.f32 %v307_v17, %v308_v25  ;;  %v123_v34 = vsel %vm112_vm0, %v107_v22, 0  ;;  %v303_v35 = vsub.f32 %v6324_v19, %v302_v27  ;;  %v111_v61 = vld [vmem:[%s8938_s1 + $0x38] sm:$0xff]  ;;  %s6199_s1 = smov 1   ;;  %s6200_s20 = smov 127  }
   0xf   :  { %v208_v31 = vand.u32 4294901760, %v6335_v23  ;;  %v315_v36 = vsub.f32 %v6326_v20, %v314_v28  ;;  %v219_v37 = vand.u32 4294901760, %v6342_v29  ;;  %v6352_v38 = vsub.f32 %v120_v26, %v6344_v30 }
  0x10   :  { %v298_v41 = vand.u32 4294901760, %v297_v32  ;;  %v310_v42 = vand.u32 4294901760, %v309_v33  ;;  %v6360_v43 = vand.u32 4294901760, %v123_v34  ;;  %v304_v44 = vand.u32 4294901760, %v303_v35 }
  0x11   :  { %v209_v40 = vsub.f32 %v6335_v23, %v208_v31  ;;  %v316_v45 = vand.u32 4294901760, %v315_v36  ;;  %v220_v46 = vsub.f32 %v6342_v29, %v219_v37  ;;  %v230_v47 = vand.u32 4294901760, %v6352_v38  ;;  %v1117_v36 = vld [vmem:[%s8700_s6] sm:$0xff] }
  0x12   :  { %v6372_v51 = vpack.c.bf16 %v310_v42, %v298_v41  ;;  %v6375_v52 = vsub.f32 %v123_v34, %v6360_v43  ;;  %v126_v53 = vsel %vm112_vm0, %v108_v39, 0  ;;  %v129_v59 = vsel %vm112_vm0, %v109_v48, 0  ;;  %v1120_v39 = vld [vmem:[%s8700_s6 + $0x18] sm:$0xff]  ;;  %v1122_v41 = vld [vmem:[%s8700_s6 + $0x28] sm:$0xff] }
  0x13   :  { %v210_v50 = vand.u32 4294901760, %v209_v40  ;;  %v6378_v54 = vpack.c.bf16 %v316_v45, %v304_v44  ;;  %v231_v55 = vsub.f32 %v6352_v38, %v230_v47  ;;  %v6383_v56 = vand.u32 4294901760, %v126_v53  ;;  %v1118_v40 = vld [vmem:[%s8700_s6 + $0x8] sm:$0xff]  ;;  %v1241_v44 = vld [vmem:[%s8703_s9 + $0x10] sm:$0xff] }
  0x14   :  { %8941 = vst [vmem:[#allocation9_spill] sm:$0xff] %v6372_v51  ;;  %5530 = vmatprep.subr.bf16.mxu0 %v6372_v51  ;;  %v221_v57 = vand.u32 4294901760, %v220_v46  ;;  %v241_v58 = vand.u32 4294901760, %v6375_v52  ;;  %v132_v60 = vsel %vm112_vm0, %v110_v49, 0  ;;  %v6397_v63 = vand.u32 4294901760, %v129_v59  ;;  %v1240_v42 = vld [vmem:[%s8703_s9 + $0x8] sm:$0xff] }
  0x15   :  { %8942 = vst [vmem:[#allocation10_spill] sm:$0xff] %v6378_v54  ;;  %211 = vmatmul.mubr.f32.vlgmr.msra.gmra.mrb[0].mxu0 %v210_v50  ;;  %v6395_v62 = vsub.f32 %v126_v53, %v6383_v56  ;;  %v6399_v0 = vpack.c.bf16 %v307_v17, %v295_v16  ;;  %v232_v1 = vand.u32 4294901760, %v231_v55  ;;  %v6401_v2 = vand.u32 4294901760, %v132_v60  ;;  %v60_v45 = vld [vmem:[%s8947_s26 + $0x8] sm:$0xff]  ;;  %v62_v46 = vld [vmem:[%s8947_s26 + $0x18] sm:$0xff]  ;;  %v1243_v49 = vld [vmem:[%s8703_s9 + $0x20] sm:$0xff] }
  0x16   :  { %5532 = vmatpush1.bf16.msra.mxu0 %v6378_v54  ;;  %216 = vmatprep.mubr.f32.mxu0 %v8716_v7  ;;  %v135_v3 = vsel %vm112_vm0, %v111_v61, 0  ;;  %v6404_v4 = vpack.c.bf16 %v308_v25, %v296_v24  ;;  %v242_v5 = vsub.f32 %v6375_v52, %v241_v58  ;;  %v6411_v8 = vsub.f32 %v129_v59, %v6397_v63  ;;  %v1244_v50 = vld [vmem:[%s8703_s9 + $0x28] sm:$0xff]  ;;  %v59_v55 = vld [vmem:[%s8947_s26] sm:$0xff]  ;;  %v66_v59 = vld [vmem:[%s8947_s26 + $0x38] sm:$0xff] }
  0x17   :  { %8943 = vst [vmem:[#allocation11_spill] sm:$0xff] %v6399_v0  ;;  %v252_v6 = vand.u32 4294901760, %v6395_v62  ;;  %5534 = vmatprep.subr.bf16.mxu0 %v6399_v0  ;;  %v6414_v9 = vpack.c.bf16 %v314_v28, %v302_v27  ;;  %v6417_v10 = vand.u32 4294901760, %v135_v3  ;;  %v6424_v16 = vsub.f32 %v132_v60, %v6401_v2  ;;  %v3014_v53 = vld [vmem:[%s8704_s10 + $0x8] sm:$0xff] }
  0x18   :  { %8944 = vst [vmem:[#allocation12_spill] sm:$0xff] %v6404_v4  ;;  %v243_v11 = vand.u32 4294901760, %v242_v5  ;;  %v263_v13 = vand.u32 4294901760, %v6411_v8  ;;  %v6448_v35 = vpack.c.bf16 %v6326_v20, %v6324_v19  ;;  %v1119_v19 = vld [vmem:[%s8700_s6 + $0x10] sm:$0xff]  ;;  %v8714_v20 = vmov 0   ;;  %v978_v5 = vld [vmem:[%s8699_s5 + $0x38] sm:$0xff] }
  0x19   :  { %222 = vmatmul.mubr.f32.gmra.mrb[2].mxu0 %v221_v57  ;;  %8945 = vst [vmem:[#allocation13_spill] sm:$0xff] %v6414_v9  ;;  %v253_v12 = vsub.f32 %v6395_v62, %v252_v6  ;;  %v274_v24 = vand.u32 4294901760, %v6424_v16  ;;  %v6432_v25 = vsub.f32 %v135_v3, %v6417_v10  ;;  %6139 = vset.pattern.permute.xlu1 %v8714_v20  ;;  %v61_v57 = vld [vmem:[%s8947_s26 + $0x10] sm:$0xff]  ;;  %vm979_vm1 = vcmask 261120  }
  0x1a   :  { %227 = vmatprep.mubr.f32.mxu0 %v8716_v7  ;;  %v264_v22 = vsub.f32 %v6411_v8, %v263_v13  ;;  %8946 = vst [vmem:[#allocation14_spill] sm:$0xff] %v6448_v35  ;;  %1137 = vperm.xlu1 %6139, %v1119_v19   ;;  %v5549_v48 = vpack.c.bf16 %v62_v46, %v60_v45  ;;  %v6780_v46 = vld [vmem:[%s8697_s3 + $0xb0] sm:$0xff] }
  0x1b   :  { %v254_v17 = vand.u32 4294901760, %v253_v12  ;;  %v275_v27 = vsub.f32 %v6424_v16, %v274_v24  ;;  %v285_v28 = vand.u32 4294901760, %v6432_v25  ;;  %6138 = vset.pattern.permute.xlu0 %v8714_v20  ;;  %v5551_v60 = vpack.c.bf16 %v61_v57, %v59_v55  ;;  %v6676_v12 = vld [vmem:[%s8697_s3] sm:$0xff]  ;;  %v6873_v20 = vld [vmem:[%s8697_s3 + $0x50] sm:$0xff] }
  0x1c   :  { %v265_v26 = vand.u32 4294901760, %v264_v22  ;;  %1127 = vperm.xlu0 %6138, %v1117_v36  }
  0x1d   :  { %233 = vmatmul.mubr.f32.gmra.mrb[4].mxu0 %v232_v1  ;;  %v276_v32 = vand.u32 4294901760, %v275_v27  ;;  %v286_v33 = vsub.f32 %v6432_v25, %v285_v28  ;;  %v65_v1 = vld [vmem:[%s8947_s26 + $0x30] sm:$0xff] }
  0x1e   :  { %238 = vmatprep.mubr.f32.mxu0 %v8716_v7  ;;  %1142 = vperm.xlu1 %6139, %v1120_v39  }
  0x1f   :  { %v287_v34 = vand.u32 4294901760, %v286_v33  ;;  %v6718_v33 = vld [vmem:[%s8697_s3 + $0x18] sm:$0xff] }
  0x20   :  { %1132 = vperm.xlu0 %6138, %v1118_v40   ;;  %v8730_v19 = vand.u32 4294901760, %v6718_v33  ;;  %v6740_v40 = vld [vmem:[%s8697_s3 + $0xa0] sm:$0xff]  ;;  %v8977_v51 = vand.u32 4294901760, %v6718_v33 }
  0x21   :  { %244 = vmatmul.mubr.f32.gmra.mrb[6].mxu0 %v243_v11 }
  0x22   :  { %249 = vmatprep.mubr.f32.mxu0 %v8716_v7  ;;  %1152 = vperm.xlu1 %6139, %v1122_v41   ;;  %v6745_v41 = vld [vmem:[%s8697_s3 + $0xa8] sm:$0xff] }
  0x25   :  { %255 = vmatmul.mubr.f32.gmra.mrb[8].mxu0 %v254_v17 }
  0x26   :  { %260 = vmatprep.mubr.f32.mxu0 %v8716_v7 }
  0x29   :  { %266 = vmatmul.mubr.f32.gmra.mrb[10].mxu0 %v265_v26  ;;  %v6705_v26 = vld [vmem:[%s8697_s3 + $0x98] sm:$0xff] }
  0x2a   :  { %271 = vmatprep.mubr.f32.mxu0 %v8716_v7 }
  0x2d   :  { %277 = vmatmul.mubr.f32.gmra.mrb[12].mxu0 %v276_v32  ;;  %v6713_v32 = vld [vmem:[%s8697_s3 + $0x10] sm:$0xff] }
  0x2e   :  { %282 = vmatprep.mubr.f32.mxu0 %v8716_v7  ;;  %v8975_v54 = vand.u32 4294901760, %v6713_v32 }
  0x31   :  { %288 = vmatmul.mubr.f32.gmra.mrb[14].mxu0 %v287_v34  ;;  %v8733_v34 = vand.u32 4294901760, %v6713_v32 }
  0x32   :  { %378 = vmatprep.mubr.f32.mxu0 %v8716_v7 }
  0x33   :  { %v6735_v39 = vpack.c.bf16 %v8730_v19, %v8733_v34  ;;  %v6923_v19 = vld [vmem:[%s8697_s3 + $0xf8] sm:$0xff] }
  0x35   :  { %380 = vmatmul.mubr.f32.vlgmr.msra.gmra.mrb[0].mxu0 %v6320_v15  ;;  %8951 = vst [vmem:[#allocation18_spill] sm:$0xff] %v6735_v39 }
  0x36   :  { %5536 = vmatpush1.bf16.msra.mxu0 %v6448_v35  ;;  %385 = vmatprep.mubr.f32.mxu0 %v8716_v7 }
  0x37   :  { %5538 = vmatprep.subr.bf16.mxu0 %v6318_v14 }
  0x39   :  { %387 = vmatmul.mubr.f32.gmra.mrb[2].mxu0 %v6328_v21 }
  0x3a   :  { %392 = vmatprep.mubr.f32.mxu0 %v8716_v7 }
  0x3d   :  { %394 = vmatmul.mubr.f32.gmra.mrb[4].mxu0 %v6344_v30 }
  0x3e   :  { %399 = vmatprep.mubr.f32.mxu0 %v8716_v7 }
  0x41   :  { %401 = vmatmul.mubr.f32.gmra.mrb[6].mxu0 %v6360_v43 }
  0x42   :  { %406 = vmatprep.mubr.f32.mxu0 %v8716_v7 }
  0x45   :  { %408 = vmatmul.mubr.f32.gmra.mrb[8].mxu0 %v6383_v56 }
  0x46   :  { %413 = vmatprep.mubr.f32.mxu0 %v8716_v7 }
  0x49   :  { %415 = vmatmul.mubr.f32.gmra.mrb[10].mxu0 %v6397_v63 }
  0x4a   :  { %420 = vmatprep.mubr.f32.mxu0 %v8716_v7 }
  0x4d   :  { %422 = vmatmul.mubr.f32.gmra.mrb[12].mxu0 %v6401_v2 }
  0x4e   :  { %427 = vmatprep.mubr.f32.mxu0 %v8716_v7 }
  0x51   :  { %429 = vmatmul.mubr.f32.gmra.mrb[14].mxu0 %v6417_v10 }
  0x52   :  { %507 = vmatprep.mubr.f32.mxu0 %v8716_v7 }
  0x55   :  { %510 = vmatmul.mubr.f32.vlgmr.msra.gmra.mrb[0].mxu0 %v6335_v23  ;;  %v1121_v23 = vld [vmem:[%s8700_s6 + $0x20] sm:$0xff] }
  0x56   :  { %5540 = vmatpush1.bf16.msra.mxu0 %v6322_v18  ;;  %515 = vmatprep.mubr.f32.mxu0 %v8716_v7 }
  0x57   :  { %5542 = vmatprep.subr.bf16.mxu0 %v6404_v4  ;;  %1147 = vperm.xlu0 %6138, %v1121_v23   ;;  %v8729_v23 = vand.u32 4294901760, %v6740_v40 }
  0x59   :  { %518 = vmatmul.mubr.f32.gmra.mrb[2].mxu0 %v6342_v29  ;;  %v1123_v29 = vld [vmem:[%s8700_s6 + $0x30] sm:$0xff] }
  0x5a   :  { %523 = vmatprep.mubr.f32.mxu0 %v8716_v7 }
  0x5b   :  { %1157 = vperm.xlu0 %6138, %v1123_v29   ;;  %v6753_v29 = vld [vmem:[%s8697_s3 + $0x20] sm:$0xff] }
  0x5d   :  { %526 = vmatmul.mubr.f32.gmra.mrb[4].mxu0 %v6352_v38  ;;  %v1234_v38 = vld [vmem:[%s8702_s8 + $0x18] sm:$0xff] }
  0x5e   :  { %531 = vmatprep.mubr.f32.mxu0 %v8716_v7 }
  0x61   :  { %534 = vmatmul.mubr.f32.gmra.mrb[6].mxu0 %v6375_v52  ;;  %v1246_v52 = vld [vmem:[%s8703_s9 + $0x38] sm:$0xff] }
  0x62   :  { %539 = vmatprep.mubr.f32.mxu0 %v8716_v7 }
  0x65   :  { %542 = vmatmul.mubr.f32.gmra.mrb[8].mxu0 %v6395_v62  ;;  %v63_v62 = vld [vmem:[%s8947_s26 + $0x20] sm:$0xff] }
  0x66   :  { %547 = vmatprep.mubr.f32.mxu0 %v8716_v7  ;;  %v5555_v3 = vpack.c.bf16 %v65_v1, %v63_v62  ;;  %v6833_v1 = vld [vmem:[%s8697_s3 + $0x40] sm:$0xff] }
  0x69   :  { %550 = vmatmul.mubr.f32.gmra.mrb[10].mxu0 %v6411_v8  ;;  %v6669_v8 = vld [vmem:[%s8697_s3 + $0x88] sm:$0xff] }
  0x6a   :  { %555 = vmatprep.mubr.f32.mxu0 %v8716_v7  ;;  %v1370_v11 = vand.u32 4294901760, %v6669_v8 }
  0x6d   :  { %558 = vmatmul.mubr.f32.gmra.mrb[12].mxu0 %v6424_v16  ;;  %v8739_v16 = vand.u32 4294901760, %v6676_v12 }
  0x6e   :  { %563 = vmatprep.mubr.f32.mxu0 %v8716_v7 }
  0x71   :  { %566 = vmatmul.mubr.f32.gmra.mrb[14].mxu0 %v6432_v25  ;;  %v6700_v25 = vld [vmem:[%s8697_s3 + $0x90] sm:$0xff] }
  0x72   :  { %640 = vmatprep.mubr.f32.mxu0 %v8716_v7  ;;  %v8735_v27 = vand.u32 4294901760, %v6700_v25 }
  0x75   :  { %644 = vmatmul.mubr.f32.vlgmr.msra.gmra.mrb[0].mxu0 %v208_v31  ;;  %v1124_v31 = vld [vmem:[%s8700_s6 + $0x38] sm:$0xff] }
  0x76   :  { %5544 = vmatpush1.bf16.msra.mxu0 %v6414_v9  ;;  %649 = vmatprep.mubr.f32.mxu0 %v8716_v7  ;;  %v8971_v9 = vand.u32 4294901760, %v6700_v25 }
  0x77   :  { %5546 = vmatprep.subr.bf16.mxu0 %v6318_v14  ;;  %1162 = vperm.xlu1 %6139, %v1124_v31   ;;  %v8728_v31 = vand.u32 4294901760, %v6745_v41 }
  0x78   :  { %v7018_v4 = vsub.f32 %v6700_v25, %v8971_v9 }
  0x79   :  { %653 = vmatmul.mubr.f32.gmra.mrb[2].mxu0 %v219_v37  ;;  %v1232_v37 = vld [vmem:[%s8702_s8 + $0x8] sm:$0xff] }
  0x7a   :  { %658 = vmatprep.mubr.f32.mxu0 %v8716_v7  ;;  %8972 = vst [vmem:[#allocation35_spill] sm:$0xff] %v7018_v4 }
  0x7b   :  { %2715 = vperm.xlu1 %6139, %v1232_v37   ;;  %v6758_v37 = vld [vmem:[%s8697_s3 + $0x28] sm:$0xff] }
  0x7d   :  { %662 = vmatmul.mubr.f32.gmra.mrb[4].mxu0 %v230_v47  ;;  %v1242_v47 = vld [vmem:[%s8703_s9 + $0x18] sm:$0xff] }
  0x7e   :  { %667 = vmatprep.mubr.f32.mxu0 %v8716_v7 }
  0x7f   :  { %2725 = vperm.xlu1 %6139, %v1234_v38   ;;  %v8727_v38 = vand.u32 4294901760, %v6753_v29 }
  0x81   :  { %671 = vmatmul.mubr.f32.gmra.mrb[6].mxu0 %v241_v58  ;;  %v64_v58 = vld [vmem:[%s8947_s26 + $0x28] sm:$0xff] }
  0x82   :  { %676 = vmatprep.mubr.f32.mxu0 %v8716_v7  ;;  %v5553_v61 = vpack.c.bf16 %v66_v59, %v64_v58  ;;  %v6820_v59 = vld [vmem:[%s8697_s3 + $0xc0] sm:$0xff] }
  0x83   :  { %2795 = vperm.xlu1 %6139, %v1240_v42   ;;  %v8726_v42 = vand.u32 4294901760, %v6758_v37 }
  0x85   :  { %680 = vmatmul.mubr.f32.gmra.mrb[8].mxu0 %v252_v6  ;;  %v6664_v6 = vld [vmem:[%s8697_s3 + $0x80] sm:$0xff]  ;;  %v6775_v45 = vpack.c.bf16 %v8726_v42, %v8727_v38 }
  0x86   :  { %685 = vmatprep.mubr.f32.mxu0 %v8716_v7 }
  0x87   :  { %2800 = vperm.xlu1 %6139, %v1241_v44   ;;  %v6769_v44 = vpack.c.bf16 %v8728_v31, %v8729_v23  ;;  %8953 = vst [vmem:[#allocation20_spill] sm:$0xff] %v6775_v45  ;;  %v6918_v23 = vld [vmem:[%s8697_s3 + $0xf0] sm:$0xff] }
  0x88   :  { %v8745_v34 = vand.u32 4294901760, %v6918_v23 }
  0x89   :  { %689 = vmatmul.mubr.f32.gmra.mrb[10].mxu0 %v263_v13  ;;  %v6681_v13 = vld [vmem:[%s8697_s3 + $0x8] sm:$0xff]  ;;  %8952 = vst [vmem:[#allocation19_spill] sm:$0xff] %v6769_v44 }
  0x8a   :  { %694 = vmatprep.mubr.f32.mxu0 %v8716_v7  ;;  %v8736_v17 = vand.u32 4294901760, %v6681_v13 }
  0x8b   :  { %2805 = vperm.xlu1 %6139, %v1242_v47   ;;  %v6785_v47 = vld [vmem:[%s8697_s3 + $0xb8] sm:$0xff] }
  0x8d   :  { %698 = vmatmul.mubr.f32.gmra.mrb[12].mxu0 %v274_v24  ;;  %v6695_v24 = vpack.c.bf16 %v8736_v17, %v8739_v16 }
  0x8e   :  { %703 = vmatprep.mubr.f32.mxu0 %v8716_v7 }
  0x8f   :  { %2810 = vperm.xlu1 %6139, %v1243_v49   ;;  %8949 = vst [vmem:[#allocation16_spill] sm:$0xff] %v6695_v24  ;;  %v8724_v49 = vand.u32 4294901760, %v6785_v47 }
  0x91   :  { %707 = vmatmul.mubr.f32.gmra.mrb[14].mxu0 %v285_v28  ;;  %v8734_v28 = vand.u32 4294901760, %v6705_v26 }
  0x92   :  { %789 = vmatprep.mubr.f32.mxu0 %v8716_v7 }
  0x93   :  { %2815 = vperm.xlu1 %6139, %v1244_v50   ;;  %v6729_v36 = vpack.c.bf16 %v8734_v28, %v8735_v27  ;;  %v6793_v50 = vld [vmem:[%s8697_s3 + $0x30] sm:$0xff]  ;;  %v8744_v28 = vand.u32 4294901760, %v6923_v19  ;;  %v6941_v27 = vld [vmem:[%s8697_s3 + $0x78] sm:$0xff] }
  0x95   :  { %791 = vmatmul.mubr.f32.vlgmr.msra.gmra.mrb[0].mxu0 %v6320_v15  ;;  %8950 = vst [vmem:[#allocation17_spill] sm:$0xff] %v6729_v36 }
  0x96   :  { %5548 = vmatpush1.bf16.msra.mxu0 %v6322_v18  ;;  %796 = vmatprep.mubr.f32.mxu0 %v8716_v7  ;;  %v8766_v18 = vand.u32 4294901760, %v7018_v4 }
  0x97   :  { %5550 = vmatprep.subr.bf16.mxu0 %v5549_v48  ;;  %2825 = vperm.xlu1 %6139, %v1246_v52   ;;  %v8725_v48 = vand.u32 4294901760, %v6780_v46  ;;  %v6798_v52 = vld [vmem:[%s8697_s3 + $0x38] sm:$0xff] }
  0x98   :  { %v8722_v55 = vand.u32 4294901760, %v6798_v52 }
  0x99   :  { %798 = vmatmul.mubr.f32.gmra.mrb[2].mxu0 %v6328_v21  ;;  %v6809_v57 = vpack.c.bf16 %v8724_v49, %v8725_v48  ;;  %v6903_v49 = vld [vmem:[%s8697_s3 + $0x68] sm:$0xff] }
  0x9a   :  { %803 = vmatprep.mubr.f32.mxu0 %v8716_v7  ;;  %v8742_v31 = vand.u32 4294901760, %v6903_v49 }
  0x9b   :  { %3028 = vperm.xlu1 %6139, %v3014_v53   ;;  %v8723_v53 = vand.u32 4294901760, %v6793_v50  ;;  %8954 = vst [vmem:[#allocation21_spill] sm:$0xff] %v6809_v57 }
  0x9d   :  { %805 = vmatmul.mubr.f32.gmra.mrb[4].mxu0 %v6344_v30  ;;  %v6815_v58 = vpack.c.bf16 %v8722_v55, %v8723_v53  ;;  %v6898_v53 = vld [vmem:[%s8697_s3 + $0x60] sm:$0xff] }
  0x9e   :  { %810 = vmatprep.mubr.f32.mxu0 %v8716_v7  ;;  %v8743_v38 = vand.u32 4294901760, %v6898_v53 }
  0x9f   :  { %8955 = vst [vmem:[#allocation22_spill] sm:$0xff] %v6815_v58 }
  0xa1   :  { %812 = vmatmul.mubr.f32.gmra.mrb[6].mxu0 %v6360_v43 }
  0xa2   :  { %817 = vmatprep.mubr.f32.mxu0 %v8716_v7 }
  0xa5   :  { %819 = vmatmul.mubr.f32.gmra.mrb[8].mxu0 %v6383_v56 }
  0xa6   :  { %824 = vmatprep.mubr.f32.mxu0 %v8716_v7 }
  0xa9   :  { %826 = vmatmul.mubr.f32.gmra.mrb[10].mxu0 %v6397_v63 }
  0xaa   :  { %831 = vmatprep.mubr.f32.mxu0 %v8716_v7 }
  0xad   :  { %833 = vmatmul.mubr.f32.gmra.mrb[12].mxu0 %v6401_v2 }
  0xae   :  { %838 = vmatprep.mubr.f32.mxu0 %v8716_v7 }
  0xb1   :  { %840 = vmatmul.mubr.f32.gmra.mrb[14].mxu0 %v6417_v10 }
  0xb2   :  { %914 = vmatprep.mubr.f32.mxu0 %v8716_v7 }
  0xb5   :  { %916 = vmatmul.mubr.f32.vlgmr.msra.gmra.mrb[0].mxu0 %v6320_v15  ;;  %v971_v15 = vld [vmem:[%s8699_s5] sm:$0xff] }
  0xb6   :  { %5552 = vmatpush1.bf16.msra.mxu0 %v5551_v60  ;;  %921 = vmatprep.mubr.f32.mxu0 %v8716_v7  ;;  %v6825_v60 = vld [vmem:[%s8697_s3 + $0xc8] sm:$0xff] }
  0xb7   :  { %5554 = vmatprep.subr.bf16.mxu0 %v5553_v61  ;;  %v8721_v61 = vand.u32 4294901760, %v6820_v59  ;;  %v8720_v62 = vand.u32 4294901760, %v6825_v60 }
  0xb9   :  { %923 = vmatmul.mubr.f32.gmra.mrb[2].mxu0 %v6328_v21  ;;  %v972_v21 = vld [vmem:[%s8699_s5 + $0x8] sm:$0xff] }
  0xba   :  { %928 = vmatprep.mubr.f32.mxu0 %v8716_v7  ;;  %5556 = vmatpush1.bf16.msra.mxu0 %v5555_v3  ;;  %v6838_v3 = vld [vmem:[%s8697_s3 + $0x48] sm:$0xff] }
  0xbd   :  { %930 = vmatmul.mubr.f32.gmra.mrb[4].mxu0 %v6344_v30  ;;  %v973_v30 = vld [vmem:[%s8699_s5 + $0x10] sm:$0xff] }
  0xbe   :  { %935 = vmatprep.mubr.f32.mxu0 %v8716_v7 }
  0xc1   :  { %937 = vmatmul.mubr.f32.gmra.mrb[6].mxu0 %v6360_v43  ;;  %v974_v43 = vld [vmem:[%s8699_s5 + $0x18] sm:$0xff] }
  0xc2   :  { %942 = vmatprep.mubr.f32.mxu0 %v8716_v7 }
  0xc5   :  { %944 = vmatmul.mubr.f32.gmra.mrb[8].mxu0 %v6383_v56  ;;  %v975_v56 = vld [vmem:[%s8699_s5 + $0x20] sm:$0xff] }
  0xc6   :  { %949 = vmatprep.mubr.f32.mxu0 %v8716_v7 }
  0xc9   :  { %951 = vmatmul.mubr.f32.gmra.mrb[10].mxu0 %v6397_v63  ;;  %v976_v63 = vld [vmem:[%s8699_s5 + $0x28] sm:$0xff] }
  0xca   :  { %956 = vmatprep.mubr.f32.mxu0 %v8716_v7 }
  0xcd   :  { %958 = vmatmul.mubr.f32.gmra.mrb[12].mxu0 %v6401_v2  ;;  %v977_v2 = vld [vmem:[%s8699_s5 + $0x30] sm:$0xff] }
  0xce   :  { %963 = vmatprep.mubr.f32.mxu0 %v8716_v7 }
  0xd1   :  { %965 = vmatmul.mubr.f32.gmra.mrb[14].mxu0 %v6417_v10  ;;  %v1367_v10 = vand.u32 4294901760, %v6664_v6 }
  0xd2   :  { %1068 = vmatprep.mubr.f32.mxu0 %v8716_v7 }
  0xd3   :  { %v6689_v22 = vpack.c.bf16 %v1370_v11, %v1367_v10 }
  0xd5   :  { %5093 = vmatmul.mubr.msk.f32.vlgmr.msra.gmra.mrb[0].mxu0 %vm979_vm1, %v971_v15  ;;  %8948 = vst [vmem:[#allocation15_spill] sm:$0xff] %v6689_v22  ;;  %5558 = vmatprep.subr.bf16.mxu1 %v6689_v22  ;;  %v8719_v15 = vand.u32 4294901760, %v6833_v1 }
  0xd6   :  { %1074 = vmatprep.mubr.f32.mxu0 %v8716_v7  ;;  %5774 = vmatprep.subr.bf16.mxu0 %v6689_v22 }
  0xd7   :  { %5560 = vmatpush3.bf16.msra.mxu1 %v6695_v24  ;;  %5776 = vmatpush3.bf16.msra.mxu0 %v6695_v24 }
  0xd8   :  { %5562 = vmatprep.subr.bf16.mxu1 %v6729_v36  ;;  %5778 = vmatprep.subr.bf16.mxu0 %v6729_v36 }
  0xd9   :  { %5094 = vmatmul.mubr.msk.f32.gmra.mrb[2].mxu0 %vm979_vm1, %v972_v21  ;;  %v8718_v21 = vand.u32 4294901760, %v6838_v3 }
  0xda   :  { %1080 = vmatprep.mubr.f32.mxu0 %v8716_v7 }
  0xdb   :  { %5564 = vmatpush3.bf16.msra.mxu1 %v6735_v39  ;;  %5780 = vmatpush3.bf16.msra.mxu0 %v6735_v39 }
  0xdc   :  { %5566 = vmatprep.subr.bf16.mxu1 %v6769_v44  ;;  %5782 = vmatprep.subr.bf16.mxu0 %v6769_v44 }
  0xdd   :  { %5095 = vmatmul.mubr.msk.f32.gmra.mrb[4].mxu0 %vm979_vm1, %v973_v30  ;;  %v6849_v30 = vpack.c.bf16 %v8720_v62, %v8721_v61  ;;  %v6892_v61 = vld [vmem:[%s8697_s3 + $0xe8] sm:$0xff] }
  0xde   :  { %1086 = vmatprep.mubr.f32.mxu0 %v8716_v7  ;;  %v8740_v42 = vand.u32 4294901760, %v6892_v61 }
  0xdf   :  { %5568 = vmatpush3.bf16.msra.mxu1 %v6775_v45  ;;  %5784 = vmatpush3.bf16.msra.mxu0 %v6775_v45  ;;  %8956 = vst [vmem:[#allocation23_spill] sm:$0xff] %v6849_v30 }
  0xe0   :  { %5570 = vmatprep.subr.bf16.mxu1 %v6809_v57  ;;  %5786 = vmatprep.subr.bf16.mxu0 %v6809_v57 }
  0xe1   :  { %5096 = vmatmul.mubr.msk.f32.gmra.mrb[6].mxu0 %vm979_vm1, %v974_v43  ;;  %v6855_v43 = vpack.c.bf16 %v8718_v21, %v8719_v15  ;;  %v6883_v21 = vld [vmem:[%s8697_s3 + $0xe0] sm:$0xff]  ;;  %v8738_v15 = vand.u32 4294901760, %v6873_v20 }
  0xe2   :  { %1092 = vmatprep.mubr.f32.mxu0 %v8716_v7  ;;  %v8741_v55 = vand.u32 4294901760, %v6883_v21 }
  0xe3   :  { %5572 = vmatpush3.bf16.msra.mxu1 %v6815_v58  ;;  %5788 = vmatpush3.bf16.msra.mxu0 %v6815_v58  ;;  %8957 = vst [vmem:[#allocation24_spill] sm:$0xff] %v6855_v43 }
  0xe4   :  { %5574 = vmatprep.subr.bf16.mxu1 %v6849_v30  ;;  %5790 = vmatprep.subr.bf16.mxu0 %v6849_v30  ;;  %v6948_v17 = vpack.c.bf16 %v8740_v42, %v8741_v55  ;;  %v6966_v42 = vpack.c.bf16 %v8744_v28, %v8745_v34  ;;  %v6971_v55 = vsub.f32 %v6664_v6, %v1367_v10  ;;  %v8967_v28 = vand.u32 4294901760, %v6681_v13 }
  0xe5   :  { %5097 = vmatmul.mubr.msk.f32.gmra.mrb[8].mxu0 %vm979_vm1, %v975_v56  ;;  %v6860_v56 = vld [vmem:[%s8697_s3 + $0xd0] sm:$0xff] }
  0xe6   :  { %1098 = vmatprep.mubr.f32.mxu0 %v8716_v7  ;;  %8960 = vst [vmem:[#allocation27_spill] sm:$0xff] %v6948_v17  ;;  %8962 = vst [vmem:[#allocation29_spill] sm:$0xff] %v6966_v42  ;;  %v6987_v34 = vsub.f32 %v6681_v13, %v8967_v28  ;;  %v8751_v6 = vand.u32 4294901760, %v6971_v55 }
  0xe7   :  { %5576 = vmatpush3.bf16.msra.mxu1 %v6855_v43  ;;  %5792 = vmatpush3.bf16.msra.mxu0 %v6855_v43  ;;  %8963 = vst [vmem:[#allocation30_spill] sm:$0xff] %v6971_v55 }
  0xe8   :  { %8968 = vst [vmem:[#allocation33_spill] sm:$0xff] %v6987_v34  ;;  %v1546_v13 = vsub.f32 %v6971_v55, %v8751_v6  ;;  %v8973_v6 = vand.u32 4294901760, %v6705_v26 }
  0xe9   :  { %5098 = vmatmul.mubr.msk.f32.gmra.mrb[10].mxu0 %vm979_vm1, %v976_v63  ;;  %v6865_v63 = vld [vmem:[%s8697_s3 + $0xd8] sm:$0xff] }
  0xea   :  { %1104 = vmatprep.mubr.f32.mxu0 %v8716_v7  ;;  %v7023_v35 = vsub.f32 %v6705_v26, %v8973_v6 }
  0xec   :  { %8974 = vst [vmem:[#allocation36_spill] sm:$0xff] %v7023_v35  ;;  %v8765_v26 = vand.u32 4294901760, %v7023_v35 }
  0xed   :  { %5099 = vmatmul.mubr.msk.f32.gmra.mrb[12].mxu0 %vm979_vm1, %v977_v2  ;;  %v8732_v2 = vand.u32 4294901760, %v6860_v56 }
  0xee   :  { %1110 = vmatprep.mubr.f32.mxu0 %v8716_v7  ;;  %v6878_v7 = vld [vmem:[%s8697_s3 + $0x58] sm:$0xff] }
  0xef   :  { %v8737_v62 = vand.u32 4294901760, %v6878_v7 }
  0xf1   :  { %5100 = vmatmul.mubr.msk.f32.gmra.mrb[14].mxu0 %vm979_vm1, %v978_v5  ;;  %v8731_v5 = vand.u32 4294901760, %v6865_v63 }
  0xf3   :  { %v6910_v48 = vpack.c.bf16 %v8731_v5, %v8732_v2  ;;  %v6928_v5 = vld [vmem:[%s8697_s3 + $0x70] sm:$0xff]  ;;  %v6934_v2 = vpack.c.bf16 %v8737_v62, %v8738_v15  ;;  %v6956_v62 = vpack.c.bf16 %v8742_v31, %v8743_v38  ;;  %v6976_v31 = vsub.f32 %v6669_v8, %v1370_v11  ;;  %s6201_s3 = smov [#allocation4]  }
  0xf4   :  { %v8746_v15 = vand.u32 4294901760, %v6928_v5  ;;  %v8965_v38 = vand.u32 4294901760, %v6676_v12  ;;  %v8969_v8 = vand.u32 4294901760, %v6941_v27  ;;  %s5082_s30 = sshll.u32 %s6201_s3, 4  ;;  %s5083_s30 = int_to_ptr.vmem [resolvable:$true] %s5082_s30 }
  0xf5   :  { %8958 = vst [vmem:[#allocation25_spill] sm:$0xff] %v6910_v48  ;;  %8959 = vst [vmem:[#allocation26_spill] sm:$0xff] %v6934_v2  ;;  %5578 = vmatprep.subr.bf16.mxu1 %v6910_v48  ;;  %5794 = vmatprep.subr.bf16.mxu0 %v6910_v48  ;;  %v8754_v10 = vand.u32 4294901760, %v6976_v31  ;;  %p6176_p1 = scmp.lt.s32.totalorder %s5083_s30, %s5083_s30 }
  0xf6   :  { %5580 = vmatpush3.bf16.msra.mxu1 %v6934_v2  ;;  %8961 = vst [vmem:[#allocation28_spill] sm:$0xff] %v6956_v62  ;;  %5796 = vmatpush3.bf16.msra.mxu0 %v6934_v2  ;;  %8964 = vst [vmem:[#allocation31_spill] sm:$0xff] %v6976_v31  ;;  %v6982_v16 = vsub.f32 %v6676_v12, %v8965_v38  ;;  %v6996_v11 = vpack.c.bf16 %v8969_v8, %v8746_v15  ;;  %v8762_v38 = vand.u32 4294901760, %v6987_v34 }
  0xf7   :  { %5582 = vmatprep.subr.bf16.mxu1 %v6948_v17  ;;  %5798 = vmatprep.subr.bf16.mxu0 %v6948_v17  ;;  %v1553_v28 = vsub.f32 %v6976_v31, %v8754_v10  ;;  %v1547_v10 = vand.u32 4294901760, %v1546_v13  ;;  %v9000_v17 = vand.u32 4294901760, %v6833_v1 }
  0xf8   :  { %8966 = vst [vmem:[#allocation32_spill] sm:$0xff] %v6982_v16  ;;  %8970 = vst [vmem:[#allocation34_spill] sm:$0xff] %v6996_v11  ;;  %v8759_v12 = vand.u32 4294901760, %v6982_v16  ;;  %v1441_v15 = vsub.f32 %v6987_v34, %v8762_v38  ;;  %v7033_v38 = vsub.f32 %v6718_v33, %v8977_v51  ;;  %v1560_v51 = vsub.f32 %v7018_v4, %v8766_v18 }
  0xf9   :  { %v1554_v0 = vand.u32 4294901760, %v1553_v28  ;;  %v1567_v33 = vsub.f32 %v7023_v35, %v8765_v26 }
  0xfa   :  { %5584 = vmatpush3.bf16.msra.mxu1 %v6956_v62  ;;  %5800 = vmatpush3.bf16.msra.mxu0 %v6956_v62  ;;  %v1434_v8 = vsub.f32 %v6982_v16, %v8759_v12  ;;  %v7028_v12 = vsub.f32 %v6713_v32, %v8975_v54  ;;  %8978 = vst [vmem:[#allocation38_spill] sm:$0xff] %v7033_v38  ;;  %v1442_v25 = vand.u32 4294901760, %v1441_v15  ;;  %v8769_v32 = vand.u32 4294901760, %v7033_v38 }
  0xfb   :  { %5586 = vmatprep.subr.bf16.mxu1 %v6966_v42  ;;  %5802 = vmatprep.subr.bf16.mxu0 %v6966_v42  ;;  %v7039_v6 = vpack.c.bf16 %v1554_v0, %v1547_v10  ;;  %v8980_v15 = vand.u32 4294901760, %v6740_v40  ;;  %v1568_v26 = vand.u32 4294901760, %v1567_v33  ;;  %v8988_v33 = vand.u32 4294901760, %v6780_v46 }
  0xfc   :  { %8976 = vst [vmem:[#allocation37_spill] sm:$0xff] %v7028_v12  ;;  %v1435_v9 = vand.u32 4294901760, %v1434_v8  ;;  %v8767_v54 = vand.u32 4294901760, %v7028_v12  ;;  %v1455_v10 = vsub.f32 %v7033_v38, %v8769_v32  ;;  %v8982_v8 = vand.u32 4294901760, %v6745_v41 }
  0xfd   :  { %8979 = vst [vmem:[#allocation39_spill] sm:$0xff] %v7039_v6  ;;  %v7054_v28 = vsub.f32 %v6740_v40, %v8980_v15  ;;  %v1561_v15 = vand.u32 4294901760, %v1560_v51  ;;  %v8994_v42 = vand.u32 4294901760, %v6798_v52  ;;  %v8996_v62 = vand.u32 4294901760, %v6820_v59 }
  0xfe   :  { %5588 = vmatpush3.bf16.msra.mxu1 %v6996_v11  ;;  %5804 = vmatpush3.bf16.msra.mxu0 %v6996_v11  ;;  %v7043_v13 = vpack.c.bf16 %v1442_v25, %v1435_v9  ;;  %v1448_v0 = vsub.f32 %v7028_v12, %v8767_v54  ;;  %v7066_v9 = vsub.f32 %v6745_v41, %v8982_v8  ;;  %v8984_v25 = vand.u32 4294901760, %v6753_v29 }
  0xff   :  { %8981 = vst [vmem:[#allocation40_spill] sm:$0xff] %v7054_v28  ;;  %5590 = vmatprep.subr.bf16.mxu1 %v7039_v6  ;;  %v8775_v18 = vand.u32 4294901760, %v7054_v28  ;;  %v8986_v54 = vand.u32 4294901760, %v6758_v37  ;;  %v1456_v14 = vand.u32 4294901760, %v1455_v10  ;;  %v7081_v8 = vpack.c.bf16 %v1568_v26, %v1561_v15 }
 0x100   :  { %8983 = vst [vmem:[#allocation41_spill] sm:$0xff] %v7066_v9  ;;  %v7071_v40 = vsub.f32 %v6753_v29, %v8984_v25  ;;  %v1449_v32 = vand.u32 4294901760, %v1448_v0  ;;  %v8774_v11 = vand.u32 4294901760, %v7066_v9  ;;  %v7090_v25 = vsub.f32 %v6780_v46, %v8988_v33 }
 0x101   :  { %v7077_v6 = vsub.f32 %v6758_v37, %v8986_v54  ;;  %v1574_v29 = vsub.f32 %v7054_v28, %v8775_v18  ;;  %v8990_v0 = vand.u32 4294901760, %v6785_v47 }
 0x102   :  { %8985 = vst [vmem:[#allocation42_spill] sm:$0xff] %v7071_v40  ;;  %v8776_v41 = vand.u32 4294901760, %v7071_v40  ;;  %8989 = vst [vmem:[#allocation44_spill] sm:$0xff] %v7090_v25  ;;  %v7092_v37 = vpack.c.bf16 %v1456_v14, %v1449_v32  ;;  %v1581_v54 = vsub.f32 %v7066_v9, %v8774_v11  ;;  %v8782_v14 = vand.u32 4294901760, %v7090_v25 }
 0x103   :  { %8987 = vst [vmem:[#allocation43_spill] sm:$0xff] %v7077_v6  ;;  %v8779_v51 = vand.u32 4294901760, %v7077_v6  ;;  %v7103_v10 = vsub.f32 %v6785_v47, %v8990_v0  ;;  %v1575_v15 = vand.u32 4294901760, %v1574_v29  ;;  %v8992_v32 = vand.u32 4294901760, %v6793_v50 }
 0x104   :  { %v1462_v26 = vsub.f32 %v7071_v40, %v8776_v41  ;;  %v1582_v11 = vand.u32 4294901760, %v1581_v54  ;;  %v7118_v47 = vsub.f32 %v6798_v52, %v8994_v42  ;;  %v1588_v0 = vsub.f32 %v7090_v25, %v8782_v14 }
 0x105   :  { %8991 = vst [vmem:[#allocation45_spill] sm:$0xff] %v7103_v10  ;;  %v1469_v46 = vsub.f32 %v7077_v6, %v8779_v51  ;;  %v7112_v33 = vsub.f32 %v6793_v50, %v8992_v32  ;;  %v8783_v41 = vand.u32 4294901760, %v7103_v10  ;;  %v7127_v50 = vsub.f32 %v6820_v59, %v8996_v62 }
 0x106   :  { %v1463_v18 = vand.u32 4294901760, %v1462_v26  ;;  %8995 = vst [vmem:[#allocation47_spill] sm:$0xff] %v7118_v47  ;;  %v7129_v54 = vpack.c.bf16 %v1582_v11, %v1575_v15  ;;  %v8786_v42 = vand.u32 4294901760, %v7118_v47  ;;  %v8998_v52 = vand.u32 4294901760, %v6825_v60 }
 0x107   :  { %8993 = vst [vmem:[#allocation46_spill] sm:$0xff] %v7112_v33  ;;  %v1470_v29 = vand.u32 4294901760, %v1469_v46  ;;  %v8787_v51 = vand.u32 4294901760, %v7112_v33  ;;  %8997 = vst [vmem:[#allocation48_spill] sm:$0xff] %v7127_v50  ;;  %v1595_v26 = vsub.f32 %v7103_v10, %v8783_v41  ;;  %v1589_v14 = vand.u32 4294901760, %v1588_v0 }
 0x108   :  { %v7138_v46 = vsub.f32 %v6825_v60, %v8998_v52  ;;  %v8788_v62 = vand.u32 4294901760, %v7127_v50  ;;  %v1483_v15 = vsub.f32 %v7118_v47, %v8786_v42  ;;  %v7153_v60 = vsub.f32 %v6833_v1, %v9000_v17 }
 0x109   :  { %v7140_v32 = vpack.c.bf16 %v1470_v29, %v1463_v18  ;;  %v1476_v59 = vsub.f32 %v7112_v33, %v8787_v51  ;;  %v1596_v11 = vand.u32 4294901760, %v1595_v26  ;;  %v9002_v0 = vand.u32 4294901760, %v6838_v3 }
 0x10a   :  { %8999 = vst [vmem:[#allocation49_spill] sm:$0xff] %v7138_v46  ;;  %9001 = vst [vmem:[#allocation50_spill] sm:$0xff] %v7153_v60  ;;  %v1602_v29 = vsub.f32 %v7127_v50, %v8788_v62  ;;  %v9004_v52 = vand.u32 4294901760, %v6860_v56  ;;  %v1484_v41 = vand.u32 4294901760, %v1483_v15  ;;  %v9006_v17 = vand.u32 4294901760, %v7138_v46 }
 0x10b   :  { %v1477_v18 = vand.u32 4294901760, %v1476_v59  ;;  %v7161_v26 = vsub.f32 %v6838_v3, %v9002_v0  ;;  %v7168_v51 = vpack.c.bf16 %v1596_v11, %v1589_v14  ;;  %v8794_v59 = vand.u32 4294901760, %v7153_v60 }
 0x10c   :  { %v7166_v42 = vsub.f32 %v6860_v56, %v9004_v52  ;;  %v1609_v1 = vsub.f32 %v7138_v46, %v9006_v17  ;;  %v1603_v62 = vand.u32 4294901760, %v1602_v29  ;;  %v9007_v0 = vand.u32 4294901760, %v6865_v63 }
 0x10d   :  { %9003 = vst [vmem:[#allocation51_spill] sm:$0xff] %v7161_v26  ;;  %v8793_v2 = vand.u32 4294901760, %v7161_v26  ;;  %v7181_v56 = vpack.c.bf16 %v1484_v41, %v1477_v18  ;;  %v1490_v11 = vsub.f32 %v7153_v60, %v8794_v59  ;;  %v9009_v15 = vand.u32 4294901760, %v6873_v20 }
 0x10e   :  { %9005 = vst [vmem:[#allocation52_spill] sm:$0xff] %v7166_v42  ;;  %v8797_v3 = vand.u32 4294901760, %v7166_v42  ;;  %v7179_v48 = vsub.f32 %v6865_v63, %v9007_v0  ;;  %v1610_v14 = vand.u32 4294901760, %v1609_v1  ;;  %v9011_v18 = vand.u32 4294901760, %v6878_v7 }
 0x10f   :  { %v7189_v29 = vsub.f32 %v6873_v20, %v9009_v15  ;;  %v1497_v52 = vsub.f32 %v7161_v26, %v8793_v2  ;;  %v1491_v0 = vand.u32 4294901760, %v1490_v11  ;;  %v9013_v15 = vand.u32 4294901760, %v6883_v21 }
 0x110   :  { %9008 = vst [vmem:[#allocation53_spill] sm:$0xff] %v7179_v48  ;;  %v1616_v63 = vsub.f32 %v7166_v42, %v8797_v3  ;;  %v8801_v41 = vand.u32 4294901760, %v7179_v48  ;;  %v7201_v17 = vsub.f32 %v6878_v7, %v9011_v18  ;;  %v7203_v1 = vpack.c.bf16 %v1610_v14, %v1603_v62 }
 0x111   :  { %9010 = vst [vmem:[#allocation54_spill] sm:$0xff] %v7189_v29  ;;  %v8800_v20 = vand.u32 4294901760, %v7189_v29  ;;  %v7209_v2 = vsub.f32 %v6883_v21, %v9013_v15  ;;  %v1498_v59 = vand.u32 4294901760, %v1497_v52  ;;  %v9015_v14 = vand.u32 4294901760, %v6892_v61 }
 0x112   :  { %9012 = vst [vmem:[#allocation55_spill] sm:$0xff] %v7201_v17  ;;  %v1617_v43 = vand.u32 4294901760, %v1616_v63  ;;  %v1623_v3 = vsub.f32 %v7179_v48, %v8801_v41  ;;  %v8802_v30 = vand.u32 4294901760, %v7201_v17  ;;  %v9017_v21 = vand.u32 4294901760, %v6898_v53 }
 0x113   :  { %9014 = vst [vmem:[#allocation56_spill] sm:$0xff] %v7209_v2  ;;  %v1504_v7 = vsub.f32 %v7189_v29, %v8800_v20  ;;  %v7222_v11 = vsub.f32 %v6892_v61, %v9015_v14  ;;  %v7229_v63 = vpack.c.bf16 %v1498_v59, %v1491_v0  ;;  %v9019_v20 = vand.u32 4294901760, %v6903_v49 }
 0x114   :  { %v7227_v52 = vsub.f32 %v6898_v53, %v9017_v21  ;;  %v1624_v18 = vand.u32 4294901760, %v1623_v3  ;;  %v1511_v15 = vsub.f32 %v7201_v17, %v8802_v30  ;;  %v9021_v61 = vand.u32 4294901760, %v7209_v2 }
 0x115   :  { %9016 = vst [vmem:[#allocation57_spill] sm:$0xff] %v7222_v11  ;;  %v7237_v41 = vsub.f32 %v6903_v49, %v9019_v20  ;;  %v1505_v62 = vand.u32 4294901760, %v1504_v7  ;;  %v8805_v53 = vand.u32 4294901760, %v7222_v11  ;;  %v9022_v30 = vand.u32 4294901760, %v6918_v23 }
 0x116   :  { %9018 = vst [vmem:[#allocation58_spill] sm:$0xff] %v7227_v52  ;;  %v1630_v14 = vsub.f32 %v7209_v2, %v9021_v61  ;;  %v8806_v59 = vand.u32 4294901760, %v7227_v52  ;;  %v7244_v0 = vpack.c.bf16 %v1624_v18, %v1617_v43  ;;  %v1512_v3 = vand.u32 4294901760, %v1511_v15 }
 0x117   :  { %9020 = vst [vmem:[#allocation59_spill] sm:$0xff] %v7237_v41  ;;  %v8809_v21 = vand.u32 4294901760, %v7237_v41  ;;  %v7250_v58 = vsub.f32 %v6918_v23, %v9022_v30  ;;  %v1637_v20 = vsub.f32 %v7222_v11, %v8805_v53  ;;  %v9024_v43 = vand.u32 4294901760, %v6923_v19 }
 0x118   :  { %v1631_v49 = vand.u32 4294901760, %v1630_v14  ;;  %v1518_v7 = vsub.f32 %v7227_v52, %v8806_v59  ;;  %v7263_v15 = vpack.c.bf16 %v1512_v3, %v1505_v62  ;;  %v9026_v61 = vand.u32 4294901760, %v6928_v5 }
 0x119   :  { %9023 = vst [vmem:[#allocation60_spill] sm:$0xff] %v7250_v58  ;;  %v7261_v18 = vsub.f32 %v6923_v19, %v9024_v43  ;;  %v1525_v23 = vsub.f32 %v7237_v41, %v8809_v21  ;;  %v8812_v30 = vand.u32 4294901760, %v7250_v58  ;;  %v1638_v53 = vand.u32 4294901760, %v1637_v20 }
 0x11a   :  { %v7272_v14 = vsub.f32 %v6928_v5, %v9026_v61  ;;  %v1519_v59 = vand.u32 4294901760, %v1518_v7  ;;  %v9028_v19 = vand.u32 4294901760, %v6941_v27 }
 0x11b   :  { %9025 = vst [vmem:[#allocation61_spill] sm:$0xff] %v7261_v18  ;;  %v8813_v57 = vand.u32 4294901760, %v7261_v18  ;;  %v1526_v3 = vand.u32 4294901760, %v1525_v23  ;;  %v1644_v43 = vsub.f32 %v7250_v58, %v8812_v30  ;;  %v7284_v45 = vpack.c.bf16 %v1638_v53, %v1631_v49 }
 0x11c   :  { %9027 = vst [vmem:[#allocation62_spill] sm:$0xff] %v7272_v14  ;;  %v7278_v62 = vsub.f32 %v6941_v27, %v9028_v19  ;;  %v8815_v21 = vand.u32 4294901760, %v7272_v14 }
 0x11d   :  { %v1651_v5 = vsub.f32 %v7261_v18, %v8813_v57  ;;  %v7290_v7 = vpack.c.bf16 %v1526_v3, %v1519_v59  ;;  %v1645_v61 = vand.u32 4294901760, %v1644_v43  ;;  %v7302_v57 = vpack.c.bf16 %v6976_v31, %v6971_v55 }
 0x11e   :  { %9029 = vst [vmem:[#allocation63_spill] sm:$0xff] %v7278_v62  ;;  %v8814_v20 = vand.u32 4294901760, %v7278_v62  ;;  %v1532_v27 = vsub.f32 %v7272_v14, %v8815_v21  ;;  %v7308_v3 = vpack.c.bf16 %v6987_v34, %v6982_v16  ;;  %v7313_v43 = vpack.c.bf16 %v7023_v35, %v7018_v4 }
 0x11f   :  { %v1652_v23 = vand.u32 4294901760, %v1651_v5  ;;  %5838 = vmatprep.subr.bf16.mxu0 %v7302_v57  ;;  %v7317_v5 = vpack.c.bf16 %v7033_v38, %v7028_v12  ;;  %v7349_v21 = vpack.c.bf16 %v7201_v17, %v7189_v29 }
 0x120   :  { %v1539_v19 = vsub.f32 %v7278_v62, %v8814_v20  ;;  %v1533_v53 = vand.u32 4294901760, %v1532_v27  ;;  %9030 = vst [vmem:[#allocation64_spill] sm:$0xff] %v7308_v3  ;;  %9031 = vst [vmem:[#allocation65_spill] sm:$0xff] %v7313_v43  ;;  %v7329_v27 = vpack.c.bf16 %v7103_v10, %v7090_v25  ;;  %v7345_v20 = vpack.c.bf16 %v7179_v48, %v7166_v42  ;;  %v1128_v42 = vpop.permute.xlu0 %1127 }
 0x121   :  { %v7298_v49 = vpack.c.bf16 %v1652_v23, %v1645_v61  ;;  %9032 = vst [vmem:[#allocation66_spill] sm:$0xff] %v7317_v5  ;;  %v7321_v61 = vpack.c.bf16 %v7066_v9, %v7054_v28  ;;  %v7333_v23 = vpack.c.bf16 %v7118_v47, %v7112_v33  ;;  %9040 = vst [vmem:[#allocation74_spill] sm:$0xff] %v7349_v21 }
 0x122   :  { %v1540_v30 = vand.u32 4294901760, %v1539_v19  ;;  %9035 = vst [vmem:[#allocation69_spill] sm:$0xff] %v7329_v27  ;;  %v7337_v19 = vpack.c.bf16 %v7138_v46, %v7127_v50  ;;  %9039 = vst [vmem:[#allocation73_spill] sm:$0xff] %v7345_v20  ;;  %v7353_v47 = vpack.c.bf16 %v7222_v11, %v7209_v2  ;;  %v7357_v46 = vpack.c.bf16 %v7237_v41, %v7227_v52  ;;  %v1138_v2 = vpop.permute.xlu1 %1137 }
 0x123   :  { %9033 = vst [vmem:[#allocation67_spill] sm:$0xff] %v7321_v61  ;;  %9036 = vst [vmem:[#allocation70_spill] sm:$0xff] %v7333_v23  ;;  %v7365_v48 = vpack.c.bf16 %v7278_v62, %v7272_v14 }
 0x124   :  { %v7304_v59 = vpack.c.bf16 %v1540_v30, %v1533_v53  ;;  %v7325_v30 = vpack.c.bf16 %v7077_v6, %v7071_v40  ;;  %9037 = vst [vmem:[#allocation71_spill] sm:$0xff] %v7337_v19  ;;  %v7341_v53 = vpack.c.bf16 %v7161_v26, %v7153_v60  ;;  %9041 = vst [vmem:[#allocation75_spill] sm:$0xff] %v7353_v47  ;;  %v1133_v29 = vpop.permute.xlu0 %1132 }
 0x125   :  { %9042 = vst [vmem:[#allocation76_spill] sm:$0xff] %v7357_v46  ;;  %v7361_v26 = vpack.c.bf16 %v7261_v18, %v7250_v58  ;;  %9044 = vst [vmem:[#allocation78_spill] sm:$0xff] %v7365_v48  ;;  %v7370_v18 = vstv %s8701_s7 }
 0x126   :  { %9034 = vst [vmem:[#allocation68_spill] sm:$0xff] %v7325_v30  ;;  %9038 = vst [vmem:[#allocation72_spill] sm:$0xff] %v7341_v53 }
 0x127   :  { %9043 = vst [vmem:[#allocation77_spill] sm:$0xff] %v7361_v26 }
 0x1a8   :  { %v1070_v60 = vpop.f32.mrb[0].mxu0 }
 0x1a9   :  { %v1072_v17 = vpop.f32.mrb[1].mxu0  ;;  %v1165_v10 = vadd.f32 %v1128_v42, %v1070_v60 }
 0x1aa   :  { %v1166_v25 = vadd.f32 %v1128_v42, %v1072_v17 }
 0x1ab   :  { %vm1182_vm4 = vcmp.gt.f32.partialorder %v1165_v10, 0.0 }
 0x1ac   :  { %v1076_v50 = vpop.f32.mrb[2].mxu0  ;;  %v1200_v40 = vmul.f32 %v7370_v18, %v1166_v25  ;;  %vm1183_vm5 = vcmp.gt.f32.partialorder %v1166_v25, 0.0 }
 0x1ad   :  { %v1167_v33 = vadd.f32 %v1133_v29, %v1076_v50  ;;  %v1078_v11 = vpop.f32.mrb[3].mxu0  ;;  %v1199_v50 = vmul.f32 %v7370_v18, %v1165_v10 }
 0x1ae   :  { %v1168_v41 = vadd.f32 %v1133_v29, %v1078_v11  ;;  %v1143_v29 = vpop.permute.xlu1 %1142  ;;  %v7384_v35 = vsel %vm1183_vm5, %v1166_v25, %v1200_v40 }
 0x1af   :  { %v1201_v58 = vmul.f32 %v7370_v18, %v1167_v33  ;;  %vm1184_vm2 = vcmp.gt.f32.partialorder %v1167_v33, 0.0  ;;  %v7382_v12 = vsel %vm1182_vm4, %v1165_v10, %v1199_v50  ;;  %9048 = vst [vmem:[#allocation82_spill] sm:$0xff] %v7384_v35  ;;  %v1274_v25 = vmul.f32 %v7384_v35, %v7384_v35 }
 0x1b0   :  { %v1082_v62 = vpop.f32.mrb[4].mxu0  ;;  %v1202_v14 = vmul.f32 %v7370_v18, %v1168_v41  ;;  %vm1185_vm3 = vcmp.gt.f32.partialorder %v1168_v41, 0.0  ;;  %9047 = vst [vmem:[#allocation81_spill] sm:$0xff] %v7382_v12 }
 0x1b1   :  { %v1169_v52 = vadd.f32 %v1138_v2, %v1082_v62  ;;  %v1084_v6 = vpop.f32.mrb[5].mxu0  ;;  %v7377_v17 = vsel %vm1184_vm2, %v1167_v33, %v1201_v58 }
 0x1b2   :  { %v1170_v42 = vadd.f32 %v1138_v2, %v1084_v6  ;;  %9045 = vst [vmem:[#allocation79_spill] sm:$0xff] %v7377_v17  ;;  %v7380_v62 = vsel %vm1185_vm3, %v1168_v41, %v1202_v14  ;;  %v1275_v6 = vmul.f32 %v7377_v17, %v7377_v17  ;;  %v1148_v14 = vpop.permute.xlu0 %1147  ;;  %v1247_v10 = vadd.f32 %v7377_v17, %v7382_v12  ;;  %v1153_v17 = vpop.permute.xlu1 %1152 }
 0x1b3   :  { %v1203_v60 = vmul.f32 %v7370_v18, %v1169_v52  ;;  %vm1186_vm6 = vcmp.gt.f32.partialorder %v1169_v52, 0.0  ;;  %9046 = vst [vmem:[#allocation80_spill] sm:$0xff] %v7380_v62  ;;  %v1276_v41 = vmul.f32 %v7380_v62, %v7380_v62  ;;  %vm1315_vm3 = vcmask 1040384  }
 0x1b4   :  { %vm1187_vm7 = vcmp.gt.f32.partialorder %v1170_v42, 0.0  ;;  %v1204_v11 = vmul.f32 %v7370_v18, %v1170_v42  ;;  %v1088_v9 = vpop.f32.mrb[6].mxu0 }
 0x1b5   :  { %v1171_v28 = vadd.f32 %v1143_v29, %v1088_v9  ;;  %v1090_v38 = vpop.f32.mrb[7].mxu0  ;;  %v7388_v4 = vsel %vm1186_vm6, %v1169_v52, %v1203_v60 }
 0x1b6   :  { %v1172_v2 = vadd.f32 %v1143_v29, %v1090_v38  ;;  %v7390_v58 = vsel %vm1187_vm7, %v1170_v42, %v1204_v11  ;;  %v1273_v38 = vmul.f32 %v7382_v12, %v7382_v12  ;;  %v1260_v42 = vadd.f32 %v7380_v62, %v7384_v35 }
 0x1b7   :  { %9049 = vst [vmem:[#allocation83_spill] sm:$0xff] %v7390_v58  ;;  %v1205_v33 = vmul.f32 %v7370_v18, %v1171_v28  ;;  %vm1188_vm8 = vcmp.gt.f32.partialorder %v1171_v28, 0.0  ;;  %v1277_v60 = vmul.f32 %v7388_v4, %v7388_v4  ;;  %v1278_v29 = vmul.f32 %v7390_v58, %v7390_v58 }
 0x1b8   :  { %vm1189_vm9 = vcmp.gt.f32.partialorder %v1172_v2, 0.0  ;;  %v1206_v9 = vmul.f32 %v7370_v18, %v1172_v2  ;;  %v1094_v40 = vpop.f32.mrb[8].mxu0  ;;  %v1302_v12 = vadd.f32 %v1276_v41, %v1274_v25  ;;  %v1248_v55 = vadd.f32 %v1247_v10, %v7388_v4 }
 0x1b9   :  { %v1173_v52 = vadd.f32 %v1148_v14, %v1094_v40  ;;  %v1096_v50 = vpop.f32.mrb[9].mxu0  ;;  %v7408_v34 = vsel %vm1188_vm8, %v1171_v28, %v1205_v33  ;;  %v1289_v40 = vadd.f32 %v1275_v6, %v1273_v38  ;;  %v1261_v44 = vadd.f32 %v1260_v42, %v7390_v58 }
 0x1ba   :  { %v1174_v11 = vadd.f32 %v1148_v14, %v1096_v50  ;;  %9050 = vst [vmem:[#allocation84_spill] sm:$0xff] %v7408_v34  ;;  %v7410_v16 = vsel %vm1189_vm9, %v1172_v2, %v1206_v9  ;;  %v1279_v2 = vmul.f32 %v7408_v34, %v7408_v34  ;;  %v1303_v38 = vadd.f32 %v1302_v12, %v1278_v29 }
 0x1bb   :  { %9051 = vst [vmem:[#allocation85_spill] sm:$0xff] %v7410_v16  ;;  %vm1190_vm10 = vcmp.gt.f32.partialorder %v1173_v52, 0.0  ;;  %v1207_v31 = vmul.f32 %v7370_v18, %v1173_v52  ;;  %v1280_v14 = vmul.f32 %v7410_v16, %v7410_v16  ;;  %v1290_v9 = vadd.f32 %v1289_v40, %v1277_v60 }
 0x1bc   :  { %vm1191_vm11 = vcmp.gt.f32.partialorder %v1174_v11, 0.0  ;;  %v1208_v62 = vmul.f32 %v7370_v18, %v1174_v11  ;;  %v1100_v35 = vpop.f32.mrb[10].mxu0  ;;  %v1249_v10 = vadd.f32 %v1248_v55, %v7408_v34  ;;  %v1262_v42 = vadd.f32 %v1261_v44, %v7410_v16  ;;  %v1163_v44 = vpop.permute.xlu1 %1162 }
 0x1bd   :  { %v7416_v39 = vsel %vm1190_vm10, %v1173_v52, %v1207_v31  ;;  %v1175_v28 = vadd.f32 %v1153_v17, %v1100_v35  ;;  %v1102_v33 = vpop.f32.mrb[11].mxu0  ;;  %v1158_v31 = vpop.permute.xlu0 %1157  ;;  %v1291_v29 = vadd.f32 %v1290_v9, %v1279_v2 }
 0x1be   :  { %v7422_v6 = vsel %vm1191_vm11, %v1174_v11, %v1208_v62  ;;  %v1176_v41 = vadd.f32 %v1153_v17, %v1102_v33  ;;  %v1281_v35 = vmul.f32 %v7416_v39, %v7416_v39  ;;  %v1304_v11 = vadd.f32 %v1303_v38, %v1280_v14 }
 0x1bf   :  { %9052 = vst [vmem:[#allocation86_spill] sm:$0xff] %v7422_v6  ;;  %vm1192_vm12 = vcmp.gt.f32.partialorder %v1175_v28, 0.0  ;;  %v1209_v25 = vmul.f32 %v7370_v18, %v1175_v28  ;;  %v1282_v17 = vmul.f32 %v7422_v6, %v7422_v6  ;;  %v1250_v33 = vadd.f32 %v1249_v10, %v7416_v39 }
 0x1c0   :  { %vm1193_vm13 = vcmp.gt.f32.partialorder %v1176_v41, 0.0  ;;  %v1210_v52 = vmul.f32 %v7370_v18, %v1176_v41  ;;  %v1106_v50 = vpop.f32.mrb[12].mxu0  ;;  %v1263_v58 = vadd.f32 %v1262_v42, %v7422_v6  ;;  %v1292_v16 = vadd.f32 %v1291_v29, %v1281_v35 }
 0x1c1   :  { %v7432_v62 = vsel %vm1192_vm12, %v1175_v28, %v1209_v25  ;;  %v1177_v12 = vadd.f32 %v1158_v31, %v1106_v50  ;;  %v1108_v60 = vpop.f32.mrb[13].mxu0  ;;  %v1305_v14 = vadd.f32 %v1304_v11, %v1282_v17 }
 0x1c2   :  { %9053 = vst [vmem:[#allocation87_spill] sm:$0xff] %v7432_v62  ;;  %v7434_v55 = vsel %vm1193_vm13, %v1176_v41, %v1210_v52  ;;  %v1178_v40 = vadd.f32 %v1158_v31, %v1108_v60  ;;  %v1283_v28 = vmul.f32 %v7432_v62, %v7432_v62  ;;  %v1251_v31 = vadd.f32 %v1250_v33, %v7432_v62 }
 0x1c3   :  { %9054 = vst [vmem:[#allocation88_spill] sm:$0xff] %v7434_v55  ;;  %vm1194_vm14 = vcmp.gt.f32.partialorder %v1177_v12, 0.0  ;;  %v1211_v34 = vmul.f32 %v7370_v18, %v1177_v12  ;;  %v1284_v41 = vmul.f32 %v7434_v55, %v7434_v55  ;;  %v1264_v42 = vadd.f32 %v1263_v58, %v7434_v55 }
 0x1c4   :  { %vm1195_vm15 = vcmp.gt.f32.partialorder %v1178_v40, 0.0  ;;  %v1212_v25 = vmul.f32 %v7370_v18, %v1178_v40  ;;  %v1112_v2 = vpop.f32.mrb[14].mxu0 }
 0x1c5   :  { %v7444_v9 = vsel %vm1194_vm14, %v1177_v12, %v1211_v34  ;;  %v1179_v38 = vadd.f32 %v1163_v44, %v1112_v2  ;;  %v1114_v10 = vpop.f32.mrb[15].mxu0  ;;  %v1293_v34 = vadd.f32 %v1292_v16, %v1283_v28  ;;  %v1306_v11 = vadd.f32 %v1305_v14, %v1284_v41 }
 0x1c6   :  { %9055 = vst [vmem:[#allocation89_spill] sm:$0xff] %v7444_v9  ;;  %v1285_v35 = vmul.f32 %v7444_v9, %v7444_v9  ;;  %v7449_v52 = vsel %vm1195_vm15, %v1178_v40, %v1212_v25  ;;  %v1180_v50 = vadd.f32 %v1163_v44, %v1114_v10  ;;  %v1252_v12 = vadd.f32 %v1251_v31, %v7444_v9 }
 0x1c7   :  { %9056 = vst [vmem:[#allocation90_spill] sm:$0xff] %v7449_v52  ;;  %v1286_v17 = vmul.f32 %v7449_v52, %v7449_v52  ;;  %vm1196_vm1 = vcmp.gt.f32.partialorder %v1179_v38, 0.0  ;;  %v1213_v60 = vmul.f32 %v7370_v18, %v1179_v38  ;;  %v1265_v33 = vadd.f32 %v1264_v42, %v7449_v52 }
 0x1c8   :  { %vm1197_vm2 = vcmp.gt.f32.partialorder %v1180_v50, 0.0  ;;  %v1214_v29 = vmul.f32 %v7370_v18, %v1180_v50  ;;  %v1294_v44 = vadd.f32 %v1293_v34, %v1285_v35 }
 0x1c9   :  { %v7458_v40 = vsel %vm1196_vm1, %v1179_v38, %v1213_v60  ;;  %v1307_v10 = vadd.f32 %v1306_v11, %v1286_v17 }
 0x1ca   :  { %v1253_v58 = vadd.f32 %v1252_v12, %v7458_v40  ;;  %v1287_v25 = vmul.f32 %v7458_v40, %v7458_v40  ;;  %v7463_v2 = vsel %vm1197_vm2, %v1180_v50, %v1214_v29 }
 0x1cb   :  { %9057 = vst [vmem:[#allocation91_spill] sm:$0xff] %v7463_v2  ;;  %v1266_v16 = vadd.f32 %v1265_v33, %v7463_v2  ;;  %v1288_v28 = vmul.f32 %v7463_v2, %v7463_v2 }
 0x1cc   :  { %v1254_v18 = vrot.slane %v1253_v58, 4  ;;  %v1295_v14 = vadd.f32 %v1294_v44, %v1287_v25 }
 0x1cd   :  { %v1267_v41 = vrot.slane %v1266_v16, 4  ;;  %v1308_v31 = vadd.f32 %v1307_v10, %v1288_v28 }
 0x1ce   :  { %v1255_v38 = vadd.f32 %v1254_v18, %v1253_v58  ;;  %v1296_v42 = vrot.slane %v1295_v14, 4 }
 0x1cf   :  { %v1268_v35 = vadd.f32 %v1267_v41, %v1266_v16  ;;  %v1309_v60 = vrot.slane %v1308_v31, 4 }
 0x1d0   :  { %v1256_v34 = vrot.slane %v1255_v38, 2  ;;  %v1297_v12 = vadd.f32 %v1296_v42, %v1295_v14  ;;  %v9059_v42 = vld [vmem:[#allocation19_spill] sm:$0xff] }
 0x1d1   :  { %v1269_v55 = vrot.slane %v1268_v35, 2  ;;  %v1310_v52 = vadd.f32 %v1309_v60, %v1308_v31  ;;  %v9061_v60 = vld [vmem:[#allocation21_spill] sm:$0xff] }
 0x1d2   :  { %v1257_v50 = vadd.f32 %v1256_v34, %v1255_v38  ;;  %v1298_v29 = vrot.slane %v1297_v12, 2  ;;  %v9062_v34 = vld [vmem:[#allocation22_spill] sm:$0xff] }
 0x1d3   :  { %v1270_v17 = vadd.f32 %v1269_v55, %v1268_v35  ;;  %v1311_v11 = vrot.slane %v1310_v52, 2  ;;  %v9060_v35 = vld [vmem:[#allocation20_spill] sm:$0xff] }
 0x1d4   :  { %v1258_v33 = vrot.slane %v1257_v50, 1  ;;  %v1299_v6 = vadd.f32 %v1298_v29, %v1297_v12  ;;  %v9063_v12 = vld [vmem:[#allocation23_spill] sm:$0xff]  ;;  %v9065_v29 = vld [vmem:[#allocation25_spill] sm:$0xff] }
 0x1d5   :  { %v1271_v9 = vrot.slane %v1270_v17, 1  ;;  %v1312_v2 = vadd.f32 %v1311_v11, %v1310_v52  ;;  %v9067_v11 = vld [vmem:[#allocation27_spill] sm:$0xff] }
 0x1d6   :  { %v1300_v62 = vrot.slane %v1299_v6, 1  ;;  %v1259_v25 = vadd.f32 %v1258_v33, %v1257_v50  ;;  %v9064_v50 = vld [vmem:[#allocation24_spill] sm:$0xff] }
 0x1d7   :  { %v1313_v44 = vrot.slane %v1312_v2, 1  ;;  %v1272_v10 = vadd.f32 %v1271_v9, %v1270_v17  ;;  %v9066_v17 = vld [vmem:[#allocation26_spill] sm:$0xff]  ;;  %v9068_v33 = vld [vmem:[#allocation28_spill] sm:$0xff] }
 0x1d8   :  { %v1301_v58 = vadd.f32 %v1300_v62, %v1299_v6 }
 0x1d9   :  { %v1314_v16 = vadd.f32 %v1313_v44, %v1312_v2  ;;  %v9069_v44 = vld [vmem:[#allocation29_spill] sm:$0xff] }
 0x1da   :  { %v1316_v28 = vsel %vm1315_vm3, %v1259_v25, %v1301_v58  ;;  %v9070_v25 = vld [vmem:[#allocation30_spill] sm:$0xff] }
 0x1db   :  { %v1317_v18 = vsel %vm1315_vm3, %v1272_v10, %v1314_v16  ;;  %v7470_v14 = vand.u32 4294901760, %v1316_v28  ;;  %v9071_v58 = vand.u32 4294901760, %v9070_v25  ;;  %v9072_v10 = vld [vmem:[#allocation31_spill] sm:$0xff] }
 0x1dc   :  { %v7472_v41 = vand.u32 4294901760, %v1317_v18  ;;  %v9073_v16 = vand.u32 4294901760, %v9072_v10 }
 0x1dd   :  { %v7475_v55 = vsub.f32 %v1316_v28, %v7470_v14 }
 0x1de   :  { %v1415_v52 = vsub.f32 %v1317_v18, %v7472_v41  ;;  %v7535_v28 = vpack.c.bf16 %v9073_v16, %v9071_v58  ;;  %v9075_v18 = vld [vmem:[#allocation34_spill] sm:$0xff]  ;;  %v9087_v58 = vld [vmem:[#allocation37_spill] sm:$0xff] }
 0x1df   :  { %v8865_v31 = vand.u32 4294901760, %v7475_v55  ;;  %v9086_v25 = vand.u32 4294901760, %v7475_v55  ;;  %v9088_v10 = vand.u32 4294901760, %v9087_v58  ;;  %v9089_v16 = vld [vmem:[#allocation38_spill] sm:$0xff]  ;;  %v9102_v58 = vld [vmem:[#allocation44_spill] sm:$0xff] }
 0x1e0   :  { %v1416_v38 = vand.u32 4294901760, %v1415_v52  ;;  %9074 = vst [vmem:[#allocation30_spill] sm:$0xff] %v7535_v28 }
 0x1e1   :  { %v1423_v6 = vsub.f32 %v7475_v55, %v8865_v31 }
 0x1e2   :  { %v1417_v62 = vsub.f32 %v1415_v52, %v1416_v38 }
 0x1e3   :  { %v1424_v2 = vand.u32 4294901760, %v1423_v6  ;;  %v9078_v6 = vld [vmem:[#allocation33_spill] sm:$0xff] }
 0x1e4   :  { %v1418_v9 = vand.u32 4294901760, %v1417_v62  ;;  %v9079_v62 = vand.u32 4294901760, %v9078_v6  ;;  %v9092_v6 = vld [vmem:[#allocation40_spill] sm:$0xff] }
 0x1e6   :  { %1419 = vmatprep.mubr.f32.mxu1 %v1418_v9 }
 0x1e7   :  { %1425 = vmatmul.mubr.f32.vlgmr.msra.gmra.mrb[0].mxu1 %v1424_v2  ;;  %v9081_v2 = vld [vmem:[#allocation35_spill] sm:$0xff] }
 0x1e8   :  { %5592 = vmatpush3.bf16.msra.mxu1 %v7043_v13  ;;  %1655 = vmatprep.mubr.f32.mxu1 %v7472_v41  ;;  %v9082_v31 = vand.u32 4294901760, %v9081_v2 }
 0x1e9   :  { %5594 = vmatprep.subr.bf16.mxu1 %v7081_v8 }
 0x1ec   :  { %5596 = vmatpush3.bf16.msra.mxu1 %v7092_v37 }
 0x1ed   :  { %5598 = vmatprep.subr.bf16.mxu1 %v7129_v54 }
 0x1f0   :  { %5600 = vmatpush3.bf16.msra.mxu1 %v7140_v32 }
 0x1f1   :  { %5602 = vmatprep.subr.bf16.mxu1 %v7168_v51 }
 0x1f4   :  { %5604 = vmatpush3.bf16.msra.mxu1 %v7181_v56 }
 0x1f5   :  { %5606 = vmatprep.subr.bf16.mxu1 %v7203_v1 }
 0x1f8   :  { %5608 = vmatpush3.bf16.msra.mxu1 %v7229_v63 }
 0x1f9   :  { %5610 = vmatprep.subr.bf16.mxu1 %v7244_v0 }
 0x1fc   :  { %5612 = vmatpush3.bf16.msra.mxu1 %v7263_v15 }
 0x1fd   :  { %5614 = vmatprep.subr.bf16.mxu1 %v7284_v45 }
 0x200   :  { %5616 = vmatpush3.bf16.msra.mxu1 %v7290_v7 }
 0x201   :  { %5618 = vmatprep.subr.bf16.mxu1 %v7298_v49 }
 0x204   :  { %5620 = vmatpush3.bf16.msra.mxu1 %v7304_v59 }
 0x205   :  { %5622 = vmatprep.subr.bf16.mxu1 %v7302_v57  ;;  %v9058_v57 = vld [vmem:[#allocation18_spill] sm:$0xff] }
 0x207   :  { %1657 = vmatmul.mubr.f32.vlgmr.msra.gmra.mrb[2].mxu1 %v7470_v14 }
 0x208   :  { %5624 = vmatpush3.bf16.msra.mxu1 %v7308_v3  ;;  %1792 = vmatprep.mubr.f32.mxu1 %v1415_v52  ;;  %v9076_v52 = vld [vmem:[#allocation32_spill] sm:$0xff] }
 0x209   :  { %5626 = vmatprep.subr.bf16.mxu1 %v7313_v43  ;;  %v9171_v43 = vld [vmem:[#allocation84_spill] sm:$0xff] }
 0x20c   :  { %5628 = vmatpush3.bf16.msra.mxu1 %v7317_v5 }
 0x20d   :  { %5630 = vmatprep.subr.bf16.mxu1 %v7321_v61  ;;  %v9170_v61 = vld [vmem:[#allocation79_spill] sm:$0xff] }
 0x210   :  { %5632 = vmatpush3.bf16.msra.mxu1 %v7325_v30 }
 0x211   :  { %5634 = vmatprep.subr.bf16.mxu1 %v7329_v27 }
 0x214   :  { %5636 = vmatpush3.bf16.msra.mxu1 %v7333_v23 }
 0x215   :  { %5638 = vmatprep.subr.bf16.mxu1 %v7337_v19 }
 0x218   :  { %5640 = vmatpush3.bf16.msra.mxu1 %v7341_v53 }
 0x219   :  { %5642 = vmatprep.subr.bf16.mxu1 %v7345_v20 }
 0x21c   :  { %5644 = vmatpush3.bf16.msra.mxu1 %v7349_v21 }
 0x21d   :  { %5646 = vmatprep.subr.bf16.mxu1 %v7353_v47 }
 0x220   :  { %5648 = vmatpush3.bf16.msra.mxu1 %v7357_v46 }
 0x221   :  { %5650 = vmatprep.subr.bf16.mxu1 %v7361_v26 }
 0x224   :  { %5652 = vmatpush3.bf16.msra.mxu1 %v7365_v48  ;;  %v9083_v48 = vld [vmem:[#allocation36_spill] sm:$0xff] }
 0x225   :  { %5654 = vmatprep.subr.bf16.mxu1 %v6689_v22  ;;  %v9084_v26 = vand.u32 4294901760, %v9083_v48  ;;  %v9094_v48 = vld [vmem:[#allocation41_spill] sm:$0xff] }
 0x227   :  { %1795 = vmatmul.mubr.f32.vlgmr.msra.gmra.mrb[4].mxu1 %v7475_v55  ;;  %v7549_v46 = vpack.c.bf16 %v9084_v26, %v9082_v31  ;;  %v9095_v26 = vand.u32 4294901760, %v9094_v48  ;;  %v9097_v55 = vld [vmem:[#allocation42_spill] sm:$0xff]  ;;  %v9109_v48 = vld [vmem:[#allocation47_spill] sm:$0xff] }
 0x228   :  { %5656 = vmatpush3.bf16.msra.mxu1 %v6695_v24  ;;  %1899 = vmatprep.mubr.f32.mxu1 %v1416_v38  ;;  %v9077_v38 = vand.u32 4294901760, %v9076_v52  ;;  %v9090_v52 = vand.u32 4294901760, %v9089_v16  ;;  %v9098_v2 = vand.u32 4294901760, %v9097_v55  ;;  %v9104_v16 = vld [vmem:[#allocation45_spill] sm:$0xff] }
 0x229   :  { %5658 = vmatprep.subr.bf16.mxu1 %v6729_v36  ;;  %9085 = vst [vmem:[#allocation32_spill] sm:$0xff] %v7549_v46 }
 0x22a   :  { %v7542_v9 = vpack.c.bf16 %v9079_v62, %v9077_v38  ;;  %v7559_v38 = vpack.c.bf16 %v9090_v52, %v9088_v10  ;;  %v9093_v62 = vand.u32 4294901760, %v9092_v6  ;;  %v9103_v10 = vand.u32 4294901760, %v9102_v58  ;;  %v9107_v6 = vld [vmem:[#allocation46_spill] sm:$0xff] }
 0x22b   :  { %v9105_v52 = vand.u32 4294901760, %v9104_v16  ;;  %v9117_v58 = vld [vmem:[#allocation50_spill] sm:$0xff]  ;;  %v9119_v16 = vld [vmem:[#allocation51_spill] sm:$0xff] }
 0x22c   :  { %5660 = vmatpush3.bf16.msra.mxu1 %v9058_v57  ;;  %9080 = vst [vmem:[#allocation31_spill] sm:$0xff] %v7542_v9  ;;  %9091 = vst [vmem:[#allocation33_spill] sm:$0xff] %v7559_v38  ;;  %v7566_v31 = vpack.c.bf16 %v9095_v26, %v9093_v62  ;;  %v9108_v62 = vand.u32 4294901760, %v9107_v6  ;;  %v9110_v26 = vand.u32 4294901760, %v9109_v48  ;;  %v9122_v6 = vld [vmem:[#allocation52_spill] sm:$0xff]  ;;  %v9124_v48 = vld [vmem:[#allocation53_spill] sm:$0xff] }
 0x22d   :  { %5662 = vmatprep.subr.bf16.mxu1 %v9059_v42 }
 0x22e   :  { %9096 = vst [vmem:[#allocation35_spill] sm:$0xff] %v7566_v31 }
 0x230   :  { %5664 = vmatpush3.bf16.msra.mxu1 %v9060_v35 }
 0x231   :  { %5666 = vmatprep.subr.bf16.mxu1 %v9061_v60 }
 0x234   :  { %5668 = vmatpush3.bf16.msra.mxu1 %v9062_v34 }
 0x235   :  { %5670 = vmatprep.subr.bf16.mxu1 %v9063_v12 }
 0x238   :  { %5672 = vmatpush3.bf16.msra.mxu1 %v9064_v50 }
 0x239   :  { %5674 = vmatprep.subr.bf16.mxu1 %v9065_v29 }
 0x23c   :  { %5676 = vmatpush3.bf16.msra.mxu1 %v9066_v17 }
 0x23d   :  { %5678 = vmatprep.subr.bf16.mxu1 %v9067_v11 }
 0x240   :  { %5680 = vmatpush3.bf16.msra.mxu1 %v9068_v33 }
 0x241   :  { %5682 = vmatprep.subr.bf16.mxu1 %v9069_v44 }
 0x244   :  { %5684 = vmatpush3.bf16.msra.mxu1 %v9075_v18 }
 0x245   :  { %5686 = vmatprep.subr.bf16.mxu1 %v7535_v28 }
 0x247   :  { %1903 = vmatmul.mubr.f32.vlgmr.msra.gmra.mrb[6].mxu1 %v9086_v25  ;;  %v9099_v25 = vld [vmem:[#allocation43_spill] sm:$0xff] }
 0x248   :  { %5688 = vmatpush3.bf16.msra.mxu1 %v7542_v9  ;;  %2069 = vmatprep.mubr.f32.mxu1 %v7472_v41  ;;  %v9100_v9 = vand.u32 4294901760, %v9099_v25 }
 0x249   :  { %5690 = vmatprep.subr.bf16.mxu1 %v7549_v46  ;;  %v7580_v46 = vpack.c.bf16 %v9105_v52, %v9103_v10  ;;  %v9118_v10 = vand.u32 4294901760, %v9117_v58  ;;  %v9120_v52 = vand.u32 4294901760, %v9119_v16  ;;  %v9132_v58 = vld [vmem:[#allocation56_spill] sm:$0xff]  ;;  %v9134_v16 = vld [vmem:[#allocation57_spill] sm:$0xff] }
 0x24a   :  { %v7573_v28 = vpack.c.bf16 %v9100_v9, %v9098_v2  ;;  %v9112_v9 = vld [vmem:[#allocation48_spill] sm:$0xff]  ;;  %v9114_v2 = vld [vmem:[#allocation49_spill] sm:$0xff] }
 0x24b   :  { %9106 = vst [vmem:[#allocation37_spill] sm:$0xff] %v7580_v46  ;;  %v9113_v55 = vand.u32 4294901760, %v9112_v9  ;;  %v9115_v25 = vand.u32 4294901760, %v9114_v2  ;;  %v9127_v9 = vld [vmem:[#allocation54_spill] sm:$0xff]  ;;  %v9129_v2 = vld [vmem:[#allocation55_spill] sm:$0xff] }
 0x24c   :  { %5692 = vmatpush3.bf16.msra.mxu1 %v7559_v38  ;;  %9101 = vst [vmem:[#allocation36_spill] sm:$0xff] %v7573_v28  ;;  %v7587_v38 = vpack.c.bf16 %v9110_v26, %v9108_v62  ;;  %v9123_v62 = vand.u32 4294901760, %v9122_v6  ;;  %v9125_v26 = vand.u32 4294901760, %v9124_v48  ;;  %v9137_v6 = vld [vmem:[#allocation58_spill] sm:$0xff]  ;;  %v9139_v48 = vld [vmem:[#allocation59_spill] sm:$0xff] }
 0x24d   :  { %5694 = vmatprep.subr.bf16.mxu1 %v7566_v31  ;;  %v7594_v31 = vpack.c.bf16 %v9115_v25, %v9113_v55  ;;  %v9128_v55 = vand.u32 4294901760, %v9127_v9  ;;  %v9130_v25 = vand.u32 4294901760, %v9129_v2  ;;  %v9142_v9 = vld [vmem:[#allocation60_spill] sm:$0xff]  ;;  %v9144_v2 = vld [vmem:[#allocation61_spill] sm:$0xff] }
 0x24e   :  { %9111 = vst [vmem:[#allocation38_spill] sm:$0xff] %v7587_v38 }
 0x24f   :  { %9116 = vst [vmem:[#allocation40_spill] sm:$0xff] %v7594_v31 }
 0x250   :  { %5696 = vmatpush3.bf16.msra.mxu1 %v7573_v28  ;;  %v7601_v28 = vpack.c.bf16 %v9120_v52, %v9118_v10  ;;  %v9133_v10 = vand.u32 4294901760, %v9132_v58  ;;  %v9135_v52 = vand.u32 4294901760, %v9134_v16  ;;  %v9147_v58 = vld [vmem:[#allocation62_spill] sm:$0xff]  ;;  %v9149_v16 = vld [vmem:[#allocation63_spill] sm:$0xff] }
 0x251   :  { %5698 = vmatprep.subr.bf16.mxu1 %v7580_v46  ;;  %v7608_v46 = vpack.c.bf16 %v9125_v26, %v9123_v62  ;;  %v9138_v62 = vand.u32 4294901760, %v9137_v6  ;;  %v9140_v26 = vand.u32 4294901760, %v9139_v48  ;;  %v9153_v6 = vld [vmem:[#allocation8_spill] sm:$0xff]  ;;  %v9155_v48 = vld [vmem:[#allocation9_spill] sm:$0xff] }
 0x252   :  { %9121 = vst [vmem:[#allocation41_spill] sm:$0xff] %v7601_v28 }
 0x253   :  { %9126 = vst [vmem:[#allocation42_spill] sm:$0xff] %v7608_v46 }
 0x254   :  { %5700 = vmatpush3.bf16.msra.mxu1 %v7587_v38  ;;  %v7615_v38 = vpack.c.bf16 %v9130_v25, %v9128_v55  ;;  %v9143_v55 = vand.u32 4294901760, %v9142_v9  ;;  %v9145_v25 = vand.u32 4294901760, %v9144_v2 }
 0x255   :  { %5702 = vmatprep.subr.bf16.mxu1 %v7594_v31  ;;  %v7622_v31 = vpack.c.bf16 %v9135_v52, %v9133_v10  ;;  %v9148_v10 = vand.u32 4294901760, %v9147_v58  ;;  %v9150_v52 = vand.u32 4294901760, %v9149_v16 }
 0x256   :  { %9131 = vst [vmem:[#allocation43_spill] sm:$0xff] %v7615_v38 }
 0x257   :  { %9136 = vst [vmem:[#allocation44_spill] sm:$0xff] %v7622_v31 }
 0x258   :  { %5704 = vmatpush3.bf16.msra.mxu1 %v7601_v28  ;;  %v7629_v28 = vpack.c.bf16 %v9140_v26, %v9138_v62  ;;  %v9154_v62 = vmov 0.0  }
 0x259   :  { %5706 = vmatprep.subr.bf16.mxu1 %v7608_v46  ;;  %v7636_v46 = vpack.c.bf16 %v9145_v25, %v9143_v55 }
 0x25a   :  { %9141 = vst [vmem:[#allocation45_spill] sm:$0xff] %v7629_v28 }
 0x25b   :  { %9146 = vst [vmem:[#allocation46_spill] sm:$0xff] %v7636_v46 }
 0x25c   :  { %5708 = vmatpush3.bf16.msra.mxu1 %v7615_v38  ;;  %v7643_v38 = vpack.c.bf16 %v9150_v52, %v9148_v10 }
 0x25d   :  { %5710 = vmatprep.subr.bf16.mxu1 %v7622_v31 }
 0x25e   :  { %9151 = vst [vmem:[#allocation47_spill] sm:$0xff] %v7643_v38 }
 0x260   :  { %5712 = vmatpush3.bf16.msra.mxu1 %v7629_v28 }
 0x261   :  { %5714 = vmatprep.subr.bf16.mxu1 %v7636_v46 }
 0x264   :  { %5716 = vmatpush3.bf16.msra.mxu1 %v7643_v38 }
 0x265   :  { %5718 = vmatprep.subr.bf16.mxu1 %v6689_v22 }
 0x267   :  { %2071 = vmatmul.mubr.f32.vlgmr.msra.gmra.mrb[8].mxu1 %v7470_v14 }
 0x268   :  { %5720 = vmatpush3.bf16.msra.mxu1 %v6695_v24  ;;  %2173 = vmatprep.mubr.f32.mxu1 %v7472_v41  ;;  %v9152_v41 = vld [vmem:[#allocation7_spill] sm:$0xff] }
 0x269   :  { %5722 = vmatprep.subr.bf16.mxu1 %v6729_v36 }
 0x26c   :  { %5724 = vmatpush3.bf16.msra.mxu1 %v9058_v57 }
 0x26d   :  { %5726 = vmatprep.subr.bf16.mxu1 %v9059_v42  ;;  %v9191_v42 = vlaneseq }
 0x26f   :  { %v8127_v57 = vand.u32 127, %v9191_v42 }
 0x270   :  { %5728 = vmatpush3.bf16.msra.mxu1 %v9060_v35 }
 0x271   :  { %5730 = vmatprep.subr.bf16.mxu1 %v9061_v60  ;;  %vm2878_vm4 = vcmp.lt.s32.totalorder %v8127_v57, 1  ;;  %vm2962_vm5 = vcmp.lt.s32.totalorder %v8127_v57, 127 }
 0x274   :  { %5732 = vmatpush3.bf16.msra.mxu1 %v9062_v34 }
 0x275   :  { %5734 = vmatprep.subr.bf16.mxu1 %v9063_v12 }
 0x278   :  { %5736 = vmatpush3.bf16.msra.mxu1 %v9064_v50 }
 0x279   :  { %5738 = vmatprep.subr.bf16.mxu1 %v9065_v29  ;;  %v9169_v29 = vld [vmem:[#allocation81_spill] sm:$0xff] }
 0x27c   :  { %5740 = vmatpush3.bf16.msra.mxu1 %v9066_v17 }
 0x27d   :  { %5742 = vmatprep.subr.bf16.mxu1 %v9067_v11 }
 0x280   :  { %5744 = vmatpush3.bf16.msra.mxu1 %v9068_v33 }
 0x281   :  { %5746 = vmatprep.subr.bf16.mxu1 %v9069_v44 }
 0x284   :  { %5748 = vmatpush3.bf16.msra.mxu1 %v9075_v18  ;;  %v6197_v18 = vmov 2  }
 0x285   :  { %5750 = vmatprep.subr.bf16.mxu1 %v9152_v41  ;;  %6143 = vset.pattern.permute.xlu0 %v6197_v18 }
 0x287   :  { %2175 = vmatmul.mubr.f32.vlgmr.msra.gmra.mrb[10].mxu1 %v7470_v14 }
 0x288   :  { %5752 = vmatpush1.bf16.msra.mxu1 %v9153_v6  ;;  %2261 = vmatprep.mubr.f32.mxu1 %v9154_v62 }
 0x289   :  { %5754 = vmatprep.subr.bf16.mxu1 %v9155_v48  ;;  %v6162_v48 = vld [vmem:[%s8704_s10 + $0x8] sm:$0xff] }
 0x28a   :  { %3146 = vperm.xlu0 %6143, %v6162_v48  }
 0x2ba   :  { %v5137_v26 = vpop.f32.mrb[0].mxu1 }
 0x2bb   :  { %v5138_v9 = vpop.f32.mrb[1].mxu1 }
 0x2bc   :  { %v5139_v55 = vadd.f32 %v5138_v9, %v5137_v26  ;;  %v7677_v26 = vld [vmem:[%s8704_s10 + $0x18] sm:$0xff]  ;;  %v8887_v9 = vmov 1  }
 0x2bd   :  { %6140 = vset.pattern.permute.xlu1 %v8887_v9  ;;  %3154 = vperm.xlu0 %6143, %v7677_v26  }
 0x2be   :  { %3082 = vperm.xlu1 %6140, %v6162_v48  }
 0x2c1   :  { %6147 = vset.pattern.permute.xlu0 %v8887_v9 }
 0x2da   :  { %v5172_v2 = vpop.f32.mrb[2].mxu1 }
 0x2db   :  { %v5173_v25 = vpop.f32.mrb[3].mxu1 }
 0x2dc   :  { %v5174_v58 = vadd.f32 %v5173_v25, %v5172_v2 }
 0x2de   :  { %v1659_v10 = vadd.f32 %v5174_v58, %v5139_v55  ;;  %v1231_v58 = vld [vmem:[%s8702_s8] sm:$0xff] }
 0x2fa   :  { %v5207_v16 = vpop.f32.mrb[4].mxu1 }
 0x2fb   :  { %v5208_v52 = vpop.f32.mrb[5].mxu1 }
 0x2fc   :  { %v5209_v38 = vadd.f32 %v5208_v52, %v5207_v16  ;;  %v3017_v16 = vld [vmem:[%s8704_s10 + $0x20] sm:$0xff] }
 0x2fd   :  { %v3205_v52 = vld [vmem:[%s8705_s11] sm:$0xff] }
 0x2fe   :  { %v1797_v46 = vadd.f32 %v5209_v38, %v1659_v10  ;;  %v9156_v38 = vmov 0   ;;  %v1233_v10 = vld [vmem:[%s8702_s8 + $0x10] sm:$0xff] }
 0x2ff   :  { %6141 = vset.pattern.permute.xlu1 %v9156_v38 }
 0x31a   :  { %v5242_v28 = vpop.f32.mrb[6].mxu1 }
 0x31b   :  { %v5243_v31 = vpop.f32.mrb[7].mxu1 }
 0x31c   :  { %v5244_v14 = vadd.f32 %v5243_v31, %v5242_v28  ;;  %v3015_v28 = vld [vmem:[%s8704_s10 + $0x10] sm:$0xff] }
 0x31d   :  { %3033 = vperm.xlu1 %6141, %v3015_v28   ;;  %v7693_v31 = vld [vmem:[%s8704_s10 + $0x30] sm:$0xff] }
 0x31e   :  { %v1905_v47 = vadd.f32 %v5244_v14, %v1797_v46  ;;  %v3013_v46 = vld [vmem:[%s8704_s10] sm:$0xff] }
 0x31f   :  { %3078 = vperm.xlu0 %6147, %v3013_v46   ;;  %v1235_v14 = vld [vmem:[%s8702_s8 + $0x20] sm:$0xff] }
 0x321   :  { %6142 = vset.pattern.permute.xlu1 %v6197_v18 }
 0x322   :  { %3142 = vperm.xlu1 %6142, %v3013_v46  }
 0x323   :  { %3086 = vperm.xlu0 %6147, %v3015_v28  }
 0x326   :  { %6144 = vset.pattern.permute.xlu1 %v8887_v9 }
 0x327   :  { %3102 = vperm.xlu0 %6147, %v7693_v31   ;;  %3090 = vperm.xlu1 %6144, %v7677_v26  }
 0x32b   :  { %6152 = vset.pattern.permute.xlu0 %v9156_v38  ;;  %6145 = vset.pattern.permute.xlu1 %v6197_v18 }
 0x32c   :  { %2710 = vperm.xlu0 %6152, %v1231_v58   ;;  %3150 = vperm.xlu1 %6145, %v3015_v28   ;;  %v3206_v28 = vld [vmem:[%s8705_s11 + $0x8] sm:$0xff]  ;;  %v1238_v58 = vld [vmem:[%s8702_s8 + $0x38] sm:$0xff] }
 0x330   :  { %2720 = vperm.xlu0 %6152, %v1233_v10   ;;  %6146 = vset.pattern.permute.xlu1 %v8887_v9 }
 0x331   :  { %3094 = vperm.xlu1 %6146, %v3017_v16  }
 0x335   :  { %6148 = vset.pattern.permute.xlu1 %v9156_v38 }
 0x336   :  { %3215 = vperm.xlu1 %6148, %v3205_v52  }
 0x33a   :  { %v5277_v48 = vpop.f32.mrb[8].mxu1  ;;  %3220 = vperm.xlu1 %6148, %v3206_v28  }
 0x33b   :  { %v5278_v55 = vpop.f32.mrb[9].mxu1 }
 0x33c   :  { %v5279_v2 = vadd.f32 %v5278_v55, %v5277_v48  ;;  %v1236_v48 = vld [vmem:[%s8702_s8 + $0x28] sm:$0xff] }
 0x33d   :  { %v3018_v55 = vld [vmem:[%s8704_s10 + $0x28] sm:$0xff] }
 0x33e   :  { %v2073_v25 = vadd.f32 %v5279_v2, %v1905_v47  ;;  %v1239_v47 = vld [vmem:[%s8703_s9] sm:$0xff]  ;;  %v1237_v2 = vld [vmem:[%s8702_s8 + $0x30] sm:$0xff]  ;;  %6149 = vset.pattern.permute.xlu1 %v8887_v9  ;;  %v3208_v9 = vld [vmem:[%s8705_s11 + $0x18] sm:$0xff] }
 0x33f   :  { %2790 = vperm.xlu0 %6152, %v1239_v47   ;;  %3098 = vperm.xlu1 %6149, %v3018_v55   ;;  %v1245_v47 = vld [vmem:[%s8703_s9 + $0x30] sm:$0xff] }
 0x343   :  { %2730 = vperm.xlu0 %6152, %v1235_v14   ;;  %6150 = vset.pattern.permute.xlu1 %v6197_v18 }
 0x344   :  { %3158 = vperm.xlu1 %6150, %v3017_v16  }
 0x347   :  { %2735 = vperm.xlu0 %6152, %v1236_v48  }
 0x348   :  { %6151 = vset.pattern.permute.xlu1 %v9156_v38 }
 0x349   :  { %3053 = vperm.xlu1 %6151, %v7693_v31  }
 0x34b   :  { %2740 = vperm.xlu0 %6152, %v1237_v2  }
 0x34d   :  { %6153 = vset.pattern.permute.xlu1 %v6197_v18 }
 0x34e   :  { %3162 = vperm.xlu1 %6153, %v3018_v55  }
 0x34f   :  { %2745 = vperm.xlu0 %6152, %v1238_v58  }
 0x352   :  { %6154 = vset.pattern.permute.xlu1 %v9156_v38 }
 0x353   :  { %2820 = vperm.xlu0 %6152, %v1245_v47   ;;  %3230 = vperm.xlu1 %6154, %v3208_v9  }
 0x357   :  { %3023 = vperm.xlu0 %6152, %v3013_v46   ;;  %v3020_v46 = vld [vmem:[%s8704_s10 + $0x38] sm:$0xff] }
 0x35a   :  { %v5312_v10 = vpop.f32.mrb[10].mxu1 }
 0x35b   :  { %v5313_v52 = vpop.f32.mrb[11].mxu1  ;;  %3038 = vperm.xlu0 %6152, %v7677_v26   ;;  %v3207_v26 = vld [vmem:[%s8705_s11 + $0x10] sm:$0xff] }
 0x35c   :  { %v5314_v14 = vadd.f32 %v5313_v52, %v5312_v10  ;;  %v9157_v52 = vmov 1  }
 0x35d   :  { %6155 = vset.pattern.permute.xlu1 %v9157_v52  ;;  %v9163_v52 = vld [vmem:[#allocation39_spill] sm:$0xff] }
 0x35e   :  { %v2177_v28 = vadd.f32 %v5314_v14, %v2073_v25  ;;  %3106 = vperm.xlu1 %6155, %v3020_v46  }
 0x35f   :  { %3043 = vperm.xlu0 %6152, %v3017_v16   ;;  %v3209_v16 = vld [vmem:[%s8705_s11 + $0x20] sm:$0xff] }
 0x360   :  { %v2180_v48 = vmul.f32 0.0009765625, %v2177_v28 }
 0x362   :  { %v2181_v2 = vmul.f32 %v2180_v48, %v2180_v48  ;;  %6156 = vset.pattern.permute.xlu1 %v6197_v18 }
 0x363   :  { %3048 = vperm.xlu0 %6152, %v3018_v55   ;;  %3166 = vperm.xlu1 %6156, %v7693_v31  }
 0x364   :  { %v2183_v58 = vrot.slane %v2181_v2, 7  ;;  %v3210_v2 = vld [vmem:[%s8705_s11 + $0x28] sm:$0xff] }
 0x366   :  { %v2185_v10 = vsub.f32 %v2180_v48, %v2183_v58 }
 0x367   :  { %3225 = vperm.xlu0 %6152, %v3207_v26   ;;  %3170 = vperm.xlu1 %6156, %v3020_v46  }
 0x368   :  { %v2186_v47 = vmax.f32 %v2185_v10, 0.0 }
 0x36a   :  { %v2187_v25 = vadd.f32 1e-05, %v2186_v47  ;;  %v9158_v47 = vld [vmem:[#allocation10_spill] sm:$0xff] }
 0x36b   :  { %3058 = vperm.xlu0 %6152, %v3020_v46   ;;  %6157 = vset.pattern.permute.xlu1 %v9156_v38  ;;  %v9161_v38 = vld [vmem:[#allocation12_spill] sm:$0xff]  ;;  %v9162_v46 = vld [vmem:[#allocation13_spill] sm:$0xff] }
 0x36c   :  { %6158 = vrsqrt.f32 %v2187_v25  ;;  %v9160_v25 = vld [vmem:[#allocation14_spill] sm:$0xff] }
 0x36f   :  { %3235 = vperm.xlu0 %6152, %v3209_v16  }
 0x373   :  { %3240 = vperm.xlu0 %6152, %v3210_v2  }
 0x376   :  { %v6159_v9 = vpop.eup %6158 }
 0x377   :  { %v2189_v14 = vsel %vm1315_vm3, %v2180_v48, %v6159_v9  ;;  %v9159_v48 = vld [vmem:[#allocation11_spill] sm:$0xff] }
 0x378   :  { %v2191_v55 = vsel %vm112_vm0, %v2189_v14, 0 }
 0x379   :  { %v2262_v28 = vand.u32 4294901760, %v2191_v55 }
 0x37b   :  { %v2263_v18 = vsub.f32 %v2191_v55, %v2262_v28 }
 0x37d   :  { %v2264_v31 = vand.u32 4294901760, %v2263_v18 }
 0x37f   :  { %v2265_v58 = vsub.f32 %v2263_v18, %v2264_v31 }
 0x381   :  { %v2266_v10 = vand.u32 4294901760, %v2265_v58 }
 0x383   :  { %2267 = vmatmul.mubr.f32.vlgmr.msra.gmra.mrb[12].mxu1 %v2266_v10 }
 0x384   :  { %5756 = vmatpush1.bf16.msra.mxu1 %v9158_v47  ;;  %2357 = vmatprep.mubr.f32.mxu1 %v9154_v62 }
 0x385   :  { %5758 = vmatprep.subr.bf16.mxu1 %v9159_v48 }
 0x38b   :  { %2359 = vmatmul.mubr.f32.vlgmr.msra.gmra.mrb[12].mxu1 %v2262_v28 }
 0x38c   :  { %5760 = vmatpush1.bf16.msra.mxu1 %v9160_v25  ;;  %2437 = vmatprep.mubr.f32.mxu1 %v9154_v62  ;;  %v8897_v25 = vlaneseq }
 0x38d   :  { %5762 = vmatprep.subr.bf16.mxu1 %v9152_v41 }
 0x38e   :  { %v7858_v47 = vshrl.u32 %v8897_v25, 7 }
 0x393   :  { %2440 = vmatmul.mubr.f32.vlgmr.msra.gmra.mrb[12].mxu1 %v2263_v18 }
 0x394   :  { %5764 = vmatpush1.bf16.msra.mxu1 %v9153_v6  ;;  %2514 = vmatprep.mubr.f32.mxu1 %v9154_v62 }
 0x395   :  { %5766 = vmatprep.subr.bf16.mxu1 %v9161_v38 }
 0x39b   :  { %2518 = vmatmul.mubr.f32.vlgmr.msra.gmra.mrb[12].mxu1 %v2264_v31 }
 0x39c   :  { %5768 = vmatpush1.bf16.msra.mxu1 %v9162_v46  ;;  %2600 = vmatprep.mubr.f32.mxu1 %v9154_v62 }
 0x39d   :  { %5770 = vmatprep.subr.bf16.mxu1 %v9152_v41 }
 0x3a3   :  { %2602 = vmatmul.mubr.f32.vlgmr.msra.gmra.mrb[12].mxu1 %v2262_v28 }
 0x3a4   :  { %5772 = vmatpush1.bf16.msra.mxu1 %v9153_v6  ;;  %2676 = vmatprep.mubr.f32.mxu1 %v9154_v62  ;;  %v7865_v62 = vsub.s32 0, %v7858_v47 }
 0x3a5   :  { %5806 = vmatprep.subr.bf16.mxu1 %v9163_v52 }
 0x3a6   :  { %9166 = vst [vmem:[#allocation50_spill] sm:$0xff] %v7865_v62 }
 0x3ab   :  { %2678 = vmatmul.mubr.f32.vlgmr.msra.gmra.mrb[12].mxu1 %v2262_v28 }
 0x3ac   :  { %5808 = vmatpush3.bf16.msra.mxu1 %v7043_v13  ;;  %v7797_v13 = vpop.permute.xlu1 %2715 }
 0x3ad   :  { %5810 = vmatprep.subr.bf16.mxu1 %v7081_v8 }
 0x3b0   :  { %5812 = vmatpush3.bf16.msra.mxu1 %v7092_v37  ;;  %v7799_v8 = vpop.permute.xlu1 %2725 }
 0x3b1   :  { %5814 = vmatprep.subr.bf16.mxu1 %v7129_v54 }
 0x3b4   :  { %5816 = vmatpush3.bf16.msra.mxu1 %v7140_v32 }
 0x3b5   :  { %5818 = vmatprep.subr.bf16.mxu1 %v7168_v51  ;;  %v7801_v51 = vpop.permute.xlu1 %2795 }
 0x3b8   :  { %5820 = vmatpush3.bf16.msra.mxu1 %v7181_v56 }
 0x3b9   :  { %5822 = vmatprep.subr.bf16.mxu1 %v7203_v1  ;;  %v7803_v37 = vpop.permute.xlu1 %2800 }
 0x3bc   :  { %5824 = vmatpush3.bf16.msra.mxu1 %v7229_v63 }
 0x3bd   :  { %5826 = vmatprep.subr.bf16.mxu1 %v7244_v0  ;;  %v7805_v54 = vpop.permute.xlu1 %2805 }
 0x3c0   :  { %5828 = vmatpush3.bf16.msra.mxu1 %v7263_v15  ;;  %v7819_v15 = vpop.permute.xlu0 %3146 }
 0x3c1   :  { %5830 = vmatprep.subr.bf16.mxu1 %v7284_v45  ;;  %v7807_v32 = vpop.permute.xlu1 %2810 }
 0x3c4   :  { %5832 = vmatpush3.bf16.msra.mxu1 %v7290_v7 }
 0x3c5   :  { %5834 = vmatprep.subr.bf16.mxu1 %v7298_v49  ;;  %v7809_v45 = vpop.permute.xlu1 %2815  ;;  %v7823_v49 = vpop.permute.xlu0 %3154 }
 0x3c8   :  { %5836 = vmatpush3.bf16.msra.mxu1 %v7304_v59 }
 0x3c9   :  { %5870 = vmatprep.subr.bf16.mxu1 %v6689_v22  ;;  %v7811_v56 = vpop.permute.xlu1 %2825  ;;  %v7827_v26 = vpop.permute.xlu0 %3078  ;;  %v7868_v22 = vsub.s32 1, %v7858_v47 }
 0x3cb   :  { %9167 = vst [vmem:[#allocation51_spill] sm:$0xff] %v7868_v22 }
 0x3cd   :  { %v7813_v1 = vpop.permute.xlu1 %3028  ;;  %v7831_v16 = vpop.permute.xlu0 %3086 }
 0x3d1   :  { %v7815_v63 = vpop.permute.xlu1 %3082  ;;  %v7835_v55 = vpop.permute.xlu0 %3102 }
 0x3d5   :  { %v7817_v0 = vpop.permute.xlu1 %3033  ;;  %v7839_v2 = vpop.permute.xlu0 %2710 }
 0x3d9   :  { %v7821_v7 = vpop.permute.xlu1 %3142  ;;  %v7843_v31 = vpop.permute.xlu0 %2720 }
 0x3dd   :  { %v7825_v59 = vpop.permute.xlu1 %3090  ;;  %v7847_v10 = vpop.permute.xlu0 %2790 }
 0x3e1   :  { %v7829_v9 = vpop.permute.xlu1 %3150  ;;  %v7851_v46 = vpop.permute.xlu0 %2730 }
 0x3e5   :  { %v7833_v14 = vpop.permute.xlu1 %3094  ;;  %v7855_v48 = vpop.permute.xlu0 %2735 }
 0x3e9   :  { %v7837_v28 = vpop.permute.xlu1 %3215  ;;  %v7862_v41 = vpop.permute.xlu0 %2740 }
 0x3ed   :  { %v7841_v18 = vpop.permute.xlu1 %3220  ;;  %v7874_v25 = vpop.permute.xlu0 %2745 }
 0x3f1   :  { %v7845_v58 = vpop.permute.xlu1 %3098 }
 0x3f5   :  { %v7849_v52 = vpop.permute.xlu1 %3158 }
 0x3f6   :  { %9164 = vst [vmem:[#allocation48_spill] sm:$0xff] %v7849_v52 }
 0x3f9   :  { %v7853_v38 = vpop.permute.xlu1 %3053 }
 0x3fd   :  { %v7860_v6 = vpop.permute.xlu1 %3162 }
 0x3fe   :  { %9165 = vst [vmem:[#allocation49_spill] sm:$0xff] %v7860_v6 }
 0x401   :  { %v7870_v44 = vpop.permute.xlu1 %3230 }
 0x402   :  { %9168 = vst [vmem:[#allocation52_spill] sm:$0xff] %v7870_v44 }
 0x405   :  { %v7884_v5 = vpop.permute.xlu1 %3106 }
 0x47e   :  { %v2679_v21 = vpop.f32.mrb[12].mxu1 }
 0x47f   :  { %v2687_v20 = vrot.slane %v2679_v21, %v7865_v62  ;;  %v2751_v33 = vrot.slane %v2679_v21, %v7868_v22  ;;  %v2681_v53 = vpop.f32.mrb[13].mxu1 }
 0x481   :  { %v2706_v11 = vsub.f32 %v7458_v40, %v2687_v20  ;;  %v2770_v19 = vmul.f32 %v2751_v33, %v7874_v25  ;;  %v2696_v17 = vsub.f32 %v7388_v4, %v2687_v20  ;;  %v2760_v23 = vmul.f32 %v2751_v33, %v7843_v31 }
 0x482   :  { %v2692_v27 = vsub.f32 %v9169_v29, %v2687_v20  ;;  %v2756_v50 = vmul.f32 %v2751_v33, %v7839_v2  ;;  %v2694_v34 = vsub.f32 %v9170_v61, %v2687_v20  ;;  %v2758_v21 = vmul.f32 %v2751_v33, %v7797_v13 }
 0x483   :  { %v2786_v30 = vmul.f32 %v2770_v19, %v2706_v11  ;;  %v2776_v12 = vmul.f32 %v2760_v23, %v2696_v17  ;;  %v2698_v35 = vsub.f32 %v9171_v43, %v2687_v20  ;;  %v2762_v29 = vmul.f32 %v2751_v33, %v7799_v8 }
 0x484   :  { %v2772_v60 = vmul.f32 %v2756_v50, %v2692_v27  ;;  %v2774_v23 = vmul.f32 %v2758_v21, %v2694_v34  ;;  %v2700_v27 = vsub.f32 %v7416_v39, %v2687_v20  ;;  %v2691_v39 = vrot.slane %v2681_v53, %v7865_v62 }
 0x485   :  { %v7887_v40 = vadd.f32 %v7811_v56, %v2786_v30  ;;  %v7890_v4 = vadd.f32 %v7803_v37, %v2776_v12  ;;  %v2778_v30 = vmul.f32 %v2762_v29, %v2698_v35  ;;  %v9173_v12 = vld [vmem:[#allocation87_spill] sm:$0xff]  ;;  %v2766_v35 = vmul.f32 %v2751_v33, %v7855_v48 }
 0x486   :  { %v7895_v19 = vadd.f32 %v7847_v10, %v2772_v60  ;;  %v7906_v43 = vadd.f32 %v7801_v51, %v2774_v23  ;;  %v2764_v60 = vmul.f32 %v2751_v33, %v7851_v46  ;;  %v2702_v50 = vsub.f32 %v9173_v12, %v2687_v20  ;;  %v9174_v23 = vld [vmem:[#allocation89_spill] sm:$0xff] }
 0x487   :  { %v7899_v61 = vmul.f32 %v7884_v5, %v7887_v40  ;;  %2848 = vrot.lane.b32.xlu0 %v7890_v4, %s6199_s1  ;;  %v7915_v34 = vadd.f32 %v7805_v54, %v2778_v30  ;;  %v2755_v11 = vrot.slane %v2681_v53, %v7868_v22  ;;  %v2704_v30 = vsub.f32 %v9174_v23, %v2687_v20  ;;  %v2821_v20 = vpop.permute.xlu0 %2820 }
 0x488   :  { %2844 = vrot.lane.b32.xlu1 %v7895_v19, %s6199_s1  ;;  %v2780_v17 = vmul.f32 %v2764_v60, %v2700_v27  ;;  %v2782_v21 = vmul.f32 %v2766_v35, %v2702_v50  ;;  %v2768_v12 = vmul.f32 %v2751_v33, %v7862_v41  ;;  %v9175_v60 = vld [vmem:[#allocation82_spill] sm:$0xff] }
 0x489   :  { %9172 = vst [vmem:[#allocation53_spill] sm:$0xff] %v7899_v61  ;;  %v2693_v3 = vsub.f32 %v9175_v60, %v2691_v39  ;;  %v2757_v53 = vmul.f32 %v2755_v11, %v7839_v2  ;;  %v9176_v2 = vld [vmem:[#allocation86_spill] sm:$0xff]  ;;  %v2765_v23 = vmul.f32 %v2755_v11, %v7851_v46  ;;  %v2763_v60 = vmul.f32 %v2755_v11, %v7799_v8 }
 0x48a   :  { %v7926_v29 = vadd.f32 %v7807_v32, %v2780_v17  ;;  %v7935_v27 = vadd.f32 %v7809_v45, %v2782_v21  ;;  %v2784_v50 = vmul.f32 %v2768_v12, %v2704_v30  ;;  %v2701_v21 = vsub.f32 %v9176_v2, %v2691_v39  ;;  %v9177_v30 = vld [vmem:[#allocation85_spill] sm:$0xff]  ;;  %v9180_v8 = vld [vmem:[#allocation90_spill] sm:$0xff] }
 0x48b   :  { %2930 = vrot.lane.b32.xlu0 %v7895_v19, %s6200_s20  ;;  %v2773_v33 = vmul.f32 %v2757_v53, %v2693_v3  ;;  %v2699_v12 = vsub.f32 %v9177_v30, %v2691_v39  ;;  %v9178_v53 = vld [vmem:[#allocation80_spill] sm:$0xff]  ;;  %v2761_v30 = vmul.f32 %v2755_v11, %v7843_v31 }
 0x48c   :  { %2846 = vrot.lane.b32.xlu1 %v7906_v43, %s6199_s1  ;;  %v7943_v35 = vadd.f32 %v2821_v20, %v2784_v50  ;;  %v2781_v3 = vmul.f32 %v2765_v23, %v2701_v21  ;;  %v2695_v50 = vsub.f32 %v9178_v53, %v2691_v39  ;;  %v9179_v21 = vld [vmem:[#allocation83_spill] sm:$0xff]  ;;  %v2705_v53 = vsub.f32 %v9180_v8, %v2691_v39 }
 0x48d   :  { %v7950_v17 = vadd.f32 %v7847_v10, %v2773_v33  ;;  %v2759_v10 = vmul.f32 %v2755_v11, %v7797_v13  ;;  %v2779_v33 = vmul.f32 %v2763_v60, %v2699_v12  ;;  %v2697_v23 = vsub.f32 %v9179_v21, %v2691_v39  ;;  %v9181_v60 = vld [vmem:[#allocation88_spill] sm:$0xff] }
 0x48e   :  { %v7967_v46 = vadd.f32 %v7807_v32, %v2781_v3  ;;  %v2769_v32 = vmul.f32 %v2755_v11, %v7862_v41  ;;  %v9182_v41 = vld [vmem:[#allocation91_spill] sm:$0xff] }
 0x48f   :  { %2850 = vrot.lane.b32.xlu0 %v7915_v34, %s6199_s1  ;;  %v2775_v2 = vmul.f32 %v2759_v10, %v2695_v50  ;;  %v7976_v13 = vadd.f32 %v7805_v54, %v2779_v33  ;;  %v2777_v12 = vmul.f32 %v2761_v30, %v2697_v23  ;;  %v2703_v50 = vsub.f32 %v9181_v60, %v2691_v39  ;;  %v3319_v23 = vld [vmem:[%s8707_s13] sm:$0xff]  ;;  %v3324_v30 = vld [vmem:[%s8707_s13 + $0x28] sm:$0xff]  ;;  %v3326_v60 = vld [vmem:[%s8707_s13 + $0x38] sm:$0xff] }
 0x490   :  { %2932 = vrot.lane.b32.xlu1 %v7906_v43, %s6200_s20  ;;  %v2785_v31 = vmul.f32 %v2769_v32, %v2705_v53  ;;  %v2767_v54 = vmul.f32 %v2755_v11, %v7855_v48  ;;  %v2771_v33 = vmul.f32 %v2755_v11, %v7874_v25  ;;  %v8036_v11 = vpop.permute.xlu0 %3023  ;;  %v3321_v53 = vld [vmem:[%s8707_s13 + $0x10] sm:$0xff]  ;;  %v3330_v32 = vld [vmem:[%s8708_s14 + $0x18] sm:$0xff] }
 0x491   :  { %v7981_v3 = vadd.f32 %v7801_v51, %v2775_v2  ;;  %v7990_v10 = vadd.f32 %v7803_v37, %v2777_v12  ;;  %v2707_v51 = vsub.f32 %v9182_v41, %v2691_v39  ;;  %v3322_v39 = vld [vmem:[%s8707_s13 + $0x18] sm:$0xff]  ;;  %v3327_v12 = vld [vmem:[%s8708_s14] sm:$0xff] }
 0x492   :  { %v7998_v2 = vadd.f32 %v2821_v20, %v2785_v31  ;;  %v2783_v21 = vmul.f32 %v2767_v54, %v2703_v50  ;;  %v3328_v20 = vld [vmem:[%s8708_s14 + $0x8] sm:$0xff]  ;;  %v3323_v50 = vld [vmem:[%s8707_s13 + $0x20] sm:$0xff] }
 0x493   :  { %2934 = vrot.lane.b32.xlu0 %v7890_v4, %s6200_s20  ;;  %v2787_v48 = vmul.f32 %v2771_v33, %v2707_v51  ;;  %v3332_v54 = vld [vmem:[%s8708_s14 + $0x28] sm:$0xff]  ;;  %v3329_v51 = vld [vmem:[%s8708_s14 + $0x10] sm:$0xff]  ;;  %v3334_v33 = vld [vmem:[%s8708_s14 + $0x38] sm:$0xff] }
 0x494   :  { %2852 = vrot.lane.b32.xlu1 %v7926_v29, %s6199_s1  ;;  %v8005_v37 = vadd.f32 %v7809_v45, %v2783_v21  ;;  %v3212_v45 = vld [vmem:[%s8705_s11 + $0x38] sm:$0xff]  ;;  %v8049_v8 = vpop.permute.xlu0 %3038  ;;  %v3325_v21 = vld [vmem:[%s8707_s13 + $0x30] sm:$0xff] }
 0x495   :  { %v8012_v25 = vadd.f32 %v7811_v56, %v2787_v48  ;;  %v3320_v56 = vld [vmem:[%s8707_s13 + $0x8] sm:$0xff] }
 0x496   :  { %9183 = vst [vmem:[#allocation54_spill] sm:$0xff] %v8005_v37 }
 0x497   :  { %2854 = vrot.lane.b32.xlu0 %v7935_v27, %s6199_s1 }
 0x498   :  { %2936 = vrot.lane.b32.xlu1 %v7915_v34, %s6200_s20  ;;  %v8060_v31 = vpop.permute.xlu0 %3043 }
 0x49b   :  { %2938 = vrot.lane.b32.xlu0 %v7926_v29, %s6200_s20 }
 0x49c   :  { %2856 = vrot.lane.b32.xlu1 %v7943_v35, %s6199_s1  ;;  %v8071_v41 = vpop.permute.xlu0 %3048 }
 0x49d   :  { %9184 = vst [vmem:[#allocation55_spill] sm:$0xff] %v8071_v41 }
 0x49f   :  { %2860 = vrot.lane.b32.xlu0 %v7950_v17, %s6199_s1 }
 0x4a0   :  { %2940 = vrot.lane.b32.xlu1 %v7935_v27, %s6200_s20  ;;  %v8082_v48 = vpop.permute.xlu0 %3225 }
 0x4a1   :  { %9185 = vst [vmem:[#allocation56_spill] sm:$0xff] %v8082_v48 }
 0x4a3   :  { %2946 = vrot.lane.b32.xlu0 %v7950_v17, %s6200_s20 }
 0x4a4   :  { %2858 = vrot.lane.b32.xlu1 %v7887_v40, %s6199_s1 }
 0x4a7   :  { %2868 = vrot.lane.b32.xlu0 %v7967_v46, %s6199_s1 }
 0x4a8   :  { %2942 = vrot.lane.b32.xlu1 %v7943_v35, %s6200_s20 }
 0x4ab   :  { %2952 = vrot.lane.b32.xlu0 %v7976_v13, %s6200_s20 }
 0x4ac   :  { %2862 = vrot.lane.b32.xlu1 %v7981_v3, %s6199_s1 }
 0x4af   :  { %2944 = vrot.lane.b32.xlu0 %v7887_v40, %s6200_s20  ;;  %v3211_v40 = vld [vmem:[%s8705_s11 + $0x30] sm:$0xff] }
 0x4b0   :  { %2864 = vrot.lane.b32.xlu1 %v7990_v10, %s6199_s1 }
 0x4b3   :  { %2872 = vrot.lane.b32.xlu0 %v7998_v2, %s6199_s1 }
 0x4b4   :  { %2948 = vrot.lane.b32.xlu1 %v7981_v3, %s6200_s20 }
 0x4b7   :  { %2956 = vrot.lane.b32.xlu0 %v8005_v37, %s6200_s20 }
 0x4b8   :  { %2866 = vrot.lane.b32.xlu1 %v7976_v13, %s6199_s1 }
 0x4bb   :  { %2874 = vrot.lane.b32.xlu0 %v8012_v25, %s6199_s1 }
 0x4bc   :  { %2950 = vrot.lane.b32.xlu1 %v7990_v10, %s6200_s20 }
 0x4bf   :  { %2958 = vrot.lane.b32.xlu0 %v7998_v2, %s6200_s20 }
 0x4c0   :  { %2870 = vrot.lane.b32.xlu1 %v8005_v37, %s6199_s1 }
 0x4c3   :  { %3250 = vperm.xlu0 %6152, %v3212_v45   ;;  %v4936_v45 = vld [vmem:[%s8710_s16 + $0x8] sm:$0xff] }
 0x4c4   :  { %2954 = vrot.lane.b32.xlu1 %v7967_v46, %s6200_s20 }
 0x4c7   :  { %4802 = vperm.xlu0 %6152, %v3320_v56   ;;  %v3331_v56 = vld [vmem:[%s8708_s14 + $0x20] sm:$0xff] }
 0x4c8   :  { %3245 = vperm.xlu1 %6157, %v3211_v40   ;;  %v4938_v40 = vld [vmem:[%s8710_s16 + $0x18] sm:$0xff] }
 0x4cb   :  { %4812 = vperm.xlu0 %6152, %v3322_v39   ;;  %v8093_v39 = vpop.permute.xlu0 %3058 }
 0x4cc   :  { %2960 = vrot.lane.b32.xlu1 %v8012_v25, %s6200_s20 }
 0x4cf   :  { %4882 = vperm.xlu0 %6152, %v3328_v20   ;;  %v3333_v20 = vld [vmem:[%s8708_s14 + $0x30] sm:$0xff] }
 0x4d0   :  { %4797 = vperm.xlu1 %6157, %v3319_v23   ;;  %v4935_v23 = vld [vmem:[%s8710_s16] sm:$0xff] }
 0x4d3   :  { %4822 = vperm.xlu0 %6152, %v3324_v30   ;;  %v8101_v30 = vpop.permute.xlu1 %3166 }
 0x4d4   :  { %4807 = vperm.xlu1 %6157, %v3321_v53   ;;  %9186 = vst [vmem:[#allocation57_spill] sm:$0xff] %v8101_v30  ;;  %v8103_v53 = vpop.permute.xlu0 %3235 }
 0x4d5   :  { %9187 = vst [vmem:[#allocation58_spill] sm:$0xff] %v8103_v53  ;;  %v2985_v53 = vsub.s32 3, %v7858_v47 }
 0x4d7   :  { %4892 = vperm.xlu0 %6152, %v3330_v32   ;;  %v4937_v32 = vld [vmem:[%s8710_s16 + $0x10] sm:$0xff]  ;;  %s6171_s16 = scalar_lea.vmem %s5083_s30, 1024 }
 0x4d8   :  { %4877 = vperm.xlu1 %6157, %v3327_v12   ;;  %v8108_v12 = vpop.permute.xlu1 %3170  ;;  %p6172_p0 = scmp.ne.s32.totalorder %s5083_s30, %s6171_s16  ;;  %p6177_p2 = scmp.lt.s32.totalorder %s6171_s16, %s6171_s16 }
 0x4d9   :  { %9188 = vst [vmem:[#allocation59_spill] sm:$0xff] %v8108_v12 }
 0x4da   :  { %p6178_p3 = por %p6177_p2, %p6176_p1 }
 0x4db   :  { %4832 = vperm.xlu0 %6152, %v3326_v60   ;;  %v8110_v60 = vpop.permute.xlu0 %3240 }
 0x4dc   :  { %4817 = vperm.xlu1 %6157, %v3323_v50   ;;  %9189 = vst [vmem:[#allocation60_spill] sm:$0xff] %v8110_v60  ;;  %p6179_p4 = pnand %p6178_p3, %p6172_p0 }
 0x4df   :  { %4902 = vperm.xlu0 %6152, %v3332_v54  }
 0x4e0   :  { %4887 = vperm.xlu1 %6157, %v3329_v51  }
 0x4e3   :  { %4912 = vperm.xlu0 %6152, %v3334_v33  }
 0x4e4   :  { %4827 = vperm.xlu1 %6157, %v3325_v21  }
 0x4e7   :  { %4946 = vperm.xlu0 %6152, %v4936_v45  }
 0x4e8   :  { %4897 = vperm.xlu1 %6157, %v3331_v56  }
 0x4eb   :  { %4956 = vperm.xlu0 %6152, %v4938_v40  }
 0x4ec   :  { %4907 = vperm.xlu1 %6157, %v3333_v20   ;;  %v2902_v20 = vsub.s32 2, %v7858_v47 }
 0x4f0   :  { %4941 = vperm.xlu1 %6157, %v4935_v23   ;;  %v103_v23 = vld [vmem:[%s8698_s4] sm:$0xf] }
 0x4f1   :  { %v2899_v24 = vrot.slane %v103_v23, %v7865_v62  ;;  %v2903_v12 = vrot.slane %v103_v23, %v2902_v20  ;;  %v2982_v42 = vrot.slane %v103_v23, %v7868_v22  ;;  %v2986_v6 = vrot.slane %v103_v23, %v2985_v53 }
 0x4f2   :  { %v3109_v23 = vmul.f32 %v7827_v26, %v7895_v19 }
 0x4f3   :  { %v8139_v30 = vrot.slane %v2899_v24, %v7865_v62  ;;  %v8142_v41 = vrot.slane %v2903_v12, %v7865_v62  ;;  %v8155_v12 = vrot.slane %v2982_v42, %v7868_v22  ;;  %v8158_v53 = vrot.slane %v2986_v6, %v7868_v22 }
 0x4f4   :  { %4951 = vperm.xlu1 %6157, %v4937_v32   ;;  %v3110_v62 = vmul.f32 %v7827_v26, %v7950_v17 }
 0x4f9   :  { %v8112_v50 = vpop.permute.xlu0 %2848 }
 0x4fa   :  { %v2845_v54 = vpop.permute.xlu1 %2844 }
 0x4fd   :  { %v2931_v51 = vpop.permute.xlu0 %2930 }
 0x4fe   :  { %v2847_v33 = vpop.permute.xlu1 %2846 }
 0x501   :  { %v8114_v21 = vpop.permute.xlu0 %2850 }
 0x502   :  { %v8116_v45 = vpop.permute.xlu1 %2932 }
 0x505   :  { %v8118_v56 = vpop.permute.xlu0 %2934 }
 0x506   :  { %v2853_v40 = vpop.permute.xlu1 %2852 }
 0x509   :  { %v8124_v32 = vpop.permute.xlu0 %2854 }
 0x50a   :  { %9190 = vst [vmem:[#allocation61_spill] sm:$0xff] %v8124_v32  ;;  %v8129_v36 = vpop.permute.xlu1 %2936 }
 0x50d   :  { %v8133_v52 = vpop.permute.xlu0 %2938 }
 0x50e   :  { %9192 = vst [vmem:[#allocation62_spill] sm:$0xff] %v8133_v52  ;;  %v8136_v60 = vpop.permute.xlu1 %2856 }
 0x511   :  { %v2861_v48 = vpop.permute.xlu0 %2860 }
 0x512   :  { %v8146_v20 = vpop.permute.xlu1 %2940  ;;  %v2879_v47 = vsel %vm2878_vm4, %v2845_v54, %v2861_v48  ;;  %v2887_v52 = vsel %vm2878_vm4, %v2861_v48, %v2845_v54 }
 0x513   :  { %v2914_v24 = vmul.f32 %v8139_v30, %v2887_v52  ;;  %v2915_v44 = vmul.f32 %v8142_v41, %v2879_v47 }
 0x515   :  { %v3061_v32 = vmul.f32 %v8036_v11, %v2914_v24  ;;  %v3062_v48 = vmul.f32 %v8036_v11, %v2915_v44  ;;  %v2947_v54 = vpop.permute.xlu0 %2946 }
 0x516   :  { %v8166_v52 = vpop.permute.xlu1 %2858  ;;  %v2963_v42 = vsel %vm2962_vm5, %v2931_v51, %v2947_v54  ;;  %v2971_v6 = vsel %vm2962_vm5, %v2947_v54, %v2931_v51 }
 0x517   :  { %v3125_v47 = vadd.f32 %v3109_v23, %v3061_v32  ;;  %v3126_v22 = vadd.f32 %v3110_v62, %v3062_v48  ;;  %v2997_v19 = vmul.f32 %v8155_v12, %v2963_v42  ;;  %v2998_v61 = vmul.f32 %v8158_v53, %v2971_v6 }
 0x518   :  { %v3118_v42 = vmul.f32 %v7833_v14, %v7967_v46 }
 0x519   :  { %v3173_v26 = vmul.f32 %v7821_v7, %v2997_v19  ;;  %v3174_v17 = vmul.f32 %v7821_v7, %v2998_v61  ;;  %v2869_v44 = vpop.permute.xlu0 %2868  ;;  %v3117_v61 = vmul.f32 %v7833_v14, %v7926_v29  ;;  %v3111_v14 = vmul.f32 %v7815_v63, %v7906_v43 }
 0x51a   :  { %v8176_v11 = vpop.permute.xlu1 %2942  ;;  %v2883_v24 = vsel %vm2878_vm4, %v2853_v40, %v2869_v44  ;;  %v2891_v37 = vsel %vm2878_vm4, %v2869_v44, %v2853_v40  ;;  %v3112_v29 = vmul.f32 %v7815_v63, %v7981_v3  ;;  %v3113_v63 = vmul.f32 %v7831_v16, %v7890_v4 }
 0x51b   :  { %v3189_v51 = vadd.f32 %v3173_v26, %v3125_v47  ;;  %v3190_v32 = vadd.f32 %v3174_v17, %v3126_v22  ;;  %v2922_v62 = vmul.f32 %v8139_v30, %v2891_v37  ;;  %v2923_v23 = vmul.f32 %v8142_v41, %v2883_v24 }
 0x51c   :  { %v3114_v3 = vmul.f32 %v7831_v16, %v7990_v10 }
 0x51d   :  { %v3069_v48 = vmul.f32 %v8060_v31, %v2922_v62  ;;  %v3070_v54 = vmul.f32 %v8060_v31, %v2923_v23  ;;  %v2953_v7 = vpop.permute.xlu0 %2952 }
 0x51e   :  { %v2863_v6 = vpop.permute.xlu1 %2862 }
 0x51f   :  { %v8190_v19 = vadd.f32 %v3117_v61, %v3069_v48  ;;  %v8192_v40 = vadd.f32 %v3118_v42, %v3070_v54  ;;  %v2880_v22 = vsel %vm2878_vm4, %v2847_v33, %v2863_v6  ;;  %v2888_v37 = vsel %vm2878_vm4, %v2863_v6, %v2847_v33 }
 0x520   :  { %v2916_v31 = vmul.f32 %v8139_v30, %v2888_v37  ;;  %v2917_v47 = vmul.f32 %v8142_v41, %v2880_v22 }
 0x521   :  { %v8200_v26 = vpop.permute.xlu0 %2944 }
 0x522   :  { %v2865_v46 = vpop.permute.xlu1 %2864  ;;  %v3063_v17 = vmul.f32 %v7813_v1, %v2916_v31  ;;  %v3064_v44 = vmul.f32 %v7813_v1, %v2917_v47 }
 0x523   :  { %v2881_v33 = vsel %vm2878_vm4, %v8112_v50, %v2865_v46  ;;  %v2889_v24 = vsel %vm2878_vm4, %v2865_v46, %v8112_v50  ;;  %v3122_v46 = vmul.f32 %v7835_v55, %v7998_v2 }
 0x524   :  { %v2918_v62 = vmul.f32 %v8139_v30, %v2889_v24  ;;  %v2919_v43 = vmul.f32 %v8142_v41, %v2881_v33  ;;  %v3127_v23 = vadd.f32 %v3111_v14, %v3063_v17  ;;  %v3128_v1 = vadd.f32 %v3112_v29, %v3064_v44 }
 0x525   :  { %v2873_v48 = vpop.permute.xlu0 %2872  ;;  %v3253_v17 = vadd.f32 %v7837_v28, %v3189_v51  ;;  %v3254_v44 = vadd.f32 %v7837_v28, %v3190_v32 }
 0x526   :  { %v3065_v54 = vmul.f32 %v7817_v0, %v2918_v62  ;;  %v3066_v61 = vmul.f32 %v7817_v0, %v2919_v43  ;;  %v2949_v42 = vpop.permute.xlu1 %2948  ;;  %v2885_v50 = vsel %vm2878_vm4, %v8136_v60, %v2873_v48  ;;  %v2893_v6 = vsel %vm2878_vm4, %v2873_v48, %v8136_v60 }
 0x527   :  { %v2964_v16 = vsel %vm2962_vm5, %v8116_v45, %v2949_v42  ;;  %v2972_v4 = vsel %vm2962_vm5, %v2949_v42, %v8116_v45  ;;  %v2926_v10 = vmul.f32 %v8139_v30, %v2893_v6  ;;  %v2927_v0 = vmul.f32 %v8142_v41, %v2885_v50 }
 0x528   :  { %v8236_v22 = vadd.f32 %v3113_v63, %v3065_v54  ;;  %v8238_v37 = vadd.f32 %v3114_v3, %v3066_v61  ;;  %v2999_v31 = vmul.f32 %v8155_v12, %v2964_v16  ;;  %v3000_v60 = vmul.f32 %v8158_v53, %v2972_v4 }
 0x529   :  { %v3073_v47 = vmul.f32 %v7853_v38, %v2926_v10  ;;  %v3074_v14 = vmul.f32 %v7853_v38, %v2927_v0  ;;  %v2957_v29 = vpop.permute.xlu0 %2956  ;;  %v3121_v45 = vmul.f32 %v7835_v55, %v7943_v35  ;;  %v2966_v38 = vsel %vm2962_vm5, %v8129_v36, %v2953_v7 }
 0x52a   :  { %v3175_v33 = vmul.f32 %v7819_v15, %v2999_v31  ;;  %v3176_v24 = vmul.f32 %v7819_v15, %v3000_v60  ;;  %v2867_v62 = vpop.permute.xlu1 %2866  ;;  %v2974_v35 = vsel %vm2962_vm5, %v2953_v7, %v8129_v36  ;;  %v3115_v43 = vmul.f32 %v7825_v59, %v7915_v34 }
 0x52b   :  { %v2882_v55 = vsel %vm2878_vm4, %v8114_v21, %v2867_v62  ;;  %v2890_v28 = vsel %vm2878_vm4, %v2867_v62, %v8114_v21  ;;  %v3116_v36 = vmul.f32 %v7825_v59, %v7976_v13  ;;  %v8270_v63 = vadd.f32 %v3121_v45, %v3073_v47 }
 0x52c   :  { %v3191_v2 = vadd.f32 %v3175_v33, %v3127_v23  ;;  %v3192_v51 = vadd.f32 %v3176_v24, %v3128_v1  ;;  %v2920_v15 = vmul.f32 %v8139_v30, %v2890_v28  ;;  %v2921_v32 = vmul.f32 %v8142_v41, %v2882_v55  ;;  %v9193_v55 = vld [vmem:[#allocation54_spill] sm:$0xff] }
 0x52d   :  { %v2875_v7 = vpop.permute.xlu0 %2874  ;;  %v8272_v3 = vadd.f32 %v3122_v46, %v3074_v14  ;;  %v3003_v48 = vmul.f32 %v8155_v12, %v2966_v38  ;;  %v3004_v21 = vmul.f32 %v8158_v53, %v2974_v35  ;;  %v8295_v42 = vstv %s8706_s12 }
 0x52e   :  { %v3067_v23 = vmul.f32 %v8049_v8, %v2920_v15  ;;  %v3068_v1 = vmul.f32 %v8049_v8, %v2921_v32  ;;  %v2951_v54 = vpop.permute.xlu1 %2950  ;;  %v2886_v13 = vsel %vm2878_vm4, %v8166_v52, %v2875_v7  ;;  %v2894_v61 = vsel %vm2878_vm4, %v2875_v7, %v8166_v52 }
 0x52f   :  { %v2965_v34 = vsel %vm2962_vm5, %v8118_v56, %v2951_v54  ;;  %v2973_v59 = vsel %vm2962_vm5, %v2951_v54, %v8118_v56  ;;  %v3124_v8 = vmul.f32 %v7884_v5, %v8012_v25  ;;  %vm3270_vm6 = vcmp.gt.f32.partialorder %v3253_v17, 0.0  ;;  %v9197_v54 = vld [vmem:[#allocation56_spill] sm:$0xff] }
 0x530   :  { %vm3271_vm7 = vcmp.gt.f32.partialorder %v3254_v44, 0.0  ;;  %v3131_v50 = vadd.f32 %v3115_v43, %v3067_v23  ;;  %v3132_v56 = vadd.f32 %v3116_v36, %v3068_v1  ;;  %v3001_v6 = vmul.f32 %v8155_v12, %v2965_v34 }
 0x531   :  { %v3002_v16 = vmul.f32 %v8158_v53, %v2973_v59  ;;  %v3179_v4 = vmul.f32 %v7823_v49, %v3003_v48  ;;  %v3180_v52 = vmul.f32 %v7823_v49, %v3004_v21  ;;  %v2928_v10 = vmul.f32 %v8139_v30, %v2894_v61  ;;  %v9196_v21 = vld [vmem:[#allocation52_spill] sm:$0xff] }
 0x532   :  { %v2929_v5 = vmul.f32 %v8142_v41, %v2886_v13  ;;  %v3287_v25 = vmul.f32 %v8295_v42, %v3253_v17  ;;  %v3288_v0 = vmul.f32 %v8295_v42, %v3254_v44  ;;  %v2968_v31 = vsel %vm2962_vm5, %v8146_v20, %v2957_v29  ;;  %v2871_v46 = vpop.permute.xlu1 %2870 }
 0x533   :  { %v2976_v60 = vsel %vm2962_vm5, %v2957_v29, %v8146_v20  ;;  %v3195_v47 = vadd.f32 %v3179_v4, %v3131_v50  ;;  %v3196_v14 = vadd.f32 %v3180_v52, %v3132_v56  ;;  %v3177_v49 = vmul.f32 %v7829_v9, %v3001_v6 }
 0x534   :  { %v3178_v45 = vmul.f32 %v7829_v9, %v3002_v16  ;;  %v3255_v33 = vadd.f32 %v7841_v18, %v3191_v2  ;;  %v3256_v24 = vadd.f32 %v7841_v18, %v3192_v51  ;;  %v3075_v62 = vmul.f32 %v8093_v39, %v2928_v10  ;;  %v9194_v9 = vld [vmem:[#allocation53_spill] sm:$0xff] }
 0x535   :  { %v3076_v38 = vmul.f32 %v8093_v39, %v2929_v5  ;;  %v3119_v35 = vmul.f32 %v7845_v58, %v7935_v27  ;;  %v3120_v20 = vmul.f32 %v7845_v58, %v9193_v55  ;;  %v3193_v29 = vadd.f32 %v3177_v49, %v8236_v22  ;;  %v9195_v18 = vld [vmem:[#allocation61_spill] sm:$0xff]  ;;  %v2959_v39 = vpop.permute.xlu0 %2958  ;;  %v9200_v5 = vld [vmem:[#allocation62_spill] sm:$0xff] }
 0x536   :  { %v3194_v28 = vadd.f32 %v3178_v45, %v8238_v37  ;;  %v8324_v15 = vadd.f32 %v9194_v9, %v3075_v62  ;;  %v2884_v51 = vsel %vm2878_vm4, %v9195_v18, %v2871_v46  ;;  %v2892_v27 = vsel %vm2878_vm4, %v2871_v46, %v9195_v18  ;;  %v2955_v59 = vpop.permute.xlu1 %2954  ;;  %v9201_v46 = vld [vmem:[#allocation57_spill] sm:$0xff]  ;;  %v9203_v9 = vld [vmem:[#allocation48_spill] sm:$0xff] }
 0x537   :  { %v8326_v2 = vadd.f32 %v3124_v8, %v3076_v38  ;;  %v8335_v58 = vsel %vm3270_vm6, %v3253_v17, %v3287_v25  ;;  %v8338_v22 = vsel %vm3271_vm7, %v3254_v44, %v3288_v0  ;;  %v3007_v37 = vmul.f32 %v8155_v12, %v2968_v31  ;;  %v9199_v8 = vld [vmem:[#allocation55_spill] sm:$0xff] }
 0x538   :  { %v3008_v32 = vmul.f32 %v8158_v53, %v2976_v60  ;;  %v3289_v43 = vmul.f32 %v8295_v42, %v3255_v33  ;;  %v3290_v36 = vmul.f32 %v8295_v42, %v3256_v24  ;;  %v2924_v7 = vmul.f32 %v8139_v30, %v2892_v27 }
 0x539   :  { %v2925_v48 = vmul.f32 %v8142_v41, %v2884_v51  ;;  %vm3272_vm8 = vcmp.gt.f32.partialorder %v3255_v33, 0.0  ;;  %vm3273_vm9 = vcmp.gt.f32.partialorder %v3256_v24, 0.0  ;;  %v2969_v17 = vsel %vm2962_vm5, %v8176_v11, %v2959_v39  ;;  %v9198_v41 = vld [vmem:[#allocation49_spill] sm:$0xff] }
 0x53a   :  { %v2977_v44 = vsel %vm2962_vm5, %v2959_v39, %v8176_v11  ;;  %v3259_v23 = vadd.f32 %v9196_v21, %v3195_v47  ;;  %v3260_v1 = vadd.f32 %v9196_v21, %v3196_v14  ;;  %v3257_v34 = vadd.f32 %v9197_v54, %v3193_v29 }
 0x53b   :  { %v3258_v30 = vadd.f32 %v9197_v54, %v3194_v28  ;;  %v3183_v13 = vmul.f32 %v9198_v41, %v3007_v37  ;;  %v3184_v61 = vmul.f32 %v9198_v41, %v3008_v32  ;;  %v3071_v50 = vmul.f32 %v9199_v8, %v2924_v7 }
 0x53c   :  { %v3072_v56 = vmul.f32 %v9199_v8, %v2925_v48  ;;  %v8360_v6 = vsel %vm3272_vm8, %v3255_v33, %v3289_v43  ;;  %v8362_v11 = vsel %vm3273_vm9, %v3256_v24, %v3290_v36  ;;  %v3009_v16 = vmul.f32 %v8155_v12, %v2969_v17 }
 0x53d   :  { %v3010_v4 = vmul.f32 %v8158_v53, %v2977_v44  ;;  %v3135_v52 = vadd.f32 %v3119_v35, %v3071_v50  ;;  %v2967_v25 = vsel %vm2962_vm5, %v9200_v5, %v2955_v59  ;;  %v2975_v0 = vsel %vm2962_vm5, %v2955_v59, %v9200_v5  ;;  %v9202_v35 = vld [vmem:[#allocation60_spill] sm:$0xff] }
 0x53e   :  { %v3136_v10 = vadd.f32 %v3120_v20, %v3072_v56  ;;  %v3293_v31 = vmul.f32 %v8295_v42, %v3259_v23  ;;  %v3294_v60 = vmul.f32 %v8295_v42, %v3260_v1  ;;  %v3291_v47 = vmul.f32 %v8295_v42, %v3257_v34 }
 0x53f   :  { %v3292_v14 = vmul.f32 %v8295_v42, %v3258_v30  ;;  %v3199_v49 = vadd.f32 %v3183_v13, %v3135_v52  ;;  %v3185_v33 = vmul.f32 %v9201_v46, %v3009_v16  ;;  %v3186_v24 = vmul.f32 %v9201_v46, %v3010_v4 }
 0x540   :  { %v3200_v45 = vadd.f32 %v3184_v61, %v3136_v10  ;;  %vm3274_vm10 = vcmp.gt.f32.partialorder %v3257_v34, 0.0  ;;  %vm3275_vm11 = vcmp.gt.f32.partialorder %v3258_v30, 0.0  ;;  %v3005_v62 = vmul.f32 %v8155_v12, %v2967_v25 }
 0x541   :  { %v3006_v38 = vmul.f32 %v8158_v53, %v2975_v0  ;;  %v3263_v55 = vadd.f32 %v9202_v35, %v3199_v49  ;;  %v3201_v29 = vadd.f32 %v3185_v33, %v8270_v63  ;;  %v3202_v28 = vadd.f32 %v3186_v24, %v8272_v3 }
 0x542   :  { %v3264_v20 = vadd.f32 %v9202_v35, %v3200_v45  ;;  %vm3276_vm12 = vcmp.gt.f32.partialorder %v3259_v23, 0.0  ;;  %vm3277_vm13 = vcmp.gt.f32.partialorder %v3260_v1, 0.0  ;;  %v3181_v18 = vmul.f32 %v9203_v9, %v3005_v62 }
 0x543   :  { %v3182_v51 = vmul.f32 %v9203_v9, %v3006_v38  ;;  %v3363_v27 = vmul.f32 %v8360_v6, %v8360_v6  ;;  %v3364_v39 = vmul.f32 %v8362_v11, %v8362_v11  ;;  %v8390_v37 = vsel %vm3274_vm10, %v3257_v34, %v3291_v47  ;;  %v9204_v34 = vld [vmem:[#allocation58_spill] sm:$0xff] }
 0x544   :  { %v8392_v32 = vsel %vm3275_vm11, %v3258_v30, %v3292_v14  ;;  %v3361_v63 = vmul.f32 %v8335_v58, %v8335_v58  ;;  %v3362_v3 = vmul.f32 %v8338_v22, %v8338_v22  ;;  %v3197_v43 = vadd.f32 %v3181_v18, %v8190_v19 }
 0x545   :  { %v3198_v36 = vadd.f32 %v3182_v51, %v8192_v40  ;;  %v3335_v7 = vadd.f32 %v8360_v6, %v8335_v58  ;;  %v3348_v48 = vadd.f32 %v8362_v11, %v8338_v22  ;;  %v8404_v17 = vsel %vm3276_vm12, %v3259_v23, %v3293_v31 }
 0x546   :  { %v8406_v44 = vsel %vm3277_vm13, %v3260_v1, %v3294_v60  ;;  %v3365_v21 = vmul.f32 %v8390_v37, %v8390_v37  ;;  %v3366_v54 = vmul.f32 %v8392_v32, %v8392_v32  ;;  %v3261_v19 = vadd.f32 %v9204_v34, %v3197_v43 }
 0x547   :  { %v3262_v40 = vadd.f32 %v9204_v34, %v3198_v36  ;;  %v3246_v30 = vpop.permute.xlu1 %3245  ;;  %v3377_v59 = vadd.f32 %v3363_v27, %v3361_v63  ;;  %v3390_v41 = vadd.f32 %v3364_v39, %v3362_v3  ;;  %v3367_v8 = vmul.f32 %v8404_v17, %v8404_v17  ;;  %v3251_v3 = vpop.permute.xlu0 %3250 }
 0x548   :  { %v3265_v13 = vadd.f32 %v3246_v30, %v3201_v29  ;;  %v3266_v61 = vadd.f32 %v3246_v30, %v3202_v28  ;;  %vm3278_vm14 = vcmp.gt.f32.partialorder %v3261_v19, 0.0  ;;  %v3295_v23 = vmul.f32 %v8295_v42, %v3261_v19 }
 0x549   :  { %vm3279_vm15 = vcmp.gt.f32.partialorder %v3262_v40, 0.0  ;;  %v3296_v1 = vmul.f32 %v8295_v42, %v3262_v40  ;;  %v3368_v50 = vmul.f32 %v8406_v44, %v8406_v44  ;;  %v3336_v56 = vadd.f32 %v3335_v7, %v8390_v37 }
 0x54a   :  { %v3349_v16 = vadd.f32 %v3348_v48, %v8392_v32  ;;  %v3378_v4 = vadd.f32 %v3377_v59, %v3365_v21  ;;  %v3391_v52 = vadd.f32 %v3390_v41, %v3366_v54  ;;  %v8422_v10 = vsel %vm3278_vm14, %v3261_v19, %v3295_v23 }
 0x54b   :  { %v8424_v5 = vsel %vm3279_vm15, %v3262_v40, %v3296_v1  ;;  %v2961_v25 = vpop.permute.xlu1 %2960  ;;  %v3297_v0 = vmul.f32 %v8295_v42, %v3263_v55  ;;  %v3298_v31 = vmul.f32 %v8295_v42, %v3264_v20  ;;  %vm3280_vm1 = vcmp.gt.f32.partialorder %v3263_v55, 0.0 }
 0x54c   :  { %vm3281_vm2 = vcmp.gt.f32.partialorder %v3264_v20, 0.0  ;;  %vm3282_vm4 = vcmp.gt.f32.partialorder %v3265_v13, 0.0  ;;  %vm3283_vm6 = vcmp.gt.f32.partialorder %v3266_v61, 0.0  ;;  %v3299_v60 = vmul.f32 %v8295_v42, %v3265_v13 }
 0x54d   :  { %v3300_v47 = vmul.f32 %v8295_v42, %v3266_v61  ;;  %v3369_v14 = vmul.f32 %v8422_v10, %v8422_v10  ;;  %v3370_v49 = vmul.f32 %v8424_v5, %v8424_v5  ;;  %v2970_v45 = vsel %vm2962_vm5, %v8200_v26, %v2961_v25 }
 0x54e   :  { %v2978_v46 = vsel %vm2962_vm5, %v2961_v25, %v8200_v26  ;;  %v3337_v33 = vadd.f32 %v3336_v56, %v8404_v17  ;;  %v3350_v24 = vadd.f32 %v3349_v16, %v8406_v44  ;;  %v3011_v62 = vmul.f32 %v8155_v12, %v2970_v45  ;;  %v9205_v26 = vld [vmem:[#allocation59_spill] sm:$0xff] }
 0x54f   :  { %v3012_v38 = vmul.f32 %v8158_v53, %v2978_v46  ;;  %v8444_v35 = vsel %vm3280_vm1, %v3263_v55, %v3297_v0  ;;  %v8446_v29 = vsel %vm3281_vm2, %v3264_v20, %v3298_v31  ;;  %v3379_v28 = vadd.f32 %v3378_v4, %v3367_v8 }
 0x550   :  { %v3392_v9 = vadd.f32 %v3391_v52, %v3368_v50  ;;  %v8449_v18 = vsel %vm3282_vm4, %v3265_v13, %v3299_v60  ;;  %v8452_v57 = vsel %vm3283_vm6, %v3266_v61, %v3300_v47  ;;  %v3187_v51 = vmul.f32 %v9205_v26, %v3011_v62 }
 0x551   :  { %v3188_v27 = vmul.f32 %v9205_v26, %v3012_v38  ;;  %v3338_v12 = vadd.f32 %v3337_v33, %v8422_v10  ;;  %v3351_v53 = vadd.f32 %v3350_v24, %v8424_v5  ;;  %v3380_v55 = vadd.f32 %v3379_v28, %v3369_v14 }
 0x552   :  { %v3393_v39 = vadd.f32 %v3392_v9, %v3370_v49  ;;  %v3203_v20 = vadd.f32 %v3187_v51, %v8324_v15  ;;  %v3371_v43 = vmul.f32 %v8444_v35, %v8444_v35  ;;  %v3372_v36 = vmul.f32 %v8446_v29, %v8446_v29 }
 0x553   :  { %v3204_v63 = vadd.f32 %v3188_v27, %v8326_v2  ;;  %v3373_v7 = vmul.f32 %v8449_v18, %v8449_v18  ;;  %v3374_v48 = vmul.f32 %v8452_v57, %v8452_v57  ;;  %v3339_v34 = vadd.f32 %v3338_v12, %v8444_v35 }
 0x554   :  { %v3267_v21 = vadd.f32 %v3251_v3, %v3203_v20  ;;  %v3352_v15 = vadd.f32 %v3351_v53, %v8446_v29  ;;  %v3381_v2 = vadd.f32 %v3380_v55, %v3371_v43  ;;  %v3394_v19 = vadd.f32 %v3393_v39, %v3372_v36 }
 0x555   :  { %v3268_v54 = vadd.f32 %v3251_v3, %v3204_v63  ;;  %v3340_v59 = vadd.f32 %v3339_v34, %v8449_v18 }
 0x556   :  { %vm3284_vm5 = vcmp.gt.f32.partialorder %v3267_v21, 0.0  ;;  %v3301_v40 = vmul.f32 %v8295_v42, %v3267_v21  ;;  %v3353_v41 = vadd.f32 %v3352_v15, %v8452_v57  ;;  %v3382_v13 = vadd.f32 %v3381_v2, %v3373_v7  ;;  %v9207_v15 = vld [vmem:[#allocation17_spill] sm:$0xff] }
 0x557   :  { %vm3285_vm7 = vcmp.gt.f32.partialorder %v3268_v54, 0.0  ;;  %v3302_v30 = vmul.f32 %v8295_v42, %v3268_v54  ;;  %v3395_v61 = vadd.f32 %v3394_v19, %v3374_v48 }
 0x558   :  { %v8474_v23 = vsel %vm3284_vm5, %v3267_v21, %v3301_v40  ;;  %v9208_v40 = vld [vmem:[#allocation18_spill] sm:$0xff] }
 0x559   :  { %v8476_v1 = vsel %vm3285_vm7, %v3268_v54, %v3302_v30  ;;  %v3341_v8 = vadd.f32 %v3340_v59, %v8474_v23  ;;  %v3375_v56 = vmul.f32 %v8474_v23, %v8474_v23  ;;  %v9206_v54 = vld [vmem:[#allocation16_spill] sm:$0xff] }
 0x55a   :  { %v3354_v50 = vadd.f32 %v3353_v41, %v8476_v1  ;;  %v3376_v42 = vmul.f32 %v8476_v1, %v8476_v1  ;;  %v9209_v41 = vld [vmem:[#allocation19_spill] sm:$0xff] }
 0x55b   :  { %v3342_v16 = vrot.slane %v3341_v8, 4  ;;  %v3383_v52 = vadd.f32 %v3382_v13, %v3375_v56  ;;  %v9210_v13 = vld [vmem:[#allocation64_spill] sm:$0xff]  ;;  %v9214_v56 = vld [vmem:[#allocation66_spill] sm:$0xff] }
 0x55c   :  { %v3355_v4 = vrot.slane %v3354_v50, 4  ;;  %v3396_v25 = vadd.f32 %v3395_v61, %v3376_v42  ;;  %v9211_v61 = vld [vmem:[#allocation20_spill] sm:$0xff]  ;;  %v9215_v42 = vld [vmem:[#allocation22_spill] sm:$0xff] }
 0x55d   :  { %v3343_v60 = vadd.f32 %v3342_v16, %v3341_v8  ;;  %v3384_v47 = vrot.slane %v3383_v52, 4  ;;  %v9212_v8 = vld [vmem:[#allocation65_spill] sm:$0xff]  ;;  %v9216_v16 = vld [vmem:[#allocation67_spill] sm:$0xff] }
 0x55e   :  { %v3356_v0 = vadd.f32 %v3355_v4, %v3354_v50  ;;  %v3397_v31 = vrot.slane %v3396_v25, 4  ;;  %v9213_v50 = vld [vmem:[#allocation21_spill] sm:$0xff]  ;;  %v9217_v4 = vld [vmem:[#allocation23_spill] sm:$0xff] }
 0x55f   :  { %v3344_v45 = vrot.slane %v3343_v60, 2  ;;  %v3385_v46 = vadd.f32 %v3384_v47, %v3383_v52  ;;  %v9218_v52 = vld [vmem:[#allocation68_spill] sm:$0xff]  ;;  %v9223_v47 = vld [vmem:[#allocation26_spill] sm:$0xff] }
 0x560   :  { %v3357_v14 = vrot.slane %v3356_v0, 2  ;;  %v3398_v49 = vadd.f32 %v3397_v31, %v3396_v25  ;;  %v9219_v25 = vld [vmem:[#allocation24_spill] sm:$0xff]  ;;  %v9221_v31 = vld [vmem:[#allocation25_spill] sm:$0xff] }
 0x561   :  { %v3345_v62 = vadd.f32 %v3344_v45, %v3343_v60  ;;  %v3386_v38 = vrot.slane %v3385_v46, 2  ;;  %v9222_v60 = vld [vmem:[#allocation70_spill] sm:$0xff]  ;;  %v9226_v45 = vld [vmem:[#allocation72_spill] sm:$0xff] }
 0x562   :  { %v3358_v33 = vadd.f32 %v3357_v14, %v3356_v0  ;;  %v3399_v24 = vrot.slane %v3398_v49, 2  ;;  %v9220_v0 = vld [vmem:[#allocation69_spill] sm:$0xff]  ;;  %v9224_v14 = vld [vmem:[#allocation71_spill] sm:$0xff] }
 0x563   :  { %v3346_v26 = vrot.slane %v3345_v62, 1  ;;  %v3387_v51 = vadd.f32 %v3386_v38, %v3385_v46  ;;  %v9227_v46 = vld [vmem:[#allocation28_spill] sm:$0xff]  ;;  %v9231_v38 = vld [vmem:[#allocation34_spill] sm:$0xff] }
 0x564   :  { %v3359_v28 = vrot.slane %v3358_v33, 1  ;;  %v3400_v9 = vadd.f32 %v3399_v24, %v3398_v49  ;;  %v9225_v49 = vld [vmem:[#allocation27_spill] sm:$0xff]  ;;  %v9229_v24 = vld [vmem:[#allocation29_spill] sm:$0xff] }
 0x565   :  { %v3388_v12 = vrot.slane %v3387_v51, 1  ;;  %v3347_v39 = vadd.f32 %v3346_v26, %v3345_v62  ;;  %v9230_v62 = vld [vmem:[#allocation74_spill] sm:$0xff]  ;;  %v9234_v26 = vld [vmem:[#allocation76_spill] sm:$0xff] }
 0x566   :  { %v3401_v27 = vrot.slane %v3400_v9, 1  ;;  %v3360_v53 = vadd.f32 %v3359_v28, %v3358_v33  ;;  %v9228_v33 = vld [vmem:[#allocation73_spill] sm:$0xff]  ;;  %v9232_v28 = vld [vmem:[#allocation75_spill] sm:$0xff] }
 0x567   :  { %v3389_v20 = vadd.f32 %v3388_v12, %v3387_v51  ;;  %v9235_v51 = vld [vmem:[#allocation77_spill] sm:$0xff]  ;;  %v9237_v12 = vld [vmem:[#allocation30_spill] sm:$0xff] }
 0x568   :  { %v3402_v55 = vadd.f32 %v3401_v27, %v3400_v9  ;;  %v9233_v9 = vld [vmem:[#allocation15_spill] sm:$0xff]  ;;  %v9236_v27 = vld [vmem:[#allocation78_spill] sm:$0xff] }
 0x569   :  { %v3403_v3 = vsel %vm1315_vm3, %v3347_v39, %v3389_v20  ;;  %v9240_v39 = vld [vmem:[#allocation33_spill] sm:$0xff]  ;;  %v9241_v20 = vld [vmem:[#allocation35_spill] sm:$0xff] }
 0x56a   :  { %v3404_v63 = vsel %vm1315_vm3, %v3360_v53, %v3402_v55  ;;  %v8486_v36 = vand.u32 4294901760, %v3403_v3  ;;  %v9238_v53 = vld [vmem:[#allocation31_spill] sm:$0xff]  ;;  %v9239_v55 = vld [vmem:[#allocation32_spill] sm:$0xff] }
 0x56b   :  { %v3501_v43 = vand.u32 4294901760, %v3404_v63 }
 0x56c   :  { %v3508_v7 = vsub.f32 %v3403_v3, %v8486_v36  ;;  %v9243_v3 = vld [vmem:[#allocation37_spill] sm:$0xff] }
 0x56d   :  { %3742 = vmatprep.mubr.f32.mxu1 %v3501_v43  ;;  %v3502_v48 = vsub.f32 %v3404_v63, %v3501_v43  ;;  %v9242_v63 = vld [vmem:[#allocation36_spill] sm:$0xff] }
 0x56e   :  { %3744 = vmatmul.mubr.f32.vlgmr.msra.gmra.mrb[14].mxu1 %v8486_v36  ;;  %v3509_v21 = vand.u32 4294901760, %v3508_v7 }
 0x56f   :  { %5872 = vmatpush3.bf16.msra.mxu1 %v9206_v54  ;;  %v3503_v34 = vand.u32 4294901760, %v3502_v48 }
 0x570   :  { %5874 = vmatprep.subr.bf16.mxu1 %v9207_v15  ;;  %v3510_v19 = vsub.f32 %v3508_v7, %v3509_v21 }
 0x571   :  { %3986 = vmatprep.mubr.f32.mxu1 %v3503_v34  ;;  %v3504_v2 = vsub.f32 %v3502_v48, %v3503_v34  ;;  %v9249_v34 = vld [vmem:[#allocation44_spill] sm:$0xff] }
 0x572   :  { %v3511_v59 = vand.u32 4294901760, %v3510_v19  ;;  %v9252_v19 = vmov 0.0  }
 0x573   :  { %5876 = vmatpush3.bf16.msra.mxu1 %v9208_v40  ;;  %v3505_v30 = vand.u32 4294901760, %v3504_v2  ;;  %v9251_v2 = vld [vmem:[#allocation46_spill] sm:$0xff] }
 0x574   :  { %5878 = vmatprep.subr.bf16.mxu1 %v9209_v41 }
 0x575   :  { %3506 = vmatprep.mubr.f32.mxu0 %v3505_v30  ;;  %v9254_v30 = vld [vmem:[#allocation7_spill] sm:$0xff] }
 0x576   :  { %3512 = vmatmul.mubr.f32.vlgmr.msra.gmra.mrb[16].mxu0 %v3511_v59  ;;  %v9255_v59 = vld [vmem:[#allocation8_spill] sm:$0xff] }
 0x577   :  { %5840 = vmatpush3.bf16.msra.mxu0 %v9210_v13  ;;  %5880 = vmatpush3.bf16.msra.mxu1 %v9211_v61 }
 0x578   :  { %3879 = vmatprep.mubr.f32.mxu0 %v3502_v48  ;;  %5842 = vmatprep.subr.bf16.mxu0 %v9212_v8  ;;  %v9246_v48 = vld [vmem:[#allocation41_spill] sm:$0xff] }
 0x579   :  { %5882 = vmatprep.subr.bf16.mxu1 %v9213_v50 }
 0x57b   :  { %5844 = vmatpush3.bf16.msra.mxu0 %v9214_v56  ;;  %5884 = vmatpush3.bf16.msra.mxu1 %v9215_v42 }
 0x57c   :  { %5846 = vmatprep.subr.bf16.mxu0 %v9216_v16  ;;  %5886 = vmatprep.subr.bf16.mxu1 %v9217_v4 }
 0x57f   :  { %5848 = vmatpush3.bf16.msra.mxu0 %v9218_v52  ;;  %5888 = vmatpush3.bf16.msra.mxu1 %v9219_v25 }
 0x580   :  { %5850 = vmatprep.subr.bf16.mxu0 %v9220_v0  ;;  %5890 = vmatprep.subr.bf16.mxu1 %v9221_v31 }
 0x583   :  { %5852 = vmatpush3.bf16.msra.mxu0 %v9222_v60  ;;  %5892 = vmatpush3.bf16.msra.mxu1 %v9223_v47 }
 0x584   :  { %5854 = vmatprep.subr.bf16.mxu0 %v9224_v14  ;;  %5894 = vmatprep.subr.bf16.mxu1 %v9225_v49 }
 0x587   :  { %5856 = vmatpush3.bf16.msra.mxu0 %v9226_v45  ;;  %5896 = vmatpush3.bf16.msra.mxu1 %v9227_v46 }
 0x588   :  { %5858 = vmatprep.subr.bf16.mxu0 %v9228_v33  ;;  %5898 = vmatprep.subr.bf16.mxu1 %v9229_v24 }
 0x58b   :  { %5860 = vmatpush3.bf16.msra.mxu0 %v9230_v62  ;;  %5900 = vmatpush3.bf16.msra.mxu1 %v9231_v38 }
 0x58c   :  { %5862 = vmatprep.subr.bf16.mxu0 %v9232_v28  ;;  %5934 = vmatprep.subr.bf16.mxu1 %v9233_v9 }
 0x58e   :  { %3990 = vmatmul.mubr.f32.vlgmr.msra.gmra.mrb[16].mxu1 %v3509_v21  ;;  %v9247_v21 = vld [vmem:[#allocation42_spill] sm:$0xff] }
 0x58f   :  { %5864 = vmatpush3.bf16.msra.mxu0 %v9234_v26  ;;  %5936 = vmatpush3.bf16.msra.mxu1 %v9206_v54  ;;  %v9248_v54 = vld [vmem:[#allocation43_spill] sm:$0xff] }
 0x590   :  { %4260 = vmatprep.mubr.f32.mxu1 %v3501_v43  ;;  %5866 = vmatprep.subr.bf16.mxu0 %v9235_v51 }
 0x591   :  { %5938 = vmatprep.subr.bf16.mxu1 %v9207_v15  ;;  %v9250_v15 = vld [vmem:[#allocation45_spill] sm:$0xff] }
 0x593   :  { %5868 = vmatpush3.bf16.msra.mxu0 %v9236_v27  ;;  %5940 = vmatpush3.bf16.msra.mxu1 %v9208_v40  ;;  %v9253_v40 = vld [vmem:[#allocation47_spill] sm:$0xff] }
 0x594   :  { %5902 = vmatprep.subr.bf16.mxu0 %v9237_v12  ;;  %5942 = vmatprep.subr.bf16.mxu1 %v9209_v41  ;;  %v9256_v41 = vld [vmem:[#allocation9_spill] sm:$0xff] }
 0x596   :  { %3882 = vmatmul.mubr.f32.vlgmr.msra.gmra.mrb[18].mxu0 %v3508_v7  ;;  %v9245_v7 = vld [vmem:[#allocation40_spill] sm:$0xff] }
 0x597   :  { %5904 = vmatpush3.bf16.msra.mxu0 %v9238_v53  ;;  %4156 = vmatprep.mubr.f32.mxu0 %v3501_v43  ;;  %v9244_v43 = vld [vmem:[#allocation38_spill] sm:$0xff] }
 0x598   :  { %5944 = vmatpush3.bf16.msra.mxu1 %v9211_v61  ;;  %5906 = vmatprep.subr.bf16.mxu0 %v9239_v55 }
 0x599   :  { %5946 = vmatprep.subr.bf16.mxu1 %v9213_v50 }
 0x59b   :  { %5908 = vmatpush3.bf16.msra.mxu0 %v9240_v39 }
 0x59c   :  { %5948 = vmatpush3.bf16.msra.mxu1 %v9215_v42  ;;  %5910 = vmatprep.subr.bf16.mxu0 %v9241_v20 }
 0x59d   :  { %5950 = vmatprep.subr.bf16.mxu1 %v9217_v4 }
 0x59f   :  { %5912 = vmatpush3.bf16.msra.mxu0 %v9242_v63 }
 0x5a0   :  { %5952 = vmatpush3.bf16.msra.mxu1 %v9219_v25  ;;  %5914 = vmatprep.subr.bf16.mxu0 %v9243_v3 }
 0x5a1   :  { %5954 = vmatprep.subr.bf16.mxu1 %v9221_v31 }
 0x5a3   :  { %5916 = vmatpush3.bf16.msra.mxu0 %v9244_v43 }
 0x5a4   :  { %5956 = vmatpush3.bf16.msra.mxu1 %v9223_v47  ;;  %5918 = vmatprep.subr.bf16.mxu0 %v9245_v7 }
 0x5a5   :  { %5958 = vmatprep.subr.bf16.mxu1 %v9225_v49 }
 0x5a7   :  { %5920 = vmatpush3.bf16.msra.mxu0 %v9246_v48  ;;  %v9257_v48 = vld [vmem:[#allocation10_spill] sm:$0xff] }
 0x5a8   :  { %5960 = vmatpush3.bf16.msra.mxu1 %v9227_v46  ;;  %5922 = vmatprep.subr.bf16.mxu0 %v9247_v21  ;;  %v9258_v21 = vld [vmem:[#allocation11_spill] sm:$0xff] }
 0x5a9   :  { %5962 = vmatprep.subr.bf16.mxu1 %v9229_v24 }
 0x5ab   :  { %5924 = vmatpush3.bf16.msra.mxu0 %v9248_v54  ;;  %v9259_v54 = vld [vmem:[#allocation14_spill] sm:$0xff] }
 0x5ac   :  { %5964 = vmatpush3.bf16.msra.mxu1 %v9231_v38  ;;  %5926 = vmatprep.subr.bf16.mxu0 %v9249_v34  ;;  %v9260_v34 = vld [vmem:[#allocation12_spill] sm:$0xff] }
 0x5af   :  { %4262 = vmatmul.mubr.f32.vlgmr.msra.gmra.mrb[18].mxu1 %v8486_v36  ;;  %5928 = vmatpush3.bf16.msra.mxu0 %v9250_v15  ;;  %v9261_v15 = vld [vmem:[#allocation13_spill] sm:$0xff] }
 0x5b0   :  { %5930 = vmatprep.subr.bf16.mxu0 %v9251_v2  ;;  %5042 = vmatprep.mubr.f32.mxu1 %v9252_v19  ;;  %v4798_v2 = vpop.permute.xlu1 %4797 }
 0x5b3   :  { %5932 = vmatpush3.bf16.msra.mxu0 %v9253_v40  ;;  %v4803_v40 = vpop.permute.xlu0 %4802 }
 0x5b4   :  { %5966 = vmatprep.subr.bf16.mxu0 %v9254_v30 }
 0x5b6   :  { %4158 = vmatmul.mubr.f32.vlgmr.msra.gmra.mrb[20].mxu0 %v8486_v36 }
 0x5b7   :  { %5968 = vmatpush1.bf16.msra.mxu0 %v9255_v59  ;;  %4348 = vmatprep.mubr.f32.mxu0 %v9252_v19 }
 0x5b8   :  { %5970 = vmatprep.subr.bf16.mxu0 %v9256_v41  ;;  %v4808_v41 = vpop.permute.xlu1 %4807 }
 0x641   :  { %v5382_v13 = vpop.f32.mrb[14].mxu1 }
 0x642   :  { %v5383_v61 = vpop.f32.mrb[15].mxu1 }
 0x643   :  { %v5384_v8 = vadd.f32 %v5383_v61, %v5382_v13  ;;  %v4813_v13 = vpop.permute.xlu0 %4812  ;;  %v4878_v61 = vpop.permute.xlu1 %4877 }
 0x649   :  { %v5347_v50 = vpop.f32.mrb[16].mxu0 }
 0x64a   :  { %v5348_v56 = vpop.f32.mrb[17].mxu0 }
 0x64b   :  { %v5349_v42 = vadd.f32 %v5348_v56, %v5347_v50  ;;  %v8576_v50 = vpop.permute.xlu1 %4817 }
 0x64d   :  { %v3746_v16 = vadd.f32 %v5384_v8, %v5349_v42  ;;  %v4883_v8 = vpop.permute.xlu0 %4882 }
 0x651   :  { %v8578_v56 = vpop.permute.xlu0 %4822 }
 0x661   :  { %v5452_v4 = vpop.f32.mrb[16].mxu1 }
 0x662   :  { %v5453_v52 = vpop.f32.mrb[17].mxu1 }
 0x663   :  { %v5454_v25 = vadd.f32 %v5453_v52, %v5452_v4 }
 0x669   :  { %v5417_v0 = vpop.f32.mrb[18].mxu0 }
 0x66a   :  { %v5418_v31 = vpop.f32.mrb[19].mxu0 }
 0x66b   :  { %v5419_v60 = vadd.f32 %v5418_v31, %v5417_v0  ;;  %v4893_v0 = vpop.permute.xlu0 %4892 }
 0x66d   :  { %v3884_v36 = vadd.f32 %v5419_v60, %v3746_v16  ;;  %v9262_v16 = vld [vmem:[#allocation50_spill] sm:$0xff] }
 0x66f   :  { %v3992_v47 = vadd.f32 %v5454_v25, %v3884_v36 }
 0x682   :  { %v5522_v14 = vpop.f32.mrb[18].mxu1 }
 0x683   :  { %v5523_v49 = vpop.f32.mrb[19].mxu1 }
 0x684   :  { %v5524_v45 = vadd.f32 %v5523_v49, %v5522_v14 }
 0x689   :  { %v5487_v46 = vpop.f32.mrb[20].mxu0 }
 0x68a   :  { %v5488_v33 = vpop.f32.mrb[21].mxu0 }
 0x68b   :  { %v5489_v24 = vadd.f32 %v5488_v33, %v5487_v46 }
 0x68d   :  { %v4160_v62 = vadd.f32 %v5489_v24, %v3992_v47 }
 0x68f   :  { %v4264_v38 = vadd.f32 %v5524_v45, %v4160_v62 }
 0x691   :  { %v4267_v28 = vmul.f32 0.0009765625, %v4264_v38 }
 0x693   :  { %v4268_v9 = vmul.f32 %v4267_v28, %v4267_v28 }
 0x695   :  { %v4270_v26 = vrot.slane %v4268_v9, 7 }
 0x697   :  { %v4272_v51 = vsub.f32 %v4267_v28, %v4270_v26 }
 0x699   :  { %v4273_v27 = vmax.f32 %v4272_v51, 0.0 }
 0x69b   :  { %v4274_v12 = vadd.f32 1e-05, %v4273_v27 }
 0x69d   :  { %6160 = vrsqrt.f32 %v4274_v12 }
 0x6a7   :  { %v6161_v53 = vpop.eup %6160 }
 0x6a8   :  { %v4276_v55 = vsel %vm1315_vm3, %v4267_v28, %v6161_v53 }
 0x6a9   :  { %v4278_v39 = vsel %vm112_vm0, %v4276_v55, 0  ;;  %v4833_v55 = vpop.permute.xlu0 %4832  ;;  %vm4959_vm0 = vcmask 523264  }
 0x6aa   :  { %v4349_v20 = vand.u32 4294901760, %v4278_v39 }
 0x6ac   :  { %v4350_v63 = vsub.f32 %v4278_v39, %v4349_v20 }
 0x6ae   :  { %v4351_v3 = vand.u32 4294901760, %v4350_v63 }
 0x6b0   :  { %v4352_v43 = vsub.f32 %v4350_v63, %v4351_v3 }
 0x6b2   :  { %v4353_v7 = vand.u32 4294901760, %v4352_v43 }
 0x6b4   :  { %4354 = vmatmul.mubr.f32.vlgmr.msra.gmra.mrb[22].mxu0 %v4353_v7 }
 0x6b5   :  { %5972 = vmatpush1.bf16.msra.mxu0 %v9257_v48  ;;  %4444 = vmatprep.mubr.f32.mxu0 %v9252_v19 }
 0x6b6   :  { %5974 = vmatprep.subr.bf16.mxu0 %v9258_v21 }
 0x6bc   :  { %4446 = vmatmul.mubr.f32.vlgmr.msra.gmra.mrb[22].mxu0 %v4349_v20 }
 0x6bd   :  { %5976 = vmatpush1.bf16.msra.mxu0 %v9259_v54  ;;  %4524 = vmatprep.mubr.f32.mxu0 %v9252_v19 }
 0x6be   :  { %5978 = vmatprep.subr.bf16.mxu0 %v9254_v30 }
 0x6c4   :  { %4527 = vmatmul.mubr.f32.vlgmr.msra.gmra.mrb[22].mxu0 %v4350_v63 }
 0x6c5   :  { %5980 = vmatpush1.bf16.msra.mxu0 %v9255_v59  ;;  %4601 = vmatprep.mubr.f32.mxu0 %v9252_v19 }
 0x6c6   :  { %5982 = vmatprep.subr.bf16.mxu0 %v9260_v34 }
 0x6cc   :  { %4605 = vmatmul.mubr.f32.vlgmr.msra.gmra.mrb[22].mxu0 %v4351_v3 }
 0x6cd   :  { %5984 = vmatpush1.bf16.msra.mxu0 %v9261_v15  ;;  %4687 = vmatprep.mubr.f32.mxu0 %v9252_v19 }
 0x6ce   :  { %5986 = vmatprep.subr.bf16.mxu0 %v9254_v30  ;;  %v4888_v30 = vpop.permute.xlu1 %4887 }
 0x6d2   :  { %v4828_v51 = vpop.permute.xlu1 %4827 }
 0x6d4   :  { %4689 = vmatmul.mubr.f32.vlgmr.msra.gmra.mrb[22].mxu0 %v4349_v20 }
 0x6d5   :  { %5988 = vmatpush1.bf16.msra.mxu0 %v9255_v59  ;;  %4763 = vmatprep.mubr.f32.mxu0 %v9252_v19  ;;  %v9263_v59 = vld [vmem:[#allocation51_spill] sm:$0xff] }
 0x6dc   :  { %4765 = vmatmul.mubr.f32.vlgmr.msra.gmra.mrb[22].mxu0 %v4349_v20 }
 0x6dd   :  { %5036 = vmatprep.mubr.f32.mxu0 %v9252_v19 }
 0x7af   :  { %v4766_v42 = vpop.f32.mrb[22].mxu0 }
 0x7b0   :  { %v8581_v4 = vrot.slane %v4766_v42, %v9262_v16  ;;  %v8584_v52 = vrot.slane %v4766_v42, %v9263_v59  ;;  %v4768_v25 = vpop.f32.mrb[23].mxu0  ;;  %v4903_v42 = vpop.permute.xlu0 %4902 }
 0x7b1   :  { %v8587_v31 = vrot.slane %v4768_v25, %v9262_v16  ;;  %v8590_v60 = vrot.slane %v4768_v25, %v9263_v59 }
 0x7b2   :  { %v4779_v36 = vsub.f32 %v8335_v58, %v8581_v4  ;;  %v4781_v47 = vsub.f32 %v8360_v6, %v8581_v4  ;;  %v4843_v14 = vmul.f32 %v8584_v52, %v4798_v2  ;;  %v4845_v49 = vmul.f32 %v8584_v52, %v4803_v40 }
 0x7b3   :  { %v4780_v45 = vsub.f32 %v8338_v22, %v8587_v31  ;;  %v4782_v46 = vsub.f32 %v8362_v11, %v8587_v31  ;;  %v4844_v33 = vmul.f32 %v8590_v60, %v4798_v2  ;;  %v4846_v24 = vmul.f32 %v8590_v60, %v4803_v40 }
 0x7b4   :  { %v4859_v62 = vmul.f32 %v4843_v14, %v4779_v36  ;;  %v4861_v38 = vmul.f32 %v4845_v49, %v4781_v47  ;;  %v4784_v58 = vsub.f32 %v8392_v32, %v8587_v31  ;;  %v4786_v6 = vsub.f32 %v8406_v44, %v8587_v31 }
 0x7b5   :  { %v4860_v28 = vmul.f32 %v4844_v33, %v4780_v45  ;;  %v4862_v9 = vmul.f32 %v4846_v24, %v4782_v46  ;;  %v4848_v26 = vmul.f32 %v8590_v60, %v4808_v41  ;;  %v4850_v22 = vmul.f32 %v8590_v60, %v4813_v13 }
 0x7b6   :  { %v4915_v11 = vadd.f32 %v4878_v61, %v4859_v62  ;;  %v4917_v27 = vadd.f32 %v4883_v8, %v4861_v38  ;;  %v4783_v12 = vsub.f32 %v8390_v37, %v8581_v4  ;;  %v4785_v53 = vsub.f32 %v8404_v17, %v8581_v4 }
 0x7b7   :  { %v4916_v32 = vadd.f32 %v4878_v61, %v4860_v28  ;;  %v4918_v39 = vadd.f32 %v4883_v8, %v4862_v9  ;;  %v4864_v20 = vmul.f32 %v4848_v26, %v4784_v58  ;;  %v4866_v44 = vmul.f32 %v4850_v22, %v4786_v6  ;;  %v4913_v58 = vpop.permute.xlu0 %4912 }
 0x7b8   :  { %v5991_v63 = vpack.c.bf16 %v4917_v27, %v4915_v11  ;;  %v4847_v3 = vmul.f32 %v8584_v52, %v4808_v41  ;;  %v4849_v43 = vmul.f32 %v8584_v52, %v4813_v13  ;;  %v4788_v7 = vsub.f32 %v8424_v5, %v8587_v31  ;;  %v4898_v13 = vpop.permute.xlu1 %4897  ;;  %v4933_v11 = vld [vmem:[%s8709_s15 + $0x10] sm:$0xff]  ;;  %v4934_v27 = vld [vmem:[%s8709_s15 + $0x18] sm:$0xff] }
 0x7b9   :  { %v5989_v48 = vpack.c.bf16 %v4918_v39, %v4916_v32  ;;  %v4920_v21 = vadd.f32 %v4888_v30, %v4864_v20  ;;  %v4922_v54 = vadd.f32 %v4893_v0, %v4866_v44  ;;  %v4790_v37 = vsub.f32 %v8446_v29, %v8587_v31 }
 0x7ba   :  { %v4863_v17 = vmul.f32 %v4847_v3, %v4783_v12  ;;  %v4865_v34 = vmul.f32 %v4849_v43, %v4785_v53  ;;  %v4852_v15 = vmul.f32 %v8590_v60, %v8576_v50  ;;  %v4854_v2 = vmul.f32 %v8590_v60, %v8578_v56 }
 0x7bb   :  { %5990 = vmatprep.subr.bf16.mxu0 %v5989_v48  ;;  %6005 = vmatprep.subr.bf16.mxu1 %v5989_v48  ;;  %v5993_v40 = vpack.c.bf16 %v4922_v54, %v4920_v21  ;;  %v4787_v5 = vsub.f32 %v8422_v10, %v8581_v4  ;;  %v4789_v41 = vsub.f32 %v8444_v35, %v8581_v4  ;;  %v4947_v53 = vpop.permute.xlu0 %4946  ;;  %v6164_v48 = vld [vmem:[%s8947_s26 + $0x10] sm:$0xff] }
 0x7bc   :  { %5992 = vmatpush1.bf16.msra.mxu0 %v5991_v63  ;;  %6009 = vmatpush1.bf16.msra.mxu1 %v5991_v63  ;;  %v4919_v29 = vadd.f32 %v4888_v30, %v4863_v17  ;;  %v4921_v61 = vadd.f32 %v4893_v0, %v4865_v34  ;;  %v4868_v8 = vmul.f32 %v4852_v15, %v4788_v7  ;;  %v6163_v7 = vld [vmem:[%s8947_s26] sm:$0xff]  ;;  %v6166_v34 = vld [vmem:[%s8947_s26 + $0x18] sm:$0xff] }
 0x7bd   :  { %5994 = vmatprep.subr.bf16.mxu0 %v5993_v40  ;;  %6006 = vmatprep.subr.bf16.mxu1 %v5993_v40  ;;  %v4870_v16 = vmul.f32 %v4854_v2, %v4790_v37  ;;  %v4851_v59 = vmul.f32 %v8584_v52, %v8576_v50  ;;  %v4853_v25 = vmul.f32 %v8584_v52, %v8578_v56  ;;  %v6165_v37 = vld [vmem:[%s8947_s26 + $0x8] sm:$0xff] }
 0x7be   :  { %v5995_v10 = vpack.c.bf16 %v4921_v61, %v4919_v29  ;;  %v4924_v36 = vadd.f32 %v4898_v13, %v4868_v8  ;;  %v4792_v35 = vsub.f32 %v8452_v57, %v8587_v31  ;;  %v4794_v30 = vsub.f32 %v8476_v1, %v8587_v31  ;;  %v4908_v1 = vpop.permute.xlu1 %4907  ;;  %v6168_v8 = vld [vmem:[%s8947_s26 + $0x28] sm:$0xff] }
 0x7bf   :  { %v4926_v0 = vadd.f32 %v4903_v42, %v4870_v16  ;;  %v4867_v47 = vmul.f32 %v4851_v59, %v4787_v5  ;;  %v4869_v14 = vmul.f32 %v4853_v25, %v4789_v41  ;;  %v4856_v49 = vmul.f32 %v8590_v60, %v4828_v51  ;;  %v4957_v61 = vpop.permute.xlu0 %4956 }
 0x7c0   :  { %5996 = vmatpush1.bf16.msra.mxu0 %v5995_v10  ;;  %6010 = vmatpush1.bf16.msra.mxu1 %v5995_v10  ;;  %v4858_v50 = vmul.f32 %v8590_v60, %v4833_v55  ;;  %v4791_v56 = vsub.f32 %v8449_v18, %v8581_v4  ;;  %v4793_v45 = vsub.f32 %v8474_v23, %v8581_v4 }
 0x7c1   :  { %v5997_v46 = vpack.c.bf16 %v4926_v0, %v4924_v36  ;;  %v4923_v57 = vadd.f32 %v4898_v13, %v4867_v47  ;;  %v4925_v33 = vadd.f32 %v4903_v42, %v4869_v14  ;;  %v4872_v24 = vmul.f32 %v4856_v49, %v4792_v35  ;;  %v6167_v13 = vld [vmem:[%s8947_s26 + $0x20] sm:$0xff]  ;;  %v6169_v36 = vld [vmem:[%s8947_s26 + $0x30] sm:$0xff] }
 0x7c2   :  { %v4874_v31 = vmul.f32 %v4858_v50, %v4794_v30  ;;  %v4855_v62 = vmul.f32 %v8584_v52, %v4828_v51  ;;  %v4857_v38 = vmul.f32 %v8584_v52, %v4833_v55  ;;  %v4931_v52 = vld [vmem:[%s8709_s15] sm:$0xff]  ;;  %v4932_v51 = vld [vmem:[%s8709_s15 + $0x8] sm:$0xff]  ;;  %v4942_v12 = vpop.permute.xlu1 %4941  ;;  %v6170_v30 = vld [vmem:[%s8947_s26 + $0x38] sm:$0xff] }
 0x7c3   :  { %5998 = vmatprep.subr.bf16.mxu0 %v5997_v46  ;;  %6007 = vmatprep.subr.bf16.mxu1 %v5997_v46  ;;  %v5999_v60 = vpack.c.bf16 %v4925_v33, %v4923_v57  ;;  %v4928_v6 = vadd.f32 %v4908_v1, %v4872_v24 }
 0x7c4   :  { %v4930_v28 = vadd.f32 %v4913_v58, %v4874_v31  ;;  %v4871_v18 = vmul.f32 %v4855_v62, %v4791_v56  ;;  %v4873_v9 = vmul.f32 %v4857_v38, %v4793_v45 }
 0x7c5   :  { %6000 = vmatpush1.bf16.msra.mxu0 %v5999_v60  ;;  %6011 = vmatpush1.bf16.msra.mxu1 %v5999_v60 }
 0x7c6   :  { %v6001_v23 = vpack.c.bf16 %v4930_v28, %v4928_v6  ;;  %v4927_v4 = vadd.f32 %v4908_v1, %v4871_v18  ;;  %v4929_v26 = vadd.f32 %v4913_v58, %v4873_v9  ;;  %v4952_v54 = vpop.permute.xlu1 %4951 }
 0x7c8   :  { %6002 = vmatprep.subr.bf16.mxu0 %v6001_v23  ;;  %6008 = vmatprep.subr.bf16.mxu1 %v6001_v23  ;;  %v6003_v22 = vpack.c.bf16 %v4929_v26, %v4927_v4 }
 0x7ca   :  { %6004 = vmatpush1.bf16.msra.mxu0 %v6003_v22  ;;  %6012 = vmatpush1.bf16.msra.mxu1 %v6003_v22 }
 0x7cd   :  { %5101 = vmatmul.mubr.msk.f32.vlgmr.msra.gmra.mrb[24].mxu0 %vm4959_vm0, %v4931_v52  ;;  %5102 = vmatmul.mubr.msk.f32.vlgmr.msra.gmra.mrb[20].mxu1 %vm4959_vm0, %v4932_v51 }
 0x7ce   :  { %5048 = vmatprep.mubr.f32.mxu1 %v9252_v19 }
 0x7d1   :  { %5103 = vmatmul.mubr.msk.f32.gmra.mrb[22].mxu1 %vm4959_vm0, %v4933_v11 }
 0x7d2   :  { %5054 = vmatprep.mubr.f32.mxu1 %v9252_v19 }
 0x7d5   :  { %5104 = vmatmul.mubr.msk.f32.gmra.mrb[24].mxu1 %vm4959_vm0, %v4934_v27 }
 0x8a0   :  { %v5038_v55 = vpop.f32.mrb[24].mxu0  ;;  %v5044_v32 = vpop.f32.mrb[20].mxu1 }
 0x8a1   :  { %v5039_v39 = vadd.f32 %v5038_v55, %v4942_v12  ;;  %v5045_v20 = vadd.f32 %v5044_v32, %v4947_v53  ;;  %v5040_v44 = vpop.f32.mrb[25].mxu0  ;;  %v5046_v63 = vpop.f32.mrb[21].mxu1 }
 0x8a2   :  { %v5041_v3 = vadd.f32 %v5040_v44, %v4942_v12  ;;  %v5047_v43 = vadd.f32 %v5046_v63, %v4947_v53 }
 0x8a3   :  { %v5061_v19 = vadd.f32 %v6163_v7, %v5039_v39  ;;  %v5063_v21 = vadd.f32 %v6164_v48, %v5045_v20 }
 0x8a4   :  { %v5062_v17 = vadd.f32 %v6165_v37, %v5041_v3  ;;  %v5064_v15 = vadd.f32 %v6166_v34, %v5047_v43  ;;  %v5050_v2 = vpop.f32.mrb[22].mxu1 }
 0x8a5   :  { %5069 = vst [vmem:[#allocation4] sm:$0xff] %v5061_v19  ;;  %5071 = vst [vmem:[#allocation4 + $0x10] sm:$0xff] %v5063_v21  ;;  %v5051_v40 = vadd.f32 %v5050_v2, %v4952_v54  ;;  %v5052_v5 = vpop.f32.mrb[23].mxu1 }
 0x8a6   :  { %5070 = vst [vmem:[#allocation4 + $0x8] sm:$0xff] %v5062_v17  ;;  %5072 = vst [vmem:[#allocation4 + $0x18] sm:$0xff] %v5064_v15  ;;  %v5053_v41 = vadd.f32 %v5052_v5, %v4952_v54 }
 0x8a7   :  { %v5065_v29 = vadd.f32 %v6167_v13, %v5051_v40 }
 0x8a8   :  { %v5066_v42 = vadd.f32 %v6168_v8, %v5053_v41  ;;  %v5056_v16 = vpop.f32.mrb[24].mxu1 }
 0x8a9   :  { %5073 = vst [vmem:[#allocation4 + $0x20] sm:$0xff] %v5065_v29  ;;  %v5057_v59 = vadd.f32 %v5056_v16, %v4957_v61  ;;  %v5058_v25 = vpop.f32.mrb[25].mxu1 }
 0x8aa   :  { %5074 = vst [vmem:[#allocation4 + $0x28] sm:$0xff] %v5066_v42  ;;  %v5059_v10 = vadd.f32 %v5058_v25, %v4957_v61 }
 0x8ab   :  { %v5067_v35 = vadd.f32 %v6169_v36, %v5057_v59 }
 0x8ac   :  { %v5068_v0 = vadd.f32 %v6170_v30, %v5059_v10 }
 0x8ad   :  { %5075 = vst [vmem:[#allocation4 + $0x30] sm:$0xff] %v5067_v35 }
 0x8ae   :  { %5076 = vst [vmem:[#allocation4 + $0x38] sm:$0xff] %v5068_v0 }
 0x8af   :  { %6182 = shalt.err (!%p6179_p4)
}
 0x8b0   :  { %s6183_s12 = scalar_lea.hbm %s8711_s17, 1024 }
 0x8b1   :  { %p6184_p5 = scmp.ne.s32.totalorder %s8711_s17, %s6183_s12  ;;  %p6187_p6 = scmp.lt.u32.totalorder %s6183_s12, %s8711_s17 }
 0x8b3   :  { %p6189_p7 = pnand %p6187_p6, %p6184_p5 }
 0x8b5   :  { %6192 = shalt.err (!%p6189_p7)
}
 0x8b6   :  { %s6202_s6 = smov 256   ;;  %s6203_s22 = smov 16  }
 0x8b7   :  { %5088 = dma.vmem_to_hbm [thread:$0]  %s5083_s30, 1024, %s8711_s17, [#allocation5], %s6202_s6, %s6202_s6, %s6203_s22  }
 0x8b8   :  { %6193 = dma.done.wait [#allocation5], 1024  }
 0x8b9   :  { %6194 = vsyncadd [#allocation5], 4294966272 }
 0x8ba   :  { %5092 = vsyncpa [#allocation5], 1 }

</bundles_post_ra>
